<compile_context>
chip_gen: v6e
topology: v6e:2x2x1
jax: 0.10.0
libtpu: 0.0.40
codegen_flags: <defaults>
</compile_context>

<pallas_src>
import functools

import jax
import jax.numpy as jnp
from jax import lax
from jax.experimental import pallas as pl
from jax.experimental.pallas import tpu as pltpu


# ---------------------------------------------------------------------------
# Fused bottleneck kernel (one batch image per grid step)
# ---------------------------------------------------------------------------
def _bottleneck_kernel(x_ref, col_ref, w1_ref, b1_ref, w2_ref, b2_ref,
                       w3_ref, b3_ref, o_ref, p_ref, *, height, width,
                       pad_rows):
    hw = height * width
    cmid = w1_ref.shape[1]
    rows = p_ref.shape[0]

    x = x_ref[0]                                       # (HW, Cin) bf16

    # ---- conv1 1x1 (+ folded bn1) + relu -> f32 ------------------------------
    a1 = jnp.dot(x, w1_ref[...], preferred_element_type=jnp.float32)
    o1 = jnp.maximum(a1 + b1_ref[...], 0.0)            # (HW, Cmid) f32

    # Write conv1 output into the zero-padded flat VMEM scratch (halo rows = 0).
    p_ref[pl.ds(0, pad_rows), :] = jnp.zeros((pad_rows, cmid), jnp.float32)
    p_ref[pl.ds(pad_rows + hw, rows - pad_rows - hw), :] = jnp.zeros(
        (rows - pad_rows - hw, cmid), jnp.float32)
    p_ref[pl.ds(pad_rows, hw), :] = o1

    # ---- conv2 3x3 (pad=1, stride=1): 9 shifted matmuls from the scratch -----
    # Flat tap at row r is o1[r + (dy-1)*W + (dx-1)]; H overflow lands in the
    # zero pad, only the W wrap-around needs masking.
    col = col_ref[...]                                  # (HW, 1) int32 col index
    acc2 = jnp.zeros((hw, cmid), jnp.float32)
    for dy in range(3):
        for dx in range(3):
            shift = (dy - 1) * width + (dx - 1)
            tap = p_ref[pl.ds(pad_rows + shift, hw), :]
            if dx != 1:
                cc = col + (dx - 1)
                tap = jnp.where((cc >= 0) & (cc < width), tap, 0.0)
            acc2 = acc2 + jnp.dot(tap.astype(jnp.bfloat16), w2_ref[dy, dx],
                                  preferred_element_type=jnp.float32)
    o2 = jnp.maximum(acc2 + b2_ref[...], 0.0).astype(jnp.bfloat16)

    # ---- conv3 1x1 (+ folded bn3) + identity residual + relu -----------------
    a3 = jnp.dot(o2, w3_ref[...], preferred_element_type=jnp.float32)
    y = a3 + b3_ref[...] + x.astype(jnp.float32)
    o_ref[0] = jnp.maximum(y, 0.0)


# ---------------------------------------------------------------------------
# Wrapper: layout plumbing + pallas_call
# ---------------------------------------------------------------------------
def bottleneck_forward(x_nchw, params):
    n, cin, h, w = x_nchw.shape
    hw = h * w
    w1, b1 = params["w1"], params["b1"]
    w2, b2 = params["w2"], params["b2"]
    w3, b3 = params["w3"], params["b3"]
    cmid = w1.shape[-1]
    cout = w3.shape[-1]
    assert cin == cout, "identity residual requires inplanes == planes * 4"

    # NCHW -> (N, H*W, C) channels-last rows, bf16 for the MXU.
    x = jnp.transpose(x_nchw, (0, 2, 3, 1)).reshape(n, hw, cin)
    x = x.astype(jnp.bfloat16)
    col_ids = (jnp.arange(hw, dtype=jnp.int32) % w).reshape(hw, 1)

    pad = ((w + 1) + 7) // 8 * 8                 # 8-aligned start of real data
    rows = (pad + hw + w + 1 + 7) // 8 * 8       # padded scratch rows

    kernel = functools.partial(_bottleneck_kernel, height=h, width=w,
                               pad_rows=pad)

    flops = 2 * n * hw * (cin * cmid + 9 * cmid * cmid + cmid * cout)
    bytes_accessed = (x.size * 2 + n * hw * cout * 4
                      + (w1.size + w2.size + w3.size) * 2
                      + (b1.size + b2.size + b3.size) * 4
                      + col_ids.size * 4)

    out = pl.pallas_call(
        kernel,
        out_shape=jax.ShapeDtypeStruct((n, hw, cout), jnp.float32),
        grid=(n,),
        in_specs=[
            pl.BlockSpec((1, hw, cin), lambda i: (i, 0, 0)),          # x
            pl.BlockSpec((hw, 1), lambda i: (0, 0)),                  # col ids
            pl.BlockSpec((cin, cmid), lambda i: (0, 0)),              # w1
            pl.BlockSpec((1, cmid), lambda i: (0, 0)),                # b1
            pl.BlockSpec((3, 3, cmid, cmid), lambda i: (0, 0, 0, 0)), # w2
            pl.BlockSpec((1, cmid), lambda i: (0, 0)),                # b2
            pl.BlockSpec((cmid, cout), lambda i: (0, 0)),             # w3
            pl.BlockSpec((1, cout), lambda i: (0, 0)),                # b3
        ],
        out_specs=pl.BlockSpec((1, hw, cout), lambda i: (i, 0, 0)),
        scratch_shapes=[pltpu.VMEM((rows, cmid), jnp.float32)],
        compiler_params=pltpu.CompilerParams(
            dimension_semantics=("parallel",),
            vmem_limit_bytes=48 * 1024 * 1024),
        cost_estimate=pl.CostEstimate(
            flops=int(flops), transcendentals=0,
            bytes_accessed=int(bytes_accessed)),
    )(x, col_ids, w1, b1, w2, b2, w3, b3)

    return jnp.transpose(out.reshape(n, h, w, cout), (0, 3, 1, 2))


# ---------------------------------------------------------------------------
# Parameters: conv weights with PyTorch-style init, inference-mode BN folded
# into the weights (scale) + a per-channel shift. Stored in kernel layouts.
# ---------------------------------------------------------------------------
def make_params(key, inplanes, planes, eps=1e-5):
    expansion = 4
    cout = planes * expansion
    ks = jax.random.split(key, 15)

    def conv_w(k, shape, fan):
        # PyTorch ResNet init: N(0, sqrt(2 / (kH * kW * out_channels)))
        return jax.random.normal(k, shape, jnp.float32) * jnp.sqrt(2.0 / fan)

    w1 = conv_w(ks[0], (inplanes, planes), 1 * 1 * planes)
    w2 = conv_w(ks[1], (3, 3, planes, planes), 3 * 3 * planes)
    w3 = conv_w(ks[2], (planes, cout), 1 * 1 * cout)

    def bn_fold(kg, kb, km, kv, c):
        gamma = 1.0 + 0.1 * jax.random.normal(kg, (c,), jnp.float32)
        beta = 0.1 * jax.random.normal(kb, (c,), jnp.float32)
        mean = 0.1 * jax.random.normal(km, (c,), jnp.float32)
        var = 0.5 + jax.random.uniform(kv, (c,), jnp.float32)
        scale = gamma * lax.rsqrt(var + eps)
        shift = beta - mean * scale
        return scale, shift

    s1, t1 = bn_fold(ks[3], ks[4], ks[5], ks[6], planes)
    s2, t2 = bn_fold(ks[7], ks[8], ks[9], ks[10], planes)
    s3, t3 = bn_fold(ks[11], ks[12], ks[13], ks[14], cout)

    return dict(
        w1=(w1 * s1[None, :]).astype(jnp.bfloat16),
        b1=t1.reshape(1, planes).astype(jnp.float32),
        w2=(w2 * s2[None, None, None, :]).astype(jnp.bfloat16),
        b2=t2.reshape(1, planes).astype(jnp.float32),
        w3=(w3 * s3[None, :]).astype(jnp.bfloat16),
        b3=t3.reshape(1, cout).astype(jnp.float32),
    )


# ---------------------------------------------------------------------------
# Pure-XLA reference using the same folded bf16 weights / bf16 activations.
# ---------------------------------------------------------------------------
def bottleneck_reference(x_nchw, params):
    x = jnp.transpose(x_nchw, (0, 2, 3, 1)).astype(jnp.bfloat16)
    dn = ("NHWC", "HWIO", "NHWC")

    def conv(v, w_hwio):
        return lax.conv_general_dilated(
            v, w_hwio, (1, 1), "SAME", dimension_numbers=dn,
            preferred_element_type=jnp.float32)

    o = conv(x, params["w1"][None, None]) + params["b1"]
    o = jnp.maximum(o, 0.0).astype(jnp.bfloat16)
    o = conv(o, params["w2"]) + params["b2"]
    o = jnp.maximum(o, 0.0).astype(jnp.bfloat16)
    o = conv(o, params["w3"][None, None]) + params["b3"]
    o = jnp.maximum(o + x.astype(jnp.float32), 0.0)
    return jnp.transpose(o, (0, 3, 1, 2))


if __name__ == "__main__":
    key = jax.random.PRNGKey(0)
    kx, kp = jax.random.split(key)

    # Small spatial extent but real layer1 channel counts so the output is
    # lane-dense (Cout = 256 = 2 x 128 lanes). Identity residual path requires
    # inplanes == planes * expansion.
    batch, planes = 2, 64
    inplanes = planes * 4            # 256
    H = W = 16

    x = jax.random.normal(kx, (batch, inplanes, H, W), jnp.float32)   # NCHW
    params = make_params(kp, inplanes, planes)

    out = jax.block_until_ready(jax.jit(bottleneck_forward)(x, params))
    assert out.shape == (batch, inplanes, H, W), out.shape
    assert bool(jnp.all(jnp.isfinite(out)))

    ref = jax.block_until_ready(jax.jit(bottleneck_reference)(x, params))
    max_err = float(jnp.max(jnp.abs(out - ref)))
    assert max_err < 3e-2, f"mismatch vs reference: {max_err}"

    print("KERNEL_OK")
</pallas_src>

<mosaic_0001>
module attributes {stable_mosaic.version = 11 : i64} {
  func.func @_bottleneck_kernel(%arg0: i32, %arg1: memref<1x256x256xbf16, #tpu.memory_space<vmem>>, %arg2: memref<256x1xi32, #tpu.memory_space<vmem>>, %arg3: memref<256x64xbf16, #tpu.memory_space<vmem>>, %arg4: memref<1x64xf32, #tpu.memory_space<vmem>>, %arg5: memref<3x3x64x64xbf16, #tpu.memory_space<vmem>>, %arg6: memref<1x64xf32, #tpu.memory_space<vmem>>, %arg7: memref<64x256xbf16, #tpu.memory_space<vmem>>, %arg8: memref<1x256xf32, #tpu.memory_space<vmem>>, %arg9: memref<1x256x256xf32, #tpu.memory_space<vmem>>, %arg10: memref<304x64xf32, #tpu.memory_space<vmem>>) attributes {dimension_semantics = [#tpu.dimension_semantics<parallel>], iteration_bounds = array<i64: 2>, scalar_prefetch = 0 : i64, scratch_operands = 1 : i64, tpu.core_type = #tpu.core_type<tc>, window_params = [{transform_indices = @transform_0, window_bounds = array<i64: 1, 256, 256>}, {pipeline_mode = #tpu.pipeline_mode<synchronous>, transform_indices = @transform_1, window_bounds = array<i64: 256, 1>}, {pipeline_mode = #tpu.pipeline_mode<synchronous>, transform_indices = @transform_2, window_bounds = array<i64: 256, 64>}, {pipeline_mode = #tpu.pipeline_mode<synchronous>, transform_indices = @transform_3, window_bounds = array<i64: 1, 64>}, {pipeline_mode = #tpu.pipeline_mode<synchronous>, transform_indices = @transform_4, window_bounds = array<i64: 3, 3, 64, 64>}, {pipeline_mode = #tpu.pipeline_mode<synchronous>, transform_indices = @transform_5, window_bounds = array<i64: 1, 64>}, {pipeline_mode = #tpu.pipeline_mode<synchronous>, transform_indices = @transform_6, window_bounds = array<i64: 64, 256>}, {pipeline_mode = #tpu.pipeline_mode<synchronous>, transform_indices = @transform_7, window_bounds = array<i64: 1, 256>}, {transform_indices = @transform_8, window_bounds = array<i64: 1, 256, 256>}]} {
    %c0 = arith.constant 0 : index
    %c0_0 = arith.constant 0 : index
    %c0_1 = arith.constant 0 : index
    %0 = vector.load %arg1[%c0, %c0_0, %c0_1] : memref<1x256x256xbf16, #tpu.memory_space<vmem>>, vector<1x256x256xbf16>
    %1 = vector.shape_cast %0 : vector<1x256x256xbf16> to vector<256x256xbf16>
    %c0_2 = arith.constant 0 : index
    %c0_3 = arith.constant 0 : index
    %2 = vector.load %arg3[%c0_2, %c0_3] : memref<256x64xbf16, #tpu.memory_space<vmem>>, vector<256x64xbf16>
    %cst = arith.constant dense<0.000000e+00> : vector<256x64xf32>
    %3 = tpu.matmul %1, %2, %cst {dimension_numbers = #tpu.dot_dimension_numbers<[1], [0], [0], [1], [0, 0, 1, 1], [], []>} : vector<256x256xbf16>, vector<256x64xbf16>, vector<256x64xf32> -> vector<256x64xf32>
    %c0_4 = arith.constant 0 : index
    %c0_5 = arith.constant 0 : index
    %4 = vector.load %arg4[%c0_4, %c0_5] : memref<1x64xf32, #tpu.memory_space<vmem>>, vector<1x64xf32>
    %5 = vector.broadcast %4 : vector<1x64xf32> to vector<256x64xf32>
    %6 = arith.addf %3, %5 : vector<256x64xf32>
    %cst_6 = arith.constant 0.000000e+00 : f32
    %7 = vector.broadcast %cst_6 : f32 to vector<256x64xf32>
    %8 = arith.maximumf %6, %7 : vector<256x64xf32>
    %cst_7 = arith.constant 0.000000e+00 : f32
    %9 = vector.broadcast %cst_7 : f32 to vector<24x64xf32>
    %c0_8 = arith.constant 0 : index
    %c0_9 = arith.constant 0 : index
    %10 = vector.load %arg10[%c0_8, %c0_9] : memref<304x64xf32, #tpu.memory_space<vmem>>, vector<24x64xf32>
    tpu.vector_store %arg10[%c0_8, %c0_9], %9 {strides = array<i32>} : memref<304x64xf32, #tpu.memory_space<vmem>>, vector<24x64xf32>,
    %cst_10 = arith.constant 0.000000e+00 : f32
    %11 = vector.broadcast %cst_10 : f32 to vector<24x64xf32>
    %c280 = arith.constant 280 : index
    %c0_11 = arith.constant 0 : index
    %12 = vector.load %arg10[%c280, %c0_11] : memref<304x64xf32, #tpu.memory_space<vmem>>, vector<24x64xf32>
    tpu.vector_store %arg10[%c280, %c0_11], %11 {strides = array<i32>} : memref<304x64xf32, #tpu.memory_space<vmem>>, vector<24x64xf32>,
    %c24 = arith.constant 24 : index
    %c0_12 = arith.constant 0 : index
    %13 = vector.load %arg10[%c24, %c0_12] : memref<304x64xf32, #tpu.memory_space<vmem>>, vector<256x64xf32>
    tpu.vector_store %arg10[%c24, %c0_12], %8 {strides = array<i32>} : memref<304x64xf32, #tpu.memory_space<vmem>>, vector<256x64xf32>,
    %c0_13 = arith.constant 0 : index
    %c0_14 = arith.constant 0 : index
    %14 = vector.load %arg2[%c0_13, %c0_14] : memref<256x1xi32, #tpu.memory_space<vmem>>, vector<256x1xi32>
    %cst_15 = arith.constant 0.000000e+00 : f32
    %15 = vector.broadcast %cst_15 : f32 to vector<256x64xf32>
    %c7 = arith.constant 7 : index
    %c0_16 = arith.constant 0 : index
    %16 = vector.load %arg10[%c7, %c0_16] : memref<304x64xf32, #tpu.memory_space<vmem>>, vector<256x64xf32>
    %c-1_i32 = arith.constant -1 : i32
    %17 = vector.broadcast %c-1_i32 : i32 to vector<256x1xi32>
    %18 = arith.addi %14, %17 : vector<256x1xi32>
    %c0_i32 = arith.constant 0 : i32
    %19 = vector.broadcast %c0_i32 : i32 to vector<256x1xi32>
    %20 = arith.cmpi sge, %18, %19 : vector<256x1xi32>
    %c16_i32 = arith.constant 16 : i32
    %21 = vector.broadcast %c16_i32 : i32 to vector<256x1xi32>
    %22 = arith.cmpi slt, %18, %21 : vector<256x1xi32>
    %23 = arith.andi %20, %22 : vector<256x1xi1>
    %cst_17 = arith.constant 0.000000e+00 : f32
    %24 = vector.shape_cast %23 : vector<256x1xi1> to vector<256x1xi1>
    %25 = vector.broadcast %24 : vector<256x1xi1> to vector<256x64xi1>
    %26 = vector.broadcast %cst_17 : f32 to vector<256x64xf32>
    %27 = arith.select %25, %16, %26 : vector<256x64xi1>, vector<256x64xf32>
    %28 = arith.truncf %27 : vector<256x64xf32> to vector<256x64xbf16>
    %c0_18 = arith.constant 0 : index
    %c0_19 = arith.constant 0 : index
    %c0_20 = arith.constant 0 : index
    %c0_21 = arith.constant 0 : index
    %29 = vector.load %arg5[%c0_18, %c0_19, %c0_20, %c0_21] : memref<3x3x64x64xbf16, #tpu.memory_space<vmem>>, vector<1x1x64x64xbf16>
    %30 = vector.shape_cast %29 : vector<1x1x64x64xbf16> to vector<64x64xbf16>
    %cst_22 = arith.constant dense<0.000000e+00> : vector<256x64xf32>
    %31 = tpu.matmul %28, %30, %cst_22 {dimension_numbers = #tpu.dot_dimension_numbers<[1], [0], [0], [1], [0, 0, 1, 1], [], []>} : vector<256x64xbf16>, vector<64x64xbf16>, vector<256x64xf32> -> vector<256x64xf32>
    %32 = arith.addf %15, %31 : vector<256x64xf32>
    %c8 = arith.constant 8 : index
    %c0_23 = arith.constant 0 : index
    %33 = vector.load %arg10[%c8, %c0_23] : memref<304x64xf32, #tpu.memory_space<vmem>>, vector<256x64xf32>
    %34 = arith.truncf %33 : vector<256x64xf32> to vector<256x64xbf16>
    %c0_24 = arith.constant 0 : index
    %c1 = arith.constant 1 : index
    %c0_25 = arith.constant 0 : index
    %c0_26 = arith.constant 0 : index
    %35 = vector.load %arg5[%c0_24, %c1, %c0_25, %c0_26] : memref<3x3x64x64xbf16, #tpu.memory_space<vmem>>, vector<1x1x64x64xbf16>
    %36 = vector.shape_cast %35 : vector<1x1x64x64xbf16> to vector<64x64xbf16>
    %cst_27 = arith.constant dense<0.000000e+00> : vector<256x64xf32>
    %37 = tpu.matmul %34, %36, %cst_27 {dimension_numbers = #tpu.dot_dimension_numbers<[1], [0], [0], [1], [0, 0, 1, 1], [], []>} : vector<256x64xbf16>, vector<64x64xbf16>, vector<256x64xf32> -> vector<256x64xf32>
    %38 = arith.addf %32, %37 : vector<256x64xf32>
    %c9 = arith.constant 9 : index
    %c0_28 = arith.constant 0 : index
    %39 = vector.load %arg10[%c9, %c0_28] : memref<304x64xf32, #tpu.memory_space<vmem>>, vector<256x64xf32>
    %c1_i32 = arith.constant 1 : i32
    %40 = vector.broadcast %c1_i32 : i32 to vector<256x1xi32>
    %41 = arith.addi %14, %40 : vector<256x1xi32>
    %c0_i32_29 = arith.constant 0 : i32
    %42 = vector.broadcast %c0_i32_29 : i32 to vector<256x1xi32>
    %43 = arith.cmpi sge, %41, %42 : vector<256x1xi32>
    %c16_i32_30 = arith.constant 16 : i32
    %44 = vector.broadcast %c16_i32_30 : i32 to vector<256x1xi32>
    %45 = arith.cmpi slt, %41, %44 : vector<256x1xi32>
    %46 = arith.andi %43, %45 : vector<256x1xi1>
    %cst_31 = arith.constant 0.000000e+00 : f32
    %47 = vector.shape_cast %46 : vector<256x1xi1> to vector<256x1xi1>
    %48 = vector.broadcast %47 : vector<256x1xi1> to vector<256x64xi1>
    %49 = vector.broadcast %cst_31 : f32 to vector<256x64xf32>
    %50 = arith.select %48, %39, %49 : vector<256x64xi1>, vector<256x64xf32>
    %51 = arith.truncf %50 : vector<256x64xf32> to vector<256x64xbf16>
    %c0_32 = arith.constant 0 : index
    %c2 = arith.constant 2 : index
    %c0_33 = arith.constant 0 : index
    %c0_34 = arith.constant 0 : index
    %52 = vector.load %arg5[%c0_32, %c2, %c0_33, %c0_34] : memref<3x3x64x64xbf16, #tpu.memory_space<vmem>>, vector<1x1x64x64xbf16>
    %53 = vector.shape_cast %52 : vector<1x1x64x64xbf16> to vector<64x64xbf16>
    %cst_35 = arith.constant dense<0.000000e+00> : vector<256x64xf32>
    %54 = tpu.matmul %51, %53, %cst_35 {dimension_numbers = #tpu.dot_dimension_numbers<[1], [0], [0], [1], [0, 0, 1, 1], [], []>} : vector<256x64xbf16>, vector<64x64xbf16>, vector<256x64xf32> -> vector<256x64xf32>
    %55 = arith.addf %38, %54 : vector<256x64xf32>
    %c23 = arith.constant 23 : index
    %c0_36 = arith.constant 0 : index
    %56 = vector.load %arg10[%c23, %c0_36] : memref<304x64xf32, #tpu.memory_space<vmem>>, vector<256x64xf32>
    %c-1_i32_37 = arith.constant -1 : i32
    %57 = vector.broadcast %c-1_i32_37 : i32 to vector<256x1xi32>
    %58 = arith.addi %14, %57 : vector<256x1xi32>
    %c0_i32_38 = arith.constant 0 : i32
    %59 = vector.broadcast %c0_i32_38 : i32 to vector<256x1xi32>
    %60 = arith.cmpi sge, %58, %59 : vector<256x1xi32>
    %c16_i32_39 = arith.constant 16 : i32
    %61 = vector.broadcast %c16_i32_39 : i32 to vector<256x1xi32>
    %62 = arith.cmpi slt, %58, %61 : vector<256x1xi32>
    %63 = arith.andi %60, %62 : vector<256x1xi1>
    %cst_40 = arith.constant 0.000000e+00 : f32
    %64 = vector.shape_cast %63 : vector<256x1xi1> to vector<256x1xi1>
    %65 = vector.broadcast %64 : vector<256x1xi1> to vector<256x64xi1>
    %66 = vector.broadcast %cst_40 : f32 to vector<256x64xf32>
    %67 = arith.select %65, %56, %66 : vector<256x64xi1>, vector<256x64xf32>
    %68 = arith.truncf %67 : vector<256x64xf32> to vector<256x64xbf16>
    %c1_41 = arith.constant 1 : index
    %c0_42 = arith.constant 0 : index
    %c0_43 = arith.constant 0 : index
    %c0_44 = arith.constant 0 : index
    %69 = vector.load %arg5[%c1_41, %c0_42, %c0_43, %c0_44] : memref<3x3x64x64xbf16, #tpu.memory_space<vmem>>, vector<1x1x64x64xbf16>
    %70 = vector.shape_cast %69 : vector<1x1x64x64xbf16> to vector<64x64xbf16>
    %cst_45 = arith.constant dense<0.000000e+00> : vector<256x64xf32>
    %71 = tpu.matmul %68, %70, %cst_45 {dimension_numbers = #tpu.dot_dimension_numbers<[1], [0], [0], [1], [0, 0, 1, 1], [], []>} : vector<256x64xbf16>, vector<64x64xbf16>, vector<256x64xf32> -> vector<256x64xf32>
    %72 = arith.addf %55, %71 : vector<256x64xf32>
    %c24_46 = arith.constant 24 : index
    %c0_47 = arith.constant 0 : index
    %73 = vector.load %arg10[%c24_46, %c0_47] : memref<304x64xf32, #tpu.memory_space<vmem>>, vector<256x64xf32>
    %74 = arith.truncf %73 : vector<256x64xf32> to vector<256x64xbf16>
    %c1_48 = arith.constant 1 : index
    %c1_49 = arith.constant 1 : index
    %c0_50 = arith.constant 0 : index
    %c0_51 = arith.constant 0 : index
    %75 = vector.load %arg5[%c1_48, %c1_49, %c0_50, %c0_51] : memref<3x3x64x64xbf16, #tpu.memory_space<vmem>>, vector<1x1x64x64xbf16>
    %76 = vector.shape_cast %75 : vector<1x1x64x64xbf16> to vector<64x64xbf16>
    %cst_52 = arith.constant dense<0.000000e+00> : vector<256x64xf32>
    %77 = tpu.matmul %74, %76, %cst_52 {dimension_numbers = #tpu.dot_dimension_numbers<[1], [0], [0], [1], [0, 0, 1, 1], [], []>} : vector<256x64xbf16>, vector<64x64xbf16>, vector<256x64xf32> -> vector<256x64xf32>
    %78 = arith.addf %72, %77 : vector<256x64xf32>
    %c25 = arith.constant 25 : index
    %c0_53 = arith.constant 0 : index
    %79 = vector.load %arg10[%c25, %c0_53] : memref<304x64xf32, #tpu.memory_space<vmem>>, vector<256x64xf32>
    %c1_i32_54 = arith.constant 1 : i32
    %80 = vector.broadcast %c1_i32_54 : i32 to vector<256x1xi32>
    %81 = arith.addi %14, %80 : vector<256x1xi32>
    %c0_i32_55 = arith.constant 0 : i32
    %82 = vector.broadcast %c0_i32_55 : i32 to vector<256x1xi32>
    %83 = arith.cmpi sge, %81, %82 : vector<256x1xi32>
    %c16_i32_56 = arith.constant 16 : i32
    %84 = vector.broadcast %c16_i32_56 : i32 to vector<256x1xi32>
    %85 = arith.cmpi slt, %81, %84 : vector<256x1xi32>
    %86 = arith.andi %83, %85 : vector<256x1xi1>
    %cst_57 = arith.constant 0.000000e+00 : f32
    %87 = vector.shape_cast %86 : vector<256x1xi1> to vector<256x1xi1>
    %88 = vector.broadcast %87 : vector<256x1xi1> to vector<256x64xi1>
    %89 = vector.broadcast %cst_57 : f32 to vector<256x64xf32>
    %90 = arith.select %88, %79, %89 : vector<256x64xi1>, vector<256x64xf32>
    %91 = arith.truncf %90 : vector<256x64xf32> to vector<256x64xbf16>
    %c1_58 = arith.constant 1 : index
    %c2_59 = arith.constant 2 : index
    %c0_60 = arith.constant 0 : index
    %c0_61 = arith.constant 0 : index
    %92 = vector.load %arg5[%c1_58, %c2_59, %c0_60, %c0_61] : memref<3x3x64x64xbf16, #tpu.memory_space<vmem>>, vector<1x1x64x64xbf16>
    %93 = vector.shape_cast %92 : vector<1x1x64x64xbf16> to vector<64x64xbf16>
    %cst_62 = arith.constant dense<0.000000e+00> : vector<256x64xf32>
    %94 = tpu.matmul %91, %93, %cst_62 {dimension_numbers = #tpu.dot_dimension_numbers<[1], [0], [0], [1], [0, 0, 1, 1], [], []>} : vector<256x64xbf16>, vector<64x64xbf16>, vector<256x64xf32> -> vector<256x64xf32>
    %95 = arith.addf %78, %94 : vector<256x64xf32>
    %c39 = arith.constant 39 : index
    %c0_63 = arith.constant 0 : index
    %96 = vector.load %arg10[%c39, %c0_63] : memref<304x64xf32, #tpu.memory_space<vmem>>, vector<256x64xf32>
    %c-1_i32_64 = arith.constant -1 : i32
    %97 = vector.broadcast %c-1_i32_64 : i32 to vector<256x1xi32>
    %98 = arith.addi %14, %97 : vector<256x1xi32>
    %c0_i32_65 = arith.constant 0 : i32
    %99 = vector.broadcast %c0_i32_65 : i32 to vector<256x1xi32>
    %100 = arith.cmpi sge, %98, %99 : vector<256x1xi32>
    %c16_i32_66 = arith.constant 16 : i32
    %101 = vector.broadcast %c16_i32_66 : i32 to vector<256x1xi32>
    %102 = arith.cmpi slt, %98, %101 : vector<256x1xi32>
    %103 = arith.andi %100, %102 : vector<256x1xi1>
    %cst_67 = arith.constant 0.000000e+00 : f32
    %104 = vector.shape_cast %103 : vector<256x1xi1> to vector<256x1xi1>
    %105 = vector.broadcast %104 : vector<256x1xi1> to vector<256x64xi1>
    %106 = vector.broadcast %cst_67 : f32 to vector<256x64xf32>
    %107 = arith.select %105, %96, %106 : vector<256x64xi1>, vector<256x64xf32>
    %108 = arith.truncf %107 : vector<256x64xf32> to vector<256x64xbf16>
    %c2_68 = arith.constant 2 : index
    %c0_69 = arith.constant 0 : index
    %c0_70 = arith.constant 0 : index
    %c0_71 = arith.constant 0 : index
    %109 = vector.load %arg5[%c2_68, %c0_69, %c0_70, %c0_71] : memref<3x3x64x64xbf16, #tpu.memory_space<vmem>>, vector<1x1x64x64xbf16>
    %110 = vector.shape_cast %109 : vector<1x1x64x64xbf16> to vector<64x64xbf16>
    %cst_72 = arith.constant dense<0.000000e+00> : vector<256x64xf32>
    %111 = tpu.matmul %108, %110, %cst_72 {dimension_numbers = #tpu.dot_dimension_numbers<[1], [0], [0], [1], [0, 0, 1, 1], [], []>} : vector<256x64xbf16>, vector<64x64xbf16>, vector<256x64xf32> -> vector<256x64xf32>
    %112 = arith.addf %95, %111 : vector<256x64xf32>
    %c40 = arith.constant 40 : index
    %c0_73 = arith.constant 0 : index
    %113 = vector.load %arg10[%c40, %c0_73] : memref<304x64xf32, #tpu.memory_space<vmem>>, vector<256x64xf32>
    %114 = arith.truncf %113 : vector<256x64xf32> to vector<256x64xbf16>
    %c2_74 = arith.constant 2 : index
    %c1_75 = arith.constant 1 : index
    %c0_76 = arith.constant 0 : index
    %c0_77 = arith.constant 0 : index
    %115 = vector.load %arg5[%c2_74, %c1_75, %c0_76, %c0_77] : memref<3x3x64x64xbf16, #tpu.memory_space<vmem>>, vector<1x1x64x64xbf16>
    %116 = vector.shape_cast %115 : vector<1x1x64x64xbf16> to vector<64x64xbf16>
    %cst_78 = arith.constant dense<0.000000e+00> : vector<256x64xf32>
    %117 = tpu.matmul %114, %116, %cst_78 {dimension_numbers = #tpu.dot_dimension_numbers<[1], [0], [0], [1], [0, 0, 1, 1], [], []>} : vector<256x64xbf16>, vector<64x64xbf16>, vector<256x64xf32> -> vector<256x64xf32>
    %118 = arith.addf %112, %117 : vector<256x64xf32>
    %c41 = arith.constant 41 : index
    %c0_79 = arith.constant 0 : index
    %119 = vector.load %arg10[%c41, %c0_79] : memref<304x64xf32, #tpu.memory_space<vmem>>, vector<256x64xf32>
    %c1_i32_80 = arith.constant 1 : i32
    %120 = vector.broadcast %c1_i32_80 : i32 to vector<256x1xi32>
    %121 = arith.addi %14, %120 : vector<256x1xi32>
    %c0_i32_81 = arith.constant 0 : i32
    %122 = vector.broadcast %c0_i32_81 : i32 to vector<256x1xi32>
    %123 = arith.cmpi sge, %121, %122 : vector<256x1xi32>
    %c16_i32_82 = arith.constant 16 : i32
    %124 = vector.broadcast %c16_i32_82 : i32 to vector<256x1xi32>
    %125 = arith.cmpi slt, %121, %124 : vector<256x1xi32>
    %126 = arith.andi %123, %125 : vector<256x1xi1>
    %cst_83 = arith.constant 0.000000e+00 : f32
    %127 = vector.shape_cast %126 : vector<256x1xi1> to vector<256x1xi1>
    %128 = vector.broadcast %127 : vector<256x1xi1> to vector<256x64xi1>
    %129 = vector.broadcast %cst_83 : f32 to vector<256x64xf32>
    %130 = arith.select %128, %119, %129 : vector<256x64xi1>, vector<256x64xf32>
    %131 = arith.truncf %130 : vector<256x64xf32> to vector<256x64xbf16>
    %c2_84 = arith.constant 2 : index
    %c2_85 = arith.constant 2 : index
    %c0_86 = arith.constant 0 : index
    %c0_87 = arith.constant 0 : index
    %132 = vector.load %arg5[%c2_84, %c2_85, %c0_86, %c0_87] : memref<3x3x64x64xbf16, #tpu.memory_space<vmem>>, vector<1x1x64x64xbf16>
    %133 = vector.shape_cast %132 : vector<1x1x64x64xbf16> to vector<64x64xbf16>
    %cst_88 = arith.constant dense<0.000000e+00> : vector<256x64xf32>
    %134 = tpu.matmul %131, %133, %cst_88 {dimension_numbers = #tpu.dot_dimension_numbers<[1], [0], [0], [1], [0, 0, 1, 1], [], []>} : vector<256x64xbf16>, vector<64x64xbf16>, vector<256x64xf32> -> vector<256x64xf32>
    %135 = arith.addf %118, %134 : vector<256x64xf32>
    %c0_89 = arith.constant 0 : index
    %c0_90 = arith.constant 0 : index
    %136 = vector.load %arg6[%c0_89, %c0_90] : memref<1x64xf32, #tpu.memory_space<vmem>>, vector<1x64xf32>
    %137 = vector.broadcast %136 : vector<1x64xf32> to vector<256x64xf32>
    %138 = arith.addf %135, %137 : vector<256x64xf32>
    %cst_91 = arith.constant 0.000000e+00 : f32
    %139 = vector.broadcast %cst_91 : f32 to vector<256x64xf32>
    %140 = arith.maximumf %138, %139 : vector<256x64xf32>
    %141 = arith.truncf %140 : vector<256x64xf32> to vector<256x64xbf16>
    %c0_92 = arith.constant 0 : index
    %c0_93 = arith.constant 0 : index
    %142 = vector.load %arg7[%c0_92, %c0_93] : memref<64x256xbf16, #tpu.memory_space<vmem>>, vector<64x256xbf16>
    %cst_94 = arith.constant dense<0.000000e+00> : vector<256x256xf32>
    %143 = tpu.matmul %141, %142, %cst_94 {dimension_numbers = #tpu.dot_dimension_numbers<[1], [0], [0], [1], [0, 0, 1, 1], [], []>} : vector<256x64xbf16>, vector<64x256xbf16>, vector<256x256xf32> -> vector<256x256xf32>
    %c0_95 = arith.constant 0 : index
    %c0_96 = arith.constant 0 : index
    %144 = vector.load %arg8[%c0_95, %c0_96] : memref<1x256xf32, #tpu.memory_space<vmem>>, vector<1x256xf32>
    %145 = vector.broadcast %144 : vector<1x256xf32> to vector<256x256xf32>
    %146 = arith.addf %143, %145 : vector<256x256xf32>
    %147 = arith.extf %1 : vector<256x256xbf16> to vector<256x256xf32>
    %148 = arith.addf %146, %147 : vector<256x256xf32>
    %cst_97 = arith.constant 0.000000e+00 : f32
    %149 = vector.broadcast %cst_97 : f32 to vector<256x256xf32>
    %150 = arith.maximumf %148, %149 : vector<256x256xf32>
    %c0_98 = arith.constant 0 : index
    %c0_99 = arith.constant 0 : index
    %c0_100 = arith.constant 0 : index
    %151 = vector.load %arg9[%c0_98, %c0_99, %c0_100] : memref<1x256x256xf32, #tpu.memory_space<vmem>>, vector<1x256x256xf32>
    %152 = vector.shape_cast %151 : vector<1x256x256xf32> to vector<256x256xf32>
    %153 = vector.shape_cast %150 : vector<256x256xf32> to vector<1x256x256xf32>
    tpu.vector_store %arg9[%c0_98, %c0_99, %c0_100], %153 {strides = array<i32>} : memref<1x256x256xf32, #tpu.memory_space<vmem>>, vector<1x256x256xf32>,
    return
  }
  func.func @transform_0(%arg0: i32) -> (i32, i32, i32) {
    %c0_i32 = arith.constant 0 : i32
    %c0_i32_0 = arith.constant 0 : i32
    %c0_i32_1 = arith.constant 0 : i32
    return %arg0, %c0_i32, %c0_i32_0 : i32, i32, i32
  }
  func.func @transform_1(%arg0: i32) -> (i32, i32) {
    %c0_i32 = arith.constant 0 : i32
    %c0_i32_0 = arith.constant 0 : i32
    %c0_i32_1 = arith.constant 0 : i32
    return %c0_i32, %c0_i32_0 : i32, i32
  }
  func.func @transform_2(%arg0: i32) -> (i32, i32) {
    %c0_i32 = arith.constant 0 : i32
    %c0_i32_0 = arith.constant 0 : i32
    %c0_i32_1 = arith.constant 0 : i32
    return %c0_i32, %c0_i32_0 : i32, i32
  }
  func.func @transform_3(%arg0: i32) -> (i32, i32) {
    %c0_i32 = arith.constant 0 : i32
    %c0_i32_0 = arith.constant 0 : i32
    %c0_i32_1 = arith.constant 0 : i32
    return %c0_i32, %c0_i32_0 : i32, i32
  }
  func.func @transform_4(%arg0: i32) -> (i32, i32, i32, i32) {
    %c0_i32 = arith.constant 0 : i32
    %c0_i32_0 = arith.constant 0 : i32
    %c0_i32_1 = arith.constant 0 : i32
    %c0_i32_2 = arith.constant 0 : i32
    %c0_i32_3 = arith.constant 0 : i32
    return %c0_i32, %c0_i32_0, %c0_i32_1, %c0_i32_2 : i32, i32, i32, i32
  }
  func.func @transform_5(%arg0: i32) -> (i32, i32) {
    %c0_i32 = arith.constant 0 : i32
    %c0_i32_0 = arith.constant 0 : i32
    %c0_i32_1 = arith.constant 0 : i32
    return %c0_i32, %c0_i32_0 : i32, i32
  }
  func.func @transform_6(%arg0: i32) -> (i32, i32) {
    %c0_i32 = arith.constant 0 : i32
    %c0_i32_0 = arith.constant 0 : i32
    %c0_i32_1 = arith.constant 0 : i32
    return %c0_i32, %c0_i32_0 : i32, i32
  }
  func.func @transform_7(%arg0: i32) -> (i32, i32) {
    %c0_i32 = arith.constant 0 : i32
    %c0_i32_0 = arith.constant 0 : i32
    %c0_i32_1 = arith.constant 0 : i32
    return %c0_i32, %c0_i32_0 : i32, i32
  }
  func.func @transform_8(%arg0: i32) -> (i32, i32, i32) {
    %c0_i32 = arith.constant 0 : i32
    %c0_i32_0 = arith.constant 0 : i32
    %c0_i32_1 = arith.constant 0 : i32
    return %arg0, %c0_i32, %c0_i32_0 : i32, i32, i32
  }
}

</mosaic_0001>

<bundles_post_ra>
// kernel: bottleneck_forward.1
= control target key start
LH: loop header
LB: loop body
LE: loop exit
PB: predicated region body
PF: predicated region fallthrough
CT: control target
= control target key end

     0   :  { %13 = vsyncpa [#allocation4], 0  ;;  %s9869_s0 = inlined_call_operand.vmem [shape: bf16[2,256,256], index: 0, kind: input, shape index: {}]   ;;  %s9870_s1 = inlined_call_operand.vmem [shape: s32[256,1], index: 1, kind: input, shape index: {}]   ;;  %s9871_s2 = inlined_call_operand.vmem [shape: bf16[256,64], index: 2, kind: input, shape index: {}]   ;;  %s9872_s3 = inlined_call_operand.vmem [shape: f32[1,64], index: 3, kind: input, shape index: {}]   ;;  %s9873_s4 = inlined_call_operand.vmem [shape: bf16[3,3,64,64], index: 4, kind: input, shape index: {}]   ;;  %s9874_s5 = inlined_call_operand.vmem [shape: f32[1,64], index: 5, kind: input, shape index: {}]   ;;  %s9875_s6 = inlined_call_operand.vmem [shape: bf16[64,256], index: 6, kind: input, shape index: {}]   ;;  %s9876_s7 = inlined_call_operand.vmem [shape: f32[1,256], index: 7, kind: input, shape index: {}]   ;;  %s9877_s8 = inlined_call_operand.hbm [shape: f32[2,256,256], index: 8, kind: output, shape index: {}]  }
   0x1   :  { %15 = vsyncpa [#allocation4 + $0x1], 0  ;;  %s6500_s27 = smov 0   ;;  %s6502_s28 = smov 0  }
   0x2   :  { %s6504_s29 = smov 0   ;;  %s6506_s30 = smov 0  }
   0x3 LB: > { %s6521_s9 = sadd.s32 4294967295, %s6448_s30   ;;  %s5217_s10 = sadd.s32 4294967294, %s6448_s30   ;;  %s6448_s30 = sphi %s6506_s30, %s10422_s30   ;;  %s6444_s29 = sphi %s6504_s29, %s10421_s29   ;;  %s6440_s28 = sphi %s6502_s28, %s10420_s28   ;;  %s6436_s27 = sphi %s6500_s27, %s10419_s27  }
   0x4   : > { %s6525_s11 = sadd.s32 1, %s6448_s30   ;;  %s201_s12 = sadd.s32 1, %s6444_s29 }
   0x5   : > { %s198_s13 = ssub.s32 %s6448_s30, %s6525_s11  ;;  %p211_p0 = scmp.ne.s32.totalorder %s6444_s29, %s6440_s28 }
   0x6   : > { %p199_p1 = scmp.eq.s32.totalorder %s198_s13, 0  ;;  %p212_p2 = scmp.eq.s32.totalorder %s6521_s9, 1 }
   0x7   : > { %p217_p3 = scmp.ne.s32.totalorder %s6440_s28, %s6436_s27  ;;  %p218_p4 = scmp.eq.s32.totalorder %s5217_s10, 1 }
   0x8   : > { %s6536_s14 = scalar_select %p199_p1, %s6444_s29, %s201_s12  }
   0x9   : > { %p6538_p5 = por %p212_p2, %p211_p0  ;;  %p6542_p6 = por %p218_p4, %p217_p3 }
   0xa   : > { %p5220_p7 = scmp.ge.s32.totalorder %s6448_s30, 1  ;;  %p265_p8 = scmp.lt.s32.totalorder %s6448_s30, 3 }
   0xc   : > { %p266_p9 = pnand %p5220_p7, %p265_p8 }
   0xe   : > { %269 = sbr.rel (%p266_p9) target bundleno = 1229 (0x4cd), region = 52 }
  0x13   : > { %v6254_v0 = vld [vmem:[%s9871_s2 + $0x78] sm:$0xff]   ;;  %v6256_v2 = vld [vmem:[%s9871_s2 + $0x70] sm:$0xff]   ;;  %p299_p10 = scmp.lt.s32.totalorder %s6521_s9, 1  ;;  %v9878_v3 = vmov 0   ;;  %v6258_v5 = vld [vmem:[%s9871_s2 + $0x68] sm:$0xff]   ;;  %s296_s18 = sand.u32 1, %s6440_s28  }
  0x14   : > { %v6255_v1 = vld [vmem:[%s9871_s2 + $0x38] sm:$0xff]   ;;  %5549 = vmatprep.subr.bf16.mxu0 %v6254_v0  ;;  %6253 = vset.pattern.permute.xlu1 %v9878_v3  ;;  %v6257_v4 = vld [vmem:[%s9871_s2 + $0x30] sm:$0xff]   ;;  %v6259_v6 = vld [vmem:[%s9871_s2 + $0x28] sm:$0xff]   ;;  %s5548_s21 = sshll.u32 %s6521_s9, 13  ;;  %s9829_s25 = scalar_lea.sflag [#allocation4], %s296_s18 }
  0x15   : > { %5550 = vmatpush3.bf16.msra.mxu0 %v6255_v1  ;;  %6252 = vset.pattern.permute.xlu0 %v9878_v3  ;;  %s300_s10 = scalar_select %p299_p10, %s6521_s9, 1  ;;  %v6260_v7 = vld [vmem:[%s9871_s2 + $0x60] sm:$0xff]   ;;  %v6262_v9 = vld [vmem:[%s9871_s2 + $0x58] sm:$0xff]   ;;  %v6264_v11 = vld [vmem:[%s9871_s2 + $0x50] sm:$0xff]  }
  0x16   : > { %5551 = vmatprep.subr.bf16.mxu0 %v6256_v2  ;;  %v6261_v8 = vld [vmem:[%s9871_s2 + $0x20] sm:$0xff]   ;;  %v6263_v10 = vld [vmem:[%s9871_s2 + $0x18] sm:$0xff]   ;;  %v6601_v15 = vld [vmem:[%s9870_s1 + $0x10] sm:$0xff]  ;;  %s9821_s24 = scalar_lea.hbm %s9877_s8, %s5548_s21  ;;  %s6452_s12 = smov [#allocation3]  }
  0x17   : > { %s5547_s19 = sshll.u32 %s300_s10, 8  ;;  %v6606_v16 = vld [vmem:[%s9870_s1] sm:$0xff]  ;;  %v6265_v17 = vld [vmem:[%s9871_s2 + $0x10] sm:$0xff]   ;;  %v930_v18 = vadd.s32 4294967295, %v6601_v15  ;;  %v6616_v20 = vld [vmem:[%s9870_s1 + $0x18] sm:$0xff]  ;;  %s6392_s10 = sshll.u32 %s6452_s12, 4  ;;  %s6393_s10 = int_to_ptr.vmem [resolvable:$false] %s6392_s10 }
  0x18   : > { %s6582_s26 = scalar_lea.vmem %s9869_s0, %s5547_s19  ;;  %v928_v19 = vadd.s32 4294967295, %v6606_v16  ;;  %v6621_v21 = vld [vmem:[%s9870_s1 + $0x8] sm:$0xff]  ;;  %v931_v23 = vadd.s32 4294967295, %v6616_v20  ;;  %v6636_v26 = vld [vmem:[%s9870_s1 + $0x20] sm:$0xff]  ;;  %v6641_v27 = vld [vmem:[%s9870_s1 + $0x38] sm:$0xff]  ;;  %s5221_s19 = sshll.u32 %s296_s18, 9 }
  0x19   : > { %5552 = vmatpush3.bf16.msra.mxu0 %v6257_v4  ;;  %v6591_v12 = vld [vmem:[%s6582_s26] sm:$0xff]  ;;  %v6594_v13 = vld [vmem:[%s6582_s26 + $0x8] sm:$0xff]  ;;  %v929_v24 = vadd.s32 4294967295, %v6621_v21  ;;  %vm962_vm0 = vcmp.ge.s32.totalorder %v930_v18, 0  ;;  %vm994_vm1 = vcmp.lt.s32.totalorder %v930_v18, 16  ;;  %v6646_v28 = vld [vmem:[%s9870_s1 + $0x30] sm:$0xff] }
  0x1a   : > { %5553 = vmatprep.subr.bf16.mxu0 %v6258_v5  ;;  %v5226_v14 = vcombine.high %v6591_v12, %v6594_v13  ;;  %v6266_v22 = vld [vmem:[%s9871_s2 + $0x48] sm:$0xff]   ;;  %vm960_vm2 = vcmp.ge.s32.totalorder %v928_v19, 0  ;;  %vm992_vm3 = vcmp.lt.s32.totalorder %v928_v19, 16  ;;  %vm1026_vm4 = vmand %vm962_vm0, %vm994_vm1  ;;  %vm963_vm5 = vcmp.ge.s32.totalorder %v931_v23, 0  ;;  %v6268_v33 = vld [vmem:[%s9871_s2 + $0x40] sm:$0xff]   ;;  %s9661_s20 = scalar_lea.vmem [#allocation3], %s5221_s19 }
  0x1b   : > { %v6631_v25 = vld [vmem:[%s9870_s1 + $0x28] sm:$0xff]  ;;  %vm995_vm6 = vcmp.lt.s32.totalorder %v931_v23, 16  ;;  %vm961_vm7 = vcmp.ge.s32.totalorder %v929_v24, 0  ;;  %vm993_vm8 = vcmp.lt.s32.totalorder %v929_v24, 16  ;;  %v1058_v30 = vsel %vm1026_vm4, 1, %v9878_v3  ;;  %vm1024_vm9 = vmand %vm960_vm2, %vm992_vm3  ;;  %v6672_v39 = vld [vmem:[%s9870_s1 + $0x40] sm:$0xff] }
  0x1c   : > { %664 = vmatprep.mubr.bf16.mxu0 %v5226_v14  ;;  %v6267_v29 = vld [vmem:[%s9871_s2 + $0x8] sm:$0xff]   ;;  %v933_v31 = vadd.s32 4294967295, %v6631_v25  ;;  %v932_v32 = vadd.s32 4294967295, %v6636_v26  ;;  %1095 = vperm.xlu1 %6253, %v1058_v30   ;;  %v1056_v34 = vsel %vm1024_vm9, 1, %v9878_v3  ;;  %vm1027_vm10 = vmand %vm963_vm5, %vm995_vm6  ;;  %v935_v35 = vadd.s32 4294967295, %v6641_v27  ;;  %v6269_v42 = vld [vmem:[%s9871_s2] sm:$0xff]  }
  0x1d   : > { %5554 = vmatpush3.bf16.msra.mxu0 %v6259_v6  ;;  %v934_v36 = vadd.s32 4294967295, %v6646_v28  ;;  %v6664_v37 = vld [vmem:[%s9870_s1 + $0x48] sm:$0xff]  ;;  %1089 = vperm.xlu0 %6252, %v1056_v34   ;;  %v1059_v38 = vsel %vm1027_vm10, 1, %v9878_v3  ;;  %vm1025_vm11 = vmand %vm961_vm7, %vm993_vm8  ;;  %v307_v45 = vld [vmem:[%s6582_s26 + $0x10] sm:$0xff]  ;;  %v936_v47 = vadd.s32 4294967295, %v6672_v39  ;;  %v5225_v51 = vcombine.low %v6591_v12, %v6594_v13  ;;  %s6394_s13 = scalar_lea.vmem %s6393_s10, 16384 }
  0x1e   : > { %5555 = vmatprep.subr.bf16.mxu0 %v6260_v7  ;;  %vm965_vm12 = vcmp.ge.s32.totalorder %v933_v31, 0  ;;  %vm997_vm13 = vcmp.lt.s32.totalorder %v933_v31, 16  ;;  %vm964_vm14 = vcmp.ge.s32.totalorder %v932_v32, 0  ;;  %v1057_v40 = vsel %vm1025_vm11, 1, %v9878_v3  ;;  %v308_v46 = vld [vmem:[%s6582_s26 + $0x18] sm:$0xff]  ;;  %v6701_v50 = vld [vmem:[%s9870_s1 + $0x50] sm:$0xff] }
  0x1f   : > { %vm6675_vm15 = vmand %vm965_vm12, %vm997_vm13  ;;  %vm996_vm0 = vcmp.lt.s32.totalorder %v932_v32, 16  ;;  %vm967_vm2 = vcmp.ge.s32.totalorder %v935_v35, 0  ;;  %vm999_vm3 = vcmp.lt.s32.totalorder %v935_v35, 16  ;;  %v937_v44 = vadd.s32 4294967295, %v6664_v37  ;;  %v6693_v48 = vld [vmem:[%s9870_s1 + $0x58] sm:$0xff]  ;;  %v6715_v56 = vld [vmem:[%s9870_s1 + $0x68] sm:$0xff] }
  0x20   : > { %vm6682_vm1 = vmand %vm964_vm14, %vm996_vm0  ;;  %1098 = vperm.xlu1 %6253, %v1059_v38   ;;  %vm966_vm4 = vcmp.ge.s32.totalorder %v934_v36, 0  ;;  %vm998_vm5 = vcmp.lt.s32.totalorder %v934_v36, 16  ;;  %v1061_v49 = vsel %vm6675_vm15, 1, %v9878_v3  ;;  %v5228_v53 = vcombine.high %v307_v45, %v308_v46  ;;  %v6721_v58 = vld [vmem:[%s9870_s1 + $0x60] sm:$0xff]  ;;  %v310_v62 = vld [vmem:[%s6582_s26 + $0x28] sm:$0xff] }
  0x21   : > { %5556 = vmatpush3.bf16.msra.mxu0 %v6261_v8  ;;  %1092 = vperm.xlu0 %6252, %v1057_v40   ;;  %v1060_v52 = vsel %vm6682_vm1, 1, %v9878_v3  ;;  %vm1031_vm6 = vmand %vm967_vm2, %vm999_vm3  ;;  %vm969_vm8 = vcmp.ge.s32.totalorder %v937_v44, 0  ;;  %vm1001_vm9 = vcmp.lt.s32.totalorder %v937_v44, 16  ;;  %v939_v54 = vadd.s32 4294967295, %v6693_v48  ;;  %v309_v61 = vld [vmem:[%s6582_s26 + $0x20] sm:$0xff]  ;;  %v6731_v0 = vld [vmem:[%s9870_s1 + $0x78] sm:$0xff] }
  0x22   : > { %5557 = vmatprep.subr.bf16.mxu0 %v6262_v9  ;;  %vm1030_vm7 = vmand %vm966_vm4, %vm998_vm5  ;;  %vm968_vm10 = vcmp.ge.s32.totalorder %v936_v47, 0  ;;  %vm1000_vm11 = vcmp.lt.s32.totalorder %v936_v47, 16  ;;  %v938_v55 = vadd.s32 4294967295, %v6701_v50  ;;  %v1063_v57 = vsel %vm1031_vm6, 1, %v9878_v3  ;;  %v6737_v2 = vld [vmem:[%s9870_s1 + $0x70] sm:$0xff]  ;;  %v6746_v9 = vld [vmem:[%s9870_s1 + $0x88] sm:$0xff] }
  0x23   : > { %v1062_v59 = vsel %vm1030_vm7, 1, %v9878_v3  ;;  %vm1033_vm12 = vmand %vm969_vm8, %vm1001_vm9  ;;  %vm971_vm14 = vcmp.ge.s32.totalorder %v939_v54, 0  ;;  %vm1003_vm15 = vcmp.lt.s32.totalorder %v939_v54, 16  ;;  %v941_v60 = vadd.s32 4294967295, %v6715_v56  ;;  %v311_v14 = vld [vmem:[%s6582_s26 + $0x30] sm:$0xff]  ;;  %v6762_v19 = vld [vmem:[%s9870_s1 + $0x98] sm:$0xff] }
  0x24   : > { %1104 = vperm.xlu1 %6253, %v1061_v49   ;;  %vm1032_vm13 = vmand %vm968_vm10, %vm1000_vm11  ;;  %vm970_vm0 = vcmp.ge.s32.totalorder %v938_v55, 0  ;;  %vm1002_vm1 = vcmp.lt.s32.totalorder %v938_v55, 16  ;;  %v940_v63 = vadd.s32 4294967295, %v6721_v58  ;;  %v1065_v1 = vsel %vm1033_vm12, 1, %v9878_v3  ;;  %v6768_v23 = vld [vmem:[%s9870_s1 + $0x90] sm:$0xff]  ;;  %v6783_v35 = vld [vmem:[%s9870_s1 + $0xa0] sm:$0xff] }
  0x25   : > { %5558 = vmatpush3.bf16.msra.mxu0 %v6263_v10  ;;  %1101 = vperm.xlu0 %6252, %v1060_v52   ;;  %v5227_v4 = vcombine.low %v307_v45, %v308_v46  ;;  %v1064_v5 = vsel %vm1032_vm13, 1, %v9878_v3  ;;  %vm1035_vm2 = vmand %vm971_vm14, %vm1003_vm15  ;;  %v5230_v6 = vcombine.high %v309_v61, %v310_v62  ;;  %vm973_vm4 = vcmp.ge.s32.totalorder %v941_v60, 0  ;;  %v6786_v36 = vld [vmem:[%s6582_s26 + $0x40] sm:$0xff]  ;;  %v6789_v38 = vld [vmem:[%s6582_s26 + $0x48] sm:$0xff] }
  0x26   : > { %5559 = vmatprep.subr.bf16.mxu0 %v6264_v11  ;;  %vm1034_vm3 = vmand %vm970_vm0, %vm1002_vm1  ;;  %vm1005_vm5 = vcmp.lt.s32.totalorder %v941_v60, 16  ;;  %v943_v7 = vadd.s32 4294967295, %v6731_v0  ;;  %vm972_vm6 = vcmp.ge.s32.totalorder %v940_v63, 0  ;;  %vm1004_vm7 = vcmp.lt.s32.totalorder %v940_v63, 16  ;;  %v6752_v11 = vld [vmem:[%s9870_s1 + $0x80] sm:$0xff]  ;;  %v6798_v43 = vld [vmem:[%s9870_s1 + $0xb8] sm:$0xff] }
  0x27   : > { %v942_v8 = vadd.s32 4294967295, %v6737_v2  ;;  %v1067_v10 = vsel %vm1035_vm2, 1, %v9878_v3  ;;  %v1066_v12 = vsel %vm1034_vm3, 1, %v9878_v3  ;;  %vm1037_vm8 = vmand %vm973_vm4, %vm1005_vm5  ;;  %v945_v13 = vadd.s32 4294967295, %v6746_v9  ;;  %v6804_v45 = vld [vmem:[%s9870_s1 + $0xb0] sm:$0xff]  ;;  %v6820_v55 = vld [vmem:[%s9870_s1 + $0xc0] sm:$0xff] }
  0x28   : > { %1110 = vperm.xlu1 %6253, %v1063_v57   ;;  %vm1036_vm9 = vmand %vm972_vm6, %vm1004_vm7  ;;  %vm975_vm10 = vcmp.ge.s32.totalorder %v943_v7, 0  ;;  %vm1007_vm11 = vcmp.lt.s32.totalorder %v943_v7, 16  ;;  %v944_v18 = vadd.s32 4294967295, %v6752_v11  ;;  %v5229_v24 = vcombine.low %v309_v61, %v310_v62  ;;  %v6823_v57 = vld [vmem:[%s6582_s26 + $0x50] sm:$0xff]  ;;  %v6835_v63 = vld [vmem:[%s9870_s1 + $0xd8] sm:$0xff] }
  0x29   : > { %5560 = vmatpush3.bf16.msra.mxu0 %v6265_v17  ;;  %1107 = vperm.xlu0 %6252, %v1062_v59   ;;  %v312_v17 = vld [vmem:[%s6582_s26 + $0x38] sm:$0xff]  ;;  %vm974_vm12 = vcmp.ge.s32.totalorder %v942_v8, 0  ;;  %vm1006_vm13 = vcmp.lt.s32.totalorder %v942_v8, 16  ;;  %vm1039_vm14 = vmand %vm975_vm10, %vm1007_vm11  ;;  %vm977_vm0 = vcmp.ge.s32.totalorder %v945_v13, 0  ;;  %vm1009_vm1 = vcmp.lt.s32.totalorder %v945_v13, 16  ;;  %v6849_v7 = vld [vmem:[%s9870_s1 + $0xe8] sm:$0xff] }
  0x2a   : > { %5561 = vmatprep.subr.bf16.mxu0 %v6266_v22  ;;  %v1069_v22 = vsel %vm1037_vm8, 1, %v9878_v3  ;;  %v5232_v30 = vcombine.high %v311_v14, %v312_v17  ;;  %vm1038_vm15 = vmand %vm974_vm12, %vm1006_vm13  ;;  %v947_v31 = vadd.s32 4294967295, %v6762_v19  ;;  %vm976_vm2 = vcmp.ge.s32.totalorder %v944_v18, 0  ;;  %v6826_v59 = vld [vmem:[%s6582_s26 + $0x58] sm:$0xff]  ;;  %v6854_v8 = vld [vmem:[%s9870_s1 + $0xe0] sm:$0xff] }
  0x2b   : > { %vm1008_vm3 = vcmp.lt.s32.totalorder %v944_v18, 16  ;;  %v946_v32 = vadd.s32 4294967295, %v6768_v23  ;;  %v1071_v34 = vsel %vm1039_vm14, 1, %v9878_v3  ;;  %v1070_v40 = vsel %vm1038_vm15, 1, %v9878_v3  ;;  %vm1041_vm4 = vmand %vm977_vm0, %vm1009_vm1 }
  0x2c   : > { %1116 = vperm.xlu1 %6253, %v1065_v1   ;;  %vm1040_vm5 = vmand %vm976_vm2, %vm1008_vm3  ;;  %vm979_vm6 = vcmp.ge.s32.totalorder %v947_v31, 0  ;;  %vm1011_vm7 = vcmp.lt.s32.totalorder %v947_v31, 16  ;;  %v1073_v44 = vsel %vm1041_vm4, 1, %v9878_v3  ;;  %v5231_v46 = vcombine.low %v311_v14, %v312_v17  ;;  %v6861_v14 = vld [vmem:[%s6582_s26 + $0x60] sm:$0xff]  ;;  %v6864_v17 = vld [vmem:[%s6582_s26 + $0x68] sm:$0xff] }
  0x2d   : > { %5562 = vmatpush3.bf16.msra.mxu0 %v6267_v29  ;;  %1113 = vperm.xlu0 %6252, %v1064_v5   ;;  %v1068_v29 = vsel %vm1036_vm9, 1, %v9878_v3  ;;  %vm978_vm8 = vcmp.ge.s32.totalorder %v946_v32, 0  ;;  %vm1010_vm9 = vcmp.lt.s32.totalorder %v946_v32, 16  ;;  %v1072_v47 = vsel %vm1040_vm5, 1, %v9878_v3  ;;  %vm1043_vm10 = vmand %vm979_vm6, %vm1011_vm7  ;;  %v6878_v31 = vld [vmem:[%s9870_s1 + $0xf0] sm:$0xff] }
  0x2e   : > { %5563 = vmatprep.subr.bf16.mxu0 %v6268_v33  ;;  %v6777_v33 = vld [vmem:[%s9870_s1 + $0xa8] sm:$0xff]  ;;  %v5234_v49 = vcombine.high %v6786_v36, %v6789_v38  ;;  %vm1042_vm11 = vmand %vm978_vm8, %vm1010_vm9  ;;  %v950_v52 = vadd.s32 4294967295, %v6804_v45  ;;  %v1075_v54 = vsel %vm1043_vm10, 1, %v9878_v3  ;;  %v952_v62 = vadd.s32 4294967295, %v6820_v55 }
  0x2f   : > { %v949_v41 = vadd.s32 4294967295, %v6777_v33  ;;  %v1074_v60 = vsel %vm1042_vm11, 1, %v9878_v3  ;;  %v5233_v5 = vcombine.low %v6786_v36, %v6789_v38  ;;  %v5238_v36 = vcombine.high %v6861_v14, %v6864_v17 }
  0x30   : > { %1122 = vperm.xlu1 %6253, %v1067_v10   ;;  %vm982_vm4 = vcmp.ge.s32.totalorder %v950_v52, 0  ;;  %vm1014_vm5 = vcmp.lt.s32.totalorder %v950_v52, 16  ;;  %v5236_v10 = vcombine.high %v6823_v57, %v6826_v59  ;;  %vm984_vm10 = vcmp.ge.s32.totalorder %v952_v62, 0  ;;  %v6912_v52 = vld [vmem:[%s6582_s26 + $0x70] sm:$0xff] }
  0x31   : > { %5564 = vmatpush3.bf16.msra.mxu0 %v6269_v42  ;;  %1119 = vperm.xlu0 %6252, %v1066_v12   ;;  %v948_v42 = vadd.s32 4294967295, %v6783_v35  ;;  %vm981_vm12 = vcmp.ge.s32.totalorder %v949_v41, 0  ;;  %vm1013_vm13 = vcmp.lt.s32.totalorder %v949_v41, 16  ;;  %vm1046_vm7 = vmand %vm982_vm4, %vm1014_vm5  ;;  %v955_v12 = vadd.s32 4294967295, %v6835_v63 }
  0x32   : > { %vm1045_vm0 = vmand %vm981_vm12, %vm1013_vm13  ;;  %vm1016_vm11 = vcmp.lt.s32.totalorder %v952_v62, 16  ;;  %v5237_v62 = vcombine.low %v6861_v14, %v6864_v17  ;;  %v6305_v17 = vld [vmem:[%s9873_s4 + $0x78] sm:$0xff]  }
  0x33   : > { %vm980_vm14 = vcmp.ge.s32.totalorder %v948_v42, 0  ;;  %vm1012_vm15 = vcmp.lt.s32.totalorder %v948_v42, 16  ;;  %v1077_v1 = vsel %vm1045_vm0, 1, %v9878_v3  ;;  %vm1048_vm13 = vmand %vm984_vm10, %vm1016_vm11  ;;  %v958_v42 = vadd.s32 4294967295, %v6878_v31  ;;  %5961 = vmatprep.subr.bf16.mxu0 %v6305_v17 }
  0x34   : > { %665 = vmatmul.mubr.bf16.vlgmr.msra.gmra.mxu0 %v5225_v51  ;;  %1128 = vperm.xlu1 %6253, %v1069_v22   ;;  %v951_v51 = vadd.s32 4294967295, %v6798_v43  ;;  %vm1044_vm1 = vmand %vm980_vm14, %vm1012_vm15  ;;  %v6870_v22 = vld [vmem:[%s9870_s1 + $0xf8] sm:$0xff]  ;;  %vm987_vm14 = vcmp.ge.s32.totalorder %v955_v12, 0  ;;  %vm1019_vm15 = vcmp.lt.s32.totalorder %v955_v12, 16  ;;  %v1080_v38 = vsel %vm1048_vm13, 1, %v9878_v3 }
  0x35   : > { %672 = vmatprep.mubr.bf16.mxu0 %v5228_v53  ;;  %1125 = vperm.xlu0 %6252, %v1068_v29   ;;  %v6814_v53 = vld [vmem:[%s9870_s1 + $0xc8] sm:$0xff]  ;;  %v957_v29 = vadd.s32 4294967295, %v6849_v7  ;;  %vm990_vm13 = vcmp.ge.s32.totalorder %v958_v42, 0 }
  0x36   : > { %vm983_vm2 = vcmp.ge.s32.totalorder %v951_v51, 0  ;;  %vm1015_vm3 = vcmp.lt.s32.totalorder %v951_v51, 16  ;;  %v953_v61 = vadd.s32 4294967295, %v6814_v53  ;;  %v1829_v51 = vadd.s32 1, %v6601_v15  ;;  %5962 = vmatpush3.bf16.msra.mxu0 %v6305_v17 }
  0x37   : > { %vm1047_vm6 = vmand %vm983_vm2, %vm1015_vm3  ;;  %vm989_vm4 = vcmp.ge.s32.totalorder %v957_v29, 0  ;;  %vm1021_vm5 = vcmp.lt.s32.totalorder %v957_v29, 16  ;;  %v1831_v15 = vadd.s32 1, %v6636_v26  ;;  %v1848_v29 = vadd.s32 1, %v6777_v33 }
  0x38   : > { %1134 = vperm.xlu1 %6253, %v1071_v34   ;;  %vm985_vm8 = vcmp.ge.s32.totalorder %v953_v61, 0  ;;  %vm1017_vm9 = vcmp.lt.s32.totalorder %v953_v61, 16  ;;  %v1079_v18 = vsel %vm1047_vm6, 1, %v9878_v3  ;;  %v5235_v34 = vcombine.low %v6823_v57, %v6826_v59  ;;  %vm1051_vm2 = vmand %vm987_vm14, %vm1019_vm15  ;;  %v6922_v59 = vld [vmem:[%s6582_s26 + $0x78] sm:$0xff] }
  0x39   : > { %1131 = vperm.xlu0 %6252, %v1070_v40   ;;  %vm1049_vm12 = vmand %vm985_vm8, %vm1017_vm9  ;;  %v959_v40 = vadd.s32 4294967295, %v6870_v22  ;;  %vm825_vm8 = vcmask 523264   ;;  %vm1022_vm14 = vcmp.lt.s32.totalorder %v958_v42, 16  ;;  %v1830_v57 = vadd.s32 1, %v6616_v20 }
  0x3a   : > { %v1081_v32 = vsel %vm1049_vm12, 1, %v9878_v3  ;;  %vm6906_vm9 = vmand %vm989_vm4, %vm1021_vm5  ;;  %v1832_v20 = vadd.s32 1, %v6631_v25  ;;  %vm1861_vm5 = vcmp.ge.s32.totalorder %v1829_v51, 0  ;;  %v1843_v25 = vadd.s32 1, %v6752_v11  ;;  %v6304_v11 = vld [vmem:[%s9873_s4 + $0x28] sm:$0xff]  }
  0x3b   : > { %vm991_vm10 = vcmp.ge.s32.totalorder %v959_v40, 0  ;;  %vm1023_vm11 = vcmp.lt.s32.totalorder %v959_v40, 16  ;;  %vm6942_vm4 = vmand %vm990_vm13, %vm1022_vm14  ;;  %vm1895_vm13 = vcmp.lt.s32.totalorder %v1831_v15, 16  ;;  %v1850_v42 = vadd.s32 1, %v6798_v43 }
  0x3c   : > { %673 = vmatmul.mubr.bf16.gmra.mxu0 %v5227_v4  ;;  %1140 = vperm.xlu1 %6253, %v1073_v44   ;;  %v6841_v4 = vld [vmem:[%s9870_s1 + $0xd0] sm:$0xff]  ;;  %v1828_v44 = vadd.s32 1, %v6621_v21  ;;  %v1086_v14 = vsel %vm6942_vm4, 1, %v9878_v3 }
  0x3d   : > { %680 = vmatprep.mubr.bf16.mxu0 %v5230_v6  ;;  %1137 = vperm.xlu0 %6252, %v1072_v47   ;;  %v1076_v6 = vsel %vm1044_vm1, 1, %v9878_v3  ;;  %v954_v13 = vadd.s32 4294967295, %v6841_v4  ;;  %v1827_v47 = vadd.s32 1, %v6606_v16 }
  0x3e   : > { %vm1860_vm15 = vcmp.ge.s32.totalorder %v1828_v44, 0 }
  0x3f   : > { %vm986_vm0 = vcmp.ge.s32.totalorder %v954_v13, 0  ;;  %vm1018_vm1 = vcmp.lt.s32.totalorder %v954_v13, 16  ;;  %v1833_v13 = vadd.s32 1, %v6646_v28  ;;  %v5239_v28 = vcombine.low %v6912_v52, %v6922_v59 }
  0x40   : > { %1146 = vperm.xlu1 %6253, %v1075_v54   ;;  %vm6887_vm3 = vmand %vm986_vm0, %vm1018_vm1  ;;  %vm1892_vm0 = vcmp.lt.s32.totalorder %v1828_v44, 16  ;;  %v1837_v44 = vadd.s32 1, %v6701_v50  ;;  %v326_v54 = vld [vmem:[%s6582_s26 + $0xa8] sm:$0xff] }
  0x41   : > { %1143 = vperm.xlu0 %6252, %v1074_v60   ;;  %v1082_v21 = vsel %vm6887_vm3, 1, %v9878_v3  ;;  %v1085_v60 = vsel %vm6906_vm9, 1, %v9878_v3  ;;  %vm6930_vm1 = vmand %vm991_vm10, %vm1023_vm11  ;;  %vm1891_vm3 = vcmp.lt.s32.totalorder %v1827_v47, 16  ;;  %vm1862_vm9 = vcmp.ge.s32.totalorder %v1830_v57, 0 }
  0x42   : > { %vm1894_vm10 = vcmp.lt.s32.totalorder %v1830_v57, 16  ;;  %vm1865_vm4 = vcmp.ge.s32.totalorder %v1833_v13, 0  ;;  %v1839_v57 = vadd.s32 1, %v6721_v58  ;;  %v1841_v58 = vadd.s32 1, %v6737_v2  ;;  %v7033_v2 = vld [vmem:[%s6582_s26 + $0xb0] sm:$0xff] }
  0x44   : > { %681 = vmatmul.mubr.bf16.gmra.mxu0 %v5229_v24  ;;  %1152 = vperm.xlu1 %6253, %v1077_v1   ;;  %v1078_v24 = vsel %vm1046_vm7, 1, %v9878_v3  ;;  %v6303_v1 = vld [vmem:[%s9873_s4 + $0x30] sm:$0xff]  }
  0x45   : > { %688 = vmatprep.mubr.bf16.mxu0 %v5232_v30  ;;  %1149 = vperm.xlu0 %6252, %v1076_v6   ;;  %v956_v30 = vadd.s32 4294967295, %v6854_v8 }
  0x47   : > { %vm988_vm6 = vcmp.ge.s32.totalorder %v956_v30, 0  ;;  %vm1020_vm7 = vcmp.lt.s32.totalorder %v956_v30, 16  ;;  %v322_v30 = vld [vmem:[%s6582_s26 + $0x88] sm:$0xff] }
  0x48   : > { %1158 = vperm.xlu1 %6253, %v1079_v18   ;;  %vm6916_vm12 = vmand %vm988_vm6, %vm1020_vm7  ;;  %vm1893_vm6 = vcmp.lt.s32.totalorder %v1829_v51, 16  ;;  %v1834_v18 = vadd.s32 1, %v6641_v27 }
  0x49   : > { %1155 = vperm.xlu0 %6252, %v1078_v24   ;;  %v1084_v26 = vsel %vm6916_vm12, 1, %v9878_v3  ;;  %vm6949_vm7 = vmand %vm1860_vm15, %vm1892_vm0  ;;  %vm1863_vm12 = vcmp.ge.s32.totalorder %v1831_v15, 0  ;;  %vm1864_vm15 = vcmp.ge.s32.totalorder %v1832_v20, 0  ;;  %vm1896_vm0 = vcmp.lt.s32.totalorder %v1832_v20, 16  ;;  %v321_v24 = vld [vmem:[%s6582_s26 + $0x80] sm:$0xff]  ;;  %v6302_v20 = vld [vmem:[%s9873_s4 + $0x38] sm:$0xff]  }
  0x4a   : > { %vm6960_vm14 = vmand %vm1861_vm5, %vm1893_vm6  ;;  %v1956_v27 = vsel %vm6949_vm7, 1, %v9878_v3  ;;  %vm1897_vm5 = vcmp.lt.s32.totalorder %v1833_v13, 16  ;;  %vm1866_vm6 = vcmp.ge.s32.totalorder %v1834_v18, 0  ;;  %5841 = vmatprep.subr.bf16.mxu1 %v6302_v20  ;;  %v1846_v13 = vadd.s32 1, %v6762_v19 }
  0x4b   : > { %vm6999_vm7 = vmand %vm1865_vm4, %vm1897_vm5  ;;  %vm1901_vm4 = vcmp.lt.s32.totalorder %v1837_v44, 16  ;;  %5842 = vmatpush3.bf16.msra.mxu1 %v6302_v20 }
  0x4c   : > { %689 = vmatmul.mubr.bf16.gmra.mxu0 %v5231_v46  ;;  %1164 = vperm.xlu1 %6253, %v1081_v32   ;;  %v1083_v46 = vsel %vm1051_vm2, 1, %v9878_v3  ;;  %vm1859_vm2 = vcmp.ge.s32.totalorder %v1827_v47, 0  ;;  %v1835_v32 = vadd.s32 1, %v6672_v39  ;;  %v323_v47 = vld [vmem:[%s6582_s26 + $0x90] sm:$0xff]  ;;  %v1961_v50 = vsel %vm6999_vm7, 1, %v9878_v3 }
  0x4d   : > { %696 = vmatprep.mubr.bf16.mxu0 %v5234_v49  ;;  %1161 = vperm.xlu0 %6252, %v1080_v38   ;;  %v6451_v49 = vmov 0.0   ;;  %vm6953_vm11 = vmand %vm1859_vm2, %vm1891_vm3  ;;  %v1957_v38 = vsel %vm6960_vm14, 1, %v9878_v3 }
  0x4e   : > { %826 = vst.msk [vmem:[#allocation2] sm:$0xff] %vm825_vm8, %v6451_v49  ;;  %827 = vst.msk [vmem:[#allocation2 + $0x8] sm:$0xff] %vm825_vm8, %v6451_v49  ;;  %5843 = vmatprep.subr.bf16.mxu1 %v6303_v1 }
  0x4f   : > { %828 = vst.msk [vmem:[#allocation2 + $0x10] sm:$0xff] %vm825_vm8, %v6451_v49  ;;  %829 = vst.msk [vmem:[#allocation2 + $0x118] sm:$0xff] %vm825_vm8, %v6451_v49  ;;  %5844 = vmatpush3.bf16.msra.mxu1 %v6303_v1  ;;  %v336_v1 = vld [vmem:[%s6582_s26 + $0xf8] sm:$0xff] }
  0x50   : > { %830 = vst.msk [vmem:[#allocation2 + $0x120] sm:$0xff] %vm825_vm8, %v6451_v49  ;;  %831 = vst.msk [vmem:[#allocation2 + $0x128] sm:$0xff] %vm825_vm8, %v6451_v49  ;;  %1170 = vperm.xlu1 %6253, %v1083_v46   ;;  %v1838_v46 = vadd.s32 1, %v6693_v48  ;;  %v324_v49 = vld [vmem:[%s6582_s26 + $0x98] sm:$0xff]  ;;  %v1840_v48 = vadd.s32 1, %v6715_v56  ;;  %v1842_v56 = vadd.s32 1, %v6731_v0  ;;  %5845 = vmatprep.subr.bf16.mxu1 %v6304_v11 }
  0x51   : > { %1167 = vperm.xlu0 %6252, %v1082_v21   ;;  %vm6968_vm2 = vmand %vm1862_vm9, %vm1894_vm10  ;;  %vm1898_vm9 = vcmp.lt.s32.totalorder %v1834_v18, 16  ;;  %vm1867_vm10 = vcmp.ge.s32.totalorder %v1835_v32, 0  ;;  %v5241_v21 = vcombine.low %v321_v24, %v322_v30  ;;  %v5244_v16 = vcombine.high %v323_v47, %v324_v49 }
  0x52   : > { %vm1928_vm3 = vmand %vm1864_vm15, %vm1896_vm0  ;;  %v1958_v39 = vsel %vm6968_vm2, 1, %v9878_v3  ;;  %vm1870_vm2 = vcmp.ge.s32.totalorder %v1838_v46, 0  ;;  %v5243_v15 = vcombine.low %v323_v47, %v324_v49  ;;  %vm1904_vm7 = vcmp.lt.s32.totalorder %v1840_v48, 16  ;;  %v331_v49 = vld [vmem:[%s6582_s26 + $0xd0] sm:$0xff] }
  0x53   : > { %v1960_v41 = vsel %vm1928_vm3, 1, %v9878_v3  ;;  %vm1869_vm3 = vcmp.ge.s32.totalorder %v1837_v44, 0  ;;  %v1844_v0 = vadd.s32 1, %v6746_v9  ;;  %5846 = vmatpush3.bf16.msra.mxu1 %v6304_v11  ;;  %v1849_v44 = vadd.s32 1, %v6804_v45 }
  0x54   : > { %697 = vmatmul.mubr.bf16.gmra.mxu0 %v5233_v5  ;;  %v5240_v5 = vcombine.high %v6912_v52, %v6922_v59  ;;  %1176 = vperm.xlu1 %6253, %v1085_v60   ;;  %v325_v52 = vld [vmem:[%s6582_s26 + $0xa0] sm:$0xff]  ;;  %v1852_v45 = vadd.s32 1, %v6814_v53 }
  0x55   : > { %704 = vmatprep.mubr.bf16.mxu0 %v5236_v10  ;;  %1173 = vperm.xlu0 %6252, %v1084_v26   ;;  %v1087_v10 = vsel %vm6930_vm1, 1, %v9878_v3  ;;  %vm6974_vm1 = vmand %vm1863_vm12, %vm1895_vm13  ;;  %v5246_v61 = vcombine.high %v325_v52, %v326_v54 }
  0x56   : > { %v1959_v40 = vsel %vm6974_vm1, 1, %v9878_v3  ;;  %vm1930_vm13 = vmand %vm1866_vm6, %vm1898_vm9  ;;  %vm1902_vm1 = vcmp.lt.s32.totalorder %v1838_v46, 16  ;;  %vm1872_vm9 = vcmp.ge.s32.totalorder %v1840_v48, 0  ;;  %v6308_v46 = vld [vmem:[%s9873_s4 + $0x68] sm:$0xff]  }
  0x57   : > { %v1962_v51 = vsel %vm1930_vm13, 1, %v9878_v3  ;;  %vm1934_vm5 = vmand %vm1870_vm2, %vm1902_vm1  ;;  %vm1905_vm2 = vcmp.lt.s32.totalorder %v1841_v58, 16 }
  0x58   : > { %1182 = vperm.xlu1 %6253, %v1087_v10   ;;  %vm1933_vm6 = vmand %vm1869_vm3, %vm1901_vm4  ;;  %v5245_v10 = vcombine.low %v325_v52, %v326_v54  ;;  %vm1876_vm4 = vcmp.ge.s32.totalorder %v1844_v0, 0  ;;  %v1853_v54 = vadd.s32 1, %v6841_v4  ;;  %v1855_v4 = vadd.s32 1, %v6854_v8 }
  0x59   : > { %1179 = vperm.xlu0 %6252, %v1086_v14   ;;  %v1965_v26 = vsel %vm1933_vm6, 1, %v9878_v3  ;;  %vm1875_vm6 = vcmp.ge.s32.totalorder %v1843_v25, 0  ;;  %v1845_v14 = vadd.s32 1, %v6768_v23  ;;  %v1857_v8 = vadd.s32 1, %v6878_v31 }
  0x5c   : > { %705 = vmatmul.mubr.bf16.gmra.mxu0 %v5235_v34  ;;  %v1836_v34 = vadd.s32 1, %v6664_v37  ;;  %v5242_v37 = vcombine.high %v321_v24, %v322_v30  ;;  %1991 = vperm.xlu1 %6253, %v1956_v27   ;;  %v7067_v30 = vld [vmem:[%s6582_s26 + $0xc0] sm:$0xff]  ;;  %v6307_v27 = vld [vmem:[%s9873_s4 + $0x70] sm:$0xff]  }
  0x5d   : > { %712 = vmatprep.mubr.bf16.mxu0 %v5238_v36  ;;  %v1955_v36 = vsel %vm6953_vm11, 1, %v9878_v3  ;;  %vm1899_vm11 = vcmp.lt.s32.totalorder %v1835_v32, 16  ;;  %v7070_v32 = vld [vmem:[%s6582_s26 + $0xc8] sm:$0xff]  ;;  %5963 = vmatprep.subr.bf16.mxu0 %v6307_v27 }
  0x5e   : > { %vm1868_vm12 = vcmp.ge.s32.totalorder %v1836_v34, 0  ;;  %1988 = vperm.xlu0 %6252, %v1955_v36   ;;  %vm1900_vm14 = vcmp.lt.s32.totalorder %v1836_v34, 16  ;;  %vm1931_vm0 = vmand %vm1867_vm10, %vm1899_vm11  ;;  %vm1871_vm10 = vcmp.ge.s32.totalorder %v1839_v57, 0  ;;  %vm1903_vm11 = vcmp.lt.s32.totalorder %v1839_v57, 16  ;;  %v1272_v36 = vld [vmem:[#allocation2 + $0x8] sm:$0xff]  ;;  %5964 = vmatpush3.bf16.msra.mxu0 %v6307_v27 }
  0x5f   : > { %vm1932_vm15 = vmand %vm1868_vm12, %vm1900_vm14  ;;  %v1963_v60 = vsel %vm1931_vm0, 1, %v9878_v3  ;;  %vm1874_vm14 = vcmp.ge.s32.totalorder %v1842_v56, 0  ;;  %vm1873_vm0 = vcmp.ge.s32.totalorder %v1841_v58, 0  ;;  %v1847_v34 = vadd.s32 1, %v6783_v35  ;;  %5965 = vmatprep.subr.bf16.mxu0 %v6308_v46 }
  0x60   : > { %1997 = vperm.xlu1 %6253, %v1958_v39   ;;  %v1964_v59 = vsel %vm1932_vm15, 1, %v9878_v3  ;;  %vm1936_vm12 = vmand %vm1872_vm9, %vm1904_vm7  ;;  %vm1906_vm15 = vcmp.lt.s32.totalorder %v1842_v56, 16  ;;  %vm1907_vm9 = vcmp.lt.s32.totalorder %v1843_v25, 16  ;;  %v5249_v48 = vcombine.low %v7067_v30, %v7070_v32 }
  0x61   : > { %vm1935_vm13 = vmand %vm1871_vm10, %vm1903_vm11  ;;  %v1968_v6 = vsel %vm1936_vm12, 1, %v9878_v3  ;;  %vm1878_vm11 = vcmp.ge.s32.totalorder %v1846_v13, 0  ;;  %vm1910_vm12 = vcmp.lt.s32.totalorder %v1846_v13, 16 }
  0x62   : > { %1994 = vperm.xlu0 %6252, %v1957_v38   ;;  %v1967_v9 = vsel %vm1935_vm13, 1, %v9878_v3  ;;  %vm1938_vm1 = vmand %vm1874_vm14, %vm1906_vm15  ;;  %vm1877_vm13 = vcmp.ge.s32.totalorder %v1845_v14, 0  ;;  %vm1909_vm14 = vcmp.lt.s32.totalorder %v1845_v14, 16  ;;  %v1273_v38 = vld [vmem:[#allocation2 + $0x10] sm:$0xff]  ;;  %5966 = vmatpush3.bf16.msra.mxu0 %v6308_v46  ;;  %v7147_v14 = vld [vmem:[%s9873_s4 + $0xb8] sm:$0xff]  }
  0x63   : > { %vm1937_vm3 = vmand %vm1873_vm0, %vm1905_vm2  ;;  %v1970_v18 = vsel %vm1938_vm1, 1, %v9878_v3  ;;  %vm1880_vm2 = vcmp.ge.s32.totalorder %v1848_v29, 0  ;;  %vm1912_vm1 = vcmp.lt.s32.totalorder %v1848_v29, 16 }
  0x64   : > { %713 = vmatmul.mubr.bf16.gmra.mxu0 %v5237_v62  ;;  %2003 = vperm.xlu1 %6253, %v1960_v41   ;;  %v1966_v62 = vsel %vm1934_vm5, 1, %v9878_v3  ;;  %vm1908_vm5 = vcmp.lt.s32.totalorder %v1844_v0, 16  ;;  %v1969_v19 = vsel %vm1937_vm3, 1, %v9878_v3  ;;  %vm7058_vm10 = vmand %vm1875_vm6, %vm1907_vm9  ;;  %v5250_v41 = vcombine.high %v7067_v30, %v7070_v32  ;;  %v335_v0 = vld [vmem:[%s6582_s26 + $0xf0] sm:$0xff] }
  0x65   : > { %720 = vmatprep.mubr.bf16.mxu0 %v5240_v5  ;;  %v7036_v5 = vld [vmem:[%s6582_s26 + $0xb8] sm:$0xff]  ;;  %vm7054_vm7 = vmand %vm1876_vm4, %vm1908_vm5  ;;  %v1971_v35 = vsel %vm7058_vm10, 1, %v9878_v3  ;;  %vm1879_vm3 = vcmp.ge.s32.totalorder %v1847_v34, 0  ;;  %vm1911_vm4 = vcmp.lt.s32.totalorder %v1847_v34, 16  ;;  %vm1882_vm9 = vcmp.ge.s32.totalorder %v1850_v42, 0 }
  0x66   : > { %2000 = vperm.xlu0 %6252, %v1959_v40   ;;  %v5248_v12 = vcombine.high %v7033_v2, %v7036_v5  ;;  %v1972_v33 = vsel %vm7054_vm7, 1, %v9878_v3  ;;  %v5247_v39 = vcombine.low %v7033_v2, %v7036_v5  ;;  %vm7086_vm15 = vmand %vm1878_vm11, %vm1910_vm12  ;;  %v1304_v40 = vpack.c.bf16 %v1273_v38, %v1272_v36  ;;  %v7177_v36 = vld [vmem:[%s9873_s4 + $0x18] sm:$0xff]  }
  0x67   : > { %vm1941_vm0 = vmand %vm1877_vm13, %vm1909_vm14  ;;  %v1974_v47 = vsel %vm7086_vm15, 1, %v9878_v3  ;;  %vm1914_vm7 = vcmp.lt.s32.totalorder %v1850_v42, 16  ;;  %vm1881_vm10 = vcmp.ge.s32.totalorder %v1849_v44, 0  ;;  %vm1913_vm11 = vcmp.lt.s32.totalorder %v1849_v44, 16 }
  0x68   : > { %2009 = vperm.xlu1 %6253, %v1962_v51   ;;  %5849 = vmatprep.mubr.msk.bf16.mxu1 %vm825_vm8, %v1304_v40  ;;  %v1973_v43 = vsel %vm1941_vm0, 1, %v9878_v3  ;;  %vm1944_vm5 = vmand %vm1880_vm2, %vm1912_vm1  ;;  %vm1884_vm14 = vcmp.ge.s32.totalorder %v1852_v45, 0  ;;  %vm1916_vm15 = vcmp.lt.s32.totalorder %v1852_v45, 16  ;;  %v5256_v5 = vcombine.high %v335_v0, %v336_v1 }
  0x69   : > { %vm1943_vm6 = vmand %vm1879_vm3, %vm1911_vm4  ;;  %v1976_v51 = vsel %vm1944_vm5, 1, %v9878_v3 }
  0x6a   : > { %2006 = vperm.xlu0 %6252, %v1961_v50   ;;  %v6309_v50 = vld [vmem:[%s9873_s4 + $0x60] sm:$0xff]   ;;  %v1975_v53 = vsel %vm1943_vm6, 1, %v9878_v3  ;;  %vm1946_vm12 = vmand %vm1882_vm9, %vm1914_vm7  ;;  %vm1885_vm6 = vcmp.ge.s32.totalorder %v1853_v54, 0  ;;  %vm1917_vm9 = vcmp.lt.s32.totalorder %v1853_v54, 16 }
  0x6b   : > { %vm1945_vm13 = vmand %vm1881_vm10, %vm1913_vm11  ;;  %5967 = vmatprep.subr.bf16.mxu0 %v6309_v50  ;;  %v1978_v57 = vsel %vm1946_vm12, 1, %v9878_v3 }
  0x6c   : > { %721 = vmatmul.mubr.bf16.gmra.mxu0 %v5239_v28  ;;  %2015 = vperm.xlu1 %6253, %v1964_v59   ;;  %v6306_v28 = vld [vmem:[%s9873_s4 + $0x20] sm:$0xff]   ;;  %v1977_v59 = vsel %vm1945_vm13, 1, %v9878_v3  ;;  %vm1948_vm1 = vmand %vm1884_vm14, %vm1916_vm15  ;;  %vm1887_vm13 = vcmp.ge.s32.totalorder %v1855_v4, 0  ;;  %vm1919_vm14 = vcmp.lt.s32.totalorder %v1855_v4, 16 }
  0x6d   : > { %728 = vmatprep.mubr.bf16.mxu0 %v5242_v37  ;;  %5847 = vmatprep.subr.bf16.mxu1 %v6306_v28  ;;  %vm1949_vm10 = vmand %vm1885_vm6, %vm1917_vm9 }
  0x6e   : > { %2012 = vperm.xlu0 %6252, %v1963_v60   ;;  %5848 = vmatpush3.bf16.msra.mxu1 %v6306_v28  ;;  %v334_v60 = vld [vmem:[%s6582_s26 + $0xe8] sm:$0xff] }
  0x6f   : > { %5968 = vmatpush3.bf16.msra.mxu0 %v6309_v50  ;;  %5881 = vmatprep.subr.bf16.mxu1 %v7177_v36 }
  0x70   : > { %2021 = vperm.xlu1 %6253, %v1966_v62   ;;  %6041 = vmatprep.subr.bf16.mxu0 %v7147_v14 }
  0x72   : > { %2018 = vperm.xlu0 %6252, %v1965_v26   ;;  %v1981_v26 = vsel %vm1949_vm10, 1, %v9878_v3 }
  0x74   : > { %729 = vmatmul.mubr.bf16.gmra.mxu0 %v5241_v21  ;;  %2027 = vperm.xlu1 %6253, %v1968_v6   ;;  %v332_v21 = vld [vmem:[%s6582_s26 + $0xd8] sm:$0xff] }
  0x75   : > { %736 = vmatprep.mubr.bf16.mxu0 %v5244_v16  ;;  %v1851_v16 = vadd.s32 1, %v6820_v55  ;;  %v5252_v52 = vcombine.high %v331_v49, %v332_v21  ;;  %v1854_v55 = vadd.s32 1, %v6835_v63  ;;  %v1856_v63 = vadd.s32 1, %v6849_v7 }
  0x76   : > { %2024 = vperm.xlu0 %6252, %v1967_v9   ;;  %v5251_v56 = vcombine.low %v331_v49, %v332_v21  ;;  %v1858_v7 = vadd.s32 1, %v6870_v22 }
  0x77   : > { %vm1883_vm0 = vcmp.ge.s32.totalorder %v1851_v16, 0  ;;  %vm1915_vm2 = vcmp.lt.s32.totalorder %v1851_v16, 16  ;;  %vm1886_vm4 = vcmp.ge.s32.totalorder %v1854_v55, 0  ;;  %vm1918_vm5 = vcmp.lt.s32.totalorder %v1854_v55, 16 }
  0x78   : > { %2033 = vperm.xlu1 %6253, %v1970_v18   ;;  %vm1947_vm3 = vmand %vm1883_vm0, %vm1915_vm2  ;;  %vm1888_vm11 = vcmp.ge.s32.totalorder %v1856_v63, 0  ;;  %vm1920_vm12 = vcmp.lt.s32.totalorder %v1856_v63, 16  ;;  %vm1890_vm2 = vcmp.ge.s32.totalorder %v1858_v7, 0 }
  0x79   : > { %v1979_v20 = vsel %vm1947_vm3, 1, %v9878_v3  ;;  %vm1950_vm7 = vmand %vm1886_vm4, %vm1918_vm5  ;;  %vm1889_vm3 = vcmp.ge.s32.totalorder %v1857_v8, 0  ;;  %vm1921_vm4 = vcmp.lt.s32.totalorder %v1857_v8, 16  ;;  %v1795_v8 = vld [vmem:[#allocation2 + $0x9] sm:$0xff] }
  0x7a   : > { %2030 = vperm.xlu0 %6252, %v1969_v19   ;;  %v1982_v62 = vsel %vm1950_vm7, 1, %v9878_v3  ;;  %vm1952_vm15 = vmand %vm1888_vm11, %vm1920_vm12 }
  0x7b   : > { %vm1951_vm0 = vmand %vm1887_vm13, %vm1919_vm14  ;;  %v1984_v22 = vsel %vm1952_vm15, 1, %v9878_v3 }
  0x7c   : > { %737 = vmatmul.mubr.bf16.gmra.mxu0 %v5243_v15  ;;  %2039 = vperm.xlu1 %6253, %v1972_v33   ;;  %v333_v15 = vld [vmem:[%s6582_s26 + $0xe0] sm:$0xff]  ;;  %v1983_v2 = vsel %vm1951_vm0, 1, %v9878_v3  ;;  %vm1953_vm6 = vmand %vm1889_vm3, %vm1921_vm4 }
  0x7d   : > { %744 = vmatprep.mubr.bf16.mxu0 %v5246_v61  ;;  %v1980_v61 = vsel %vm1948_vm1, 1, %v9878_v3  ;;  %v5254_v58 = vcombine.high %v333_v15, %v334_v60  ;;  %vm1922_vm1 = vcmp.lt.s32.totalorder %v1858_v7, 16  ;;  %v5253_v31 = vcombine.low %v333_v15, %v334_v60 }
  0x7e   : > { %2036 = vperm.xlu0 %6252, %v1971_v35   ;;  %vm1954_vm5 = vmand %vm1890_vm2, %vm1922_vm1  ;;  %v1985_v6 = vsel %vm1953_vm6, 1, %v9878_v3 }
  0x7f   : > { %v1986_v25 = vsel %vm1954_vm5, 1, %v9878_v3 }
  0x80   : > { %2045 = vperm.xlu1 %6253, %v1974_v47  }
  0x82   : > { %2042 = vperm.xlu0 %6252, %v1973_v43  }
  0x84   : > { %745 = vmatmul.mubr.bf16.gmra.mxu0 %v5245_v10  ;;  %2051 = vperm.xlu1 %6253, %v1976_v51   ;;  %v7211_v51 = vld [vmem:[%s9872_s3] ss:$0 sm:$0xff] }
  0x85   : > { %752 = vmatprep.mubr.bf16.mxu0 %v5248_v12  ;;  %v5255_v12 = vcombine.low %v335_v0, %v336_v1 }
  0x86   : > { %2048 = vperm.xlu0 %6252, %v1975_v53  }
  0x88   : > { %2057 = vperm.xlu1 %6253, %v1978_v57  }
  0x8a   : > { %2054 = vperm.xlu0 %6252, %v1977_v59  }
  0x8c   : > { %753 = vmatmul.mubr.bf16.gmra.mxu0 %v5247_v39  ;;  %2063 = vperm.xlu1 %6253, %v1980_v61  }
  0x8d   : > { %760 = vmatprep.mubr.bf16.mxu0 %v5250_v41 }
  0x8e   : > { %2060 = vperm.xlu0 %6252, %v1979_v20  }
  0x90   : > { %2069 = vperm.xlu1 %6253, %v1982_v62  }
  0x92   : > { %2066 = vperm.xlu0 %6252, %v1981_v26  }
  0x94   : > { %761 = vmatmul.mubr.bf16.gmra.mxu0 %v5249_v48  ;;  %2075 = vperm.xlu1 %6253, %v1984_v22  }
  0x95   : > { %768 = vmatprep.mubr.bf16.mxu0 %v5252_v52 }
  0x96   : > { %2072 = vperm.xlu0 %6252, %v1983_v2  }
  0x97   : > { %v7136_v10 = vpop.permute.xlu1 %1095 }
  0x98   : > { %v7138_v9 = vpop.permute.xlu0 %1089  ;;  %2081 = vperm.xlu1 %6253, %v1986_v25   ;;  %vm1186_vm14 = vcmp.eq.s32.totalorder %v7136_v10, 1 }
  0x99   : > { %10043 = vst [vmem:[#allocation6_spill] sm:$0xff] %v7138_v9  ;;  %vm9894_vm10 = vcmp.eq.s32.totalorder %v7138_v9, 1 }
  0x9a   : > { %2078 = vperm.xlu0 %6252, %v1985_v6  }
  0x9b   : > { %v7140_v13 = vpop.permute.xlu1 %1098 }
  0x9c   : > { %769 = vmatmul.mubr.bf16.gmra.mxu0 %v5251_v56  ;;  %v7142_v11 = vpop.permute.xlu0 %1092  ;;  %vm1187_vm12 = vcmp.eq.s32.totalorder %v7140_v13, 1 }
  0x9d   : > { %776 = vmatprep.mubr.bf16.mxu0 %v5254_v58  ;;  %10044 = vst [vmem:[#allocation7_spill] sm:$0xff] %v7142_v11  ;;  %vm9893_vm13 = vcmp.eq.s32.totalorder %v7142_v11, 1 }
  0x9f   : > { %v7149_v17 = vpop.permute.xlu1 %1104 }
  0xa0   : > { %v7152_v18 = vpop.permute.xlu0 %1101  ;;  %vm1189_vm1 = vcmp.eq.s32.totalorder %v7149_v17, 1 }
  0xa1   : > { %vm1188_vm15 = vcmp.eq.s32.totalorder %v7152_v18, 1 }
  0xa3   : > { %v7154_v19 = vpop.permute.xlu1 %1110 }
  0xa4   : > { %777 = vmatmul.mubr.bf16.gmra.mxu0 %v5253_v31  ;;  %v7156_v24 = vpop.permute.xlu0 %1107  ;;  %vm1191_vm6 = vcmp.eq.s32.totalorder %v7154_v19, 1 }
  0xa5   : > { %784 = vmatprep.mubr.bf16.mxu0 %v5256_v5  ;;  %vm1190_vm4 = vcmp.eq.s32.totalorder %v7156_v24, 1 }
  0xa7   : > { %v7160_v29 = vpop.permute.xlu1 %1116 }
  0xa8   : > { %v7158_v23 = vpop.permute.xlu0 %1113 }
  0xab   : > { %v7164_v30 = vpop.permute.xlu1 %1122 }
  0xac   : > { %785 = vmatmul.mubr.bf16.gmra.mxu0 %v5255_v12  ;;  %v7162_v28 = vpop.permute.xlu0 %1119 }
  0xaf   : > { %v7168_v34 = vpop.permute.xlu1 %1128 }
  0xb0   : > { %v7166_v32 = vpop.permute.xlu0 %1125 }
  0xb3   : > { %v7172_v33 = vpop.permute.xlu1 %1134 }
  0xb4   : > { %v7170_v27 = vpop.permute.xlu0 %1131 }
  0xb7   : > { %v7182_v39 = vpop.permute.xlu1 %1140 }
  0xb8   : > { %v7180_v38 = vpop.permute.xlu0 %1137 }
  0xbb   : > { %v7186_v37 = vpop.permute.xlu1 %1146 }
  0xbc   : > { %v7184_v35 = vpop.permute.xlu0 %1143 }
  0xbf   : > { %v7190_v41 = vpop.permute.xlu1 %1152 }
  0xc0   : > { %v7188_v40 = vpop.permute.xlu0 %1149 }
  0xc3   : > { %v7194_v44 = vpop.permute.xlu1 %1158 }
  0xc4   : > { %v7192_v42 = vpop.permute.xlu0 %1155 }
  0xc7   : > { %v7198_v47 = vpop.permute.xlu1 %1164 }
  0xc8   : > { %v7196_v46 = vpop.permute.xlu0 %1161 }
  0xcb   : > { %v7202_v45 = vpop.permute.xlu1 %1170 }
  0xcc   : > { %v7200_v43 = vpop.permute.xlu0 %1167  ;;  %10046 = vst [vmem:[#allocation9_spill] sm:$0xff] %v7202_v45 }
  0xcd   : > { %10045 = vst [vmem:[#allocation8_spill] sm:$0xff] %v7200_v43 }
  0xcf   : > { %v7206_v21 = vpop.permute.xlu1 %1176 }
  0xd0   : > { %v7204_v49 = vpop.permute.xlu0 %1173  ;;  %10048 = vst [vmem:[#allocation11_spill] sm:$0xff] %v7206_v21 }
  0xd1   : > { %10047 = vst [vmem:[#allocation10_spill] sm:$0xff] %v7204_v49 }
  0xd3   : > { %v7216_v54 = vpop.permute.xlu1 %1182 }
  0xd4   : > { %v7213_v53 = vpop.permute.xlu0 %1179  ;;  %10050 = vst [vmem:[#allocation13_spill] sm:$0xff] %v7216_v54 }
  0xd5   : > { %10049 = vst [vmem:[#allocation12_spill] sm:$0xff] %v7213_v53 }
  0xd7   : > { %v7222_v58 = vpop.permute.xlu1 %1991 }
  0xd8   : > { %vm9909_vm7 = vcmp.eq.s32.totalorder %v7222_v58, 1 }
  0xd9   : > { %v7220_v4 = vpop.permute.xlu0 %1988 }
  0xda   : > { %vm9899_vm9 = vcmp.eq.s32.totalorder %v7220_v4, 1 }
  0xdb   : > { %v7230_v22 = vsel %vm9899_vm9, %v1795_v8, 0.0  ;;  %v6315_v8 = vld [vmem:[%s9873_s4 + $0x10] sm:$0xff]  }
  0xdc   : > { %10051 = vst [vmem:[#allocation14_spill] sm:$0xff] %v7230_v22 }
  0xdd   : > { %v7232_v31 = vpop.permute.xlu0 %1994 }
  0xde   : > { %vm2085_vm11 = vcmp.eq.s32.totalorder %v7232_v31, 1 }
  0xf4   : > { %v5565_v16 = vpop.f32.mrf.mxu0 }
  0xf6   : > { %v5566_v50 = vpop.f32.mrf.mxu0 }
  0xf7   : > { %v5567_v48 = vadd.f32 %v5566_v50, %v5565_v16 }
  0xf8   : > { %v5568_v52 = vpop.f32.mrf.mxu0 }
  0xf9   : > { %v667_v55 = vadd.f32 %v5567_v48, %v7211_v51 }
  0xfa   : > { %v5569_v57 = vpop.f32.mrf.mxu0 }
  0xfb   : > { %v793_v59 = vmax.f32 %v667_v55, 0.0  ;;  %v5570_v63 = vadd.f32 %v5569_v57, %v5568_v52  ;;  %v7246_v52 = vpop.permute.xlu1 %1997 }
  0xfc   : > { %v5571_v15 = vpop.f32.mrf.mxu0  ;;  %vm2086_vm0 = vcmp.eq.s32.totalorder %v7246_v52, 1 }
  0xfd   : > { %832 = vst.msk [vmem:[#allocation2 + $0x18] sm:$0xff] %vm825_vm8, %v793_v59  ;;  %v670_v60 = vadd.f32 %v5570_v63, %v7211_v51 }
  0xfe   : > { %v5572_v61 = vpop.f32.mrf.mxu0 }
  0xff   : > { %v794_v56 = vmax.f32 %v670_v60, 0.0  ;;  %v5573_v20 = vadd.f32 %v5572_v61, %v5571_v15 }
 0x100   : > { %v5574_v7 = vpop.f32.mrf.mxu0 }
 0x101   : > { %833 = vst.msk [vmem:[#allocation2 + $0x20] sm:$0xff] %vm825_vm8, %v794_v56  ;;  %v675_v62 = vadd.f32 %v5573_v20, %v7211_v51 }
 0x102   : > { %v5575_v26 = vpop.f32.mrf.mxu0 }
 0x103   : > { %v795_v0 = vmax.f32 %v675_v62, 0.0  ;;  %v5576_v1 = vadd.f32 %v5575_v26, %v5574_v7 }
 0x104   : > { %v1796_v2 = vld [vmem:[#allocation2 + $0x11] sm:$0xff]  ;;  %v5577_v5 = vpop.f32.mrf.mxu0 }
 0x105   : > { %834 = vst.msk [vmem:[#allocation2 + $0x28] sm:$0xff] %vm825_vm8, %v795_v0  ;;  %v678_v25 = vadd.f32 %v5576_v1, %v7211_v51  ;;  %v7238_v6 = vsel %vm9909_vm7, %v1796_v2, 0.0  ;;  %v1274_v55 = vld [vmem:[#allocation2 + $0x18] sm:$0xff] }
 0x106   : > { %10052 = vst [vmem:[#allocation15_spill] sm:$0xff] %v7238_v6  ;;  %v5578_v16 = vpop.f32.mrf.mxu0  ;;  %v2437_v57 = vld [vmem:[#allocation2 + $0x17] sm:$0xff] }
 0x107   : > { %v796_v50 = vmax.f32 %v678_v25, 0.0  ;;  %v5579_v48 = vadd.f32 %v5578_v16, %v5577_v5  ;;  %v898_v59 = vld [vmem:[#allocation2 + $0x17] sm:$0xff]  ;;  %v2469_v0 = vsel %vm9894_vm10, %v2437_v57, 0.0  ;;  %vm1192_vm10 = vcmp.eq.s32.totalorder %v7158_v23, 1 }
 0x108   : > { %v7249_v63 = vld [vmem:[#allocation2 + $0x19] sm:$0xff]  ;;  %v5580_v15 = vpop.f32.mrf.mxu0 }
 0x109   : > { %v1275_v60 = vld [vmem:[#allocation2 + $0x20] sm:$0xff]  ;;  %835 = vst.msk [vmem:[#allocation2 + $0x30] sm:$0xff] %vm825_vm8, %v796_v50  ;;  %v683_v56 = vadd.f32 %v5579_v48, %v7211_v51  ;;  %v7257_v20 = vsel %vm2085_vm11, %v7249_v63, 0.0  ;;  %v7272_v50 = vpop.permute.xlu0 %2000  ;;  %v7276_v48 = vsel %vm1186_vm14, %v898_v59, 0.0  ;;  %v6316_v59 = vld [vmem:[%s9873_s4 + $0x8] sm:$0xff]  }
 0x10a   : > { %v2438_v61 = vld [vmem:[#allocation2 + $0x1f] sm:$0xff]  ;;  %10053 = vst [vmem:[#allocation16_spill] sm:$0xff] %v7257_v20  ;;  %v1305_v7 = vpack.c.bf16 %v1275_v60, %v1274_v55  ;;  %v5581_v26 = vpop.f32.mrf.mxu0  ;;  %10055 = vst [vmem:[#allocation18_spill] sm:$0xff] %v7276_v48  ;;  %vm2087_vm2 = vcmp.eq.s32.totalorder %v7272_v50, 1 }
 0x10b   : > { %v899_v62 = vld [vmem:[#allocation2 + $0x1f] sm:$0xff]  ;;  %v2470_v1 = vsel %vm9893_vm13, %v2438_v61, 0.0  ;;  %v797_v5 = vmax.f32 %v683_v56, 0.0  ;;  %v5582_v25 = vadd.f32 %v5581_v26, %v5580_v15 }
 0x10c   : > { %v7269_v2 = vsel %vm1187_vm12, %v899_v62, 0.0  ;;  %5850 = vmatmul.mubr.msk.bf16.vlgmr.msra.gmra.mxu1 %vm825_vm8, %v1305_v7  ;;  %v2501_v16 = vpack.c.bf16 %v2470_v1, %v2469_v0  ;;  %v7278_v55 = vld [vmem:[#allocation2 + $0x21] sm:$0xff]  ;;  %v5583_v57 = vpop.f32.mrf.mxu0  ;;  %v7297_v62 = vpop.permute.xlu1 %2003 }
 0x10d   : > { %10054 = vst [vmem:[#allocation17_spill] sm:$0xff] %v7269_v2  ;;  %v2439_v60 = vld [vmem:[#allocation2 + $0x27] sm:$0xff]  ;;  %5882 = vmatpush3.bf16.msra.mxu1 %v7177_v36  ;;  %836 = vst.msk [vmem:[#allocation2 + $0x38] sm:$0xff] %vm825_vm8, %v797_v5  ;;  %v686_v15 = vadd.f32 %v5582_v25, %v7211_v51  ;;  %v7288_v56 = vsel %vm2086_vm0, %v7278_v55, 0.0  ;;  %vm9932_vm3 = vcmp.eq.s32.totalorder %v7297_v62, 1  ;;  %v7333_v53 = vpop.permute.xlu0 %2006 }
 0x10e   : > { %10056 = vst [vmem:[#allocation19_spill] sm:$0xff] %v7288_v56  ;;  %5969 = vmatprep.mubr.msk.bf16.mxu0 %vm825_vm8, %v2501_v16  ;;  %5883 = vmatprep.subr.bf16.mxu1 %v6315_v8  ;;  %v5584_v7 = vpop.f32.mrf.mxu0  ;;  %v7301_v26 = vsel %vm1188_vm15, %v2439_v60, 0.0  ;;  %vm2089_vm5 = vcmp.eq.s32.totalorder %v7333_v53, 1 }
 0x10f   : > { %10057 = vst [vmem:[#allocation20_spill] sm:$0xff] %v7301_v26  ;;  %v798_v0 = vmax.f32 %v686_v15, 0.0  ;;  %v5585_v1 = vadd.f32 %v5584_v7, %v5583_v57  ;;  %v1276_v57 = vld [vmem:[#allocation2 + $0x28] sm:$0xff] }
 0x110   : > { %v7304_v5 = vld [vmem:[#allocation2 + $0x29] sm:$0xff]  ;;  %v5586_v25 = vpop.f32.mrf.mxu0 }
 0x111   : > { %v1277_v16 = vld [vmem:[#allocation2 + $0x30] sm:$0xff]  ;;  %5884 = vmatpush3.bf16.msra.mxu1 %v6315_v8  ;;  %v7309_v36 = vsel %vm9899_vm9, %v7304_v5, 0.0  ;;  %837 = vst.msk [vmem:[#allocation2 + $0x40] sm:$0xff] %vm825_vm8, %v798_v0  ;;  %v691_v12 = vadd.f32 %v5585_v1, %v7211_v51  ;;  %v7316_v15 = vsel %vm2087_vm2, %v7304_v5, 0.0  ;;  %v6317_v8 = vld [vmem:[%s9873_s4] sm:$0xff]   ;;  %v2471_v0 = vsel %vm1186_vm14, %v2439_v60, 0.0 }
 0x112   : > { %v2440_v3 = vld [vmem:[#allocation2 + $0x2f] sm:$0xff]  ;;  %10058 = vst [vmem:[#allocation21_spill] sm:$0xff] %v7309_v36  ;;  %10059 = vst [vmem:[#allocation22_spill] sm:$0xff] %v7316_v15  ;;  %5885 = vmatprep.subr.bf16.mxu1 %v6316_v59  ;;  %v5587_v7 = vpop.f32.mrf.mxu0  ;;  %v7322_v61 = vpack.c.bf16 %v1277_v16, %v1276_v57  ;;  %vm1193_vm9 = vcmp.eq.s32.totalorder %v7160_v29, 1  ;;  %v3147_v52 = vsel %vm2085_vm11, %v7304_v5, 0.0 }
 0x113   : > { %v2472_v1 = vsel %vm1187_vm12, %v2440_v3, 0.0  ;;  %v7330_v20 = vsel %vm1189_vm1, %v2440_v3, 0.0  ;;  %v799_v56 = vmax.f32 %v691_v12, 0.0  ;;  %v5588_v22 = vadd.f32 %v5587_v7, %v5586_v25  ;;  %v6311_v16 = vld [vmem:[%s9873_s4 + $0xb0] sm:$0xff]   ;;  %v6320_v7 = vld [vmem:[%s9873_s4 + $0x58] sm:$0xff]   ;;  %v7364_v3 = vpop.permute.xlu1 %2009 }
 0x114   : > { %10060 = vst [vmem:[#allocation23_spill] sm:$0xff] %v7322_v61  ;;  %10061 = vst [vmem:[#allocation24_spill] sm:$0xff] %v7330_v20  ;;  %v2502_v6 = vpack.c.bf16 %v2472_v1, %v2471_v0  ;;  %v7338_v57 = vld [vmem:[#allocation2 + $0x31] sm:$0xff]  ;;  %5853 = vmatprep.mubr.msk.bf16.mxu1 %vm825_vm8, %v7322_v61  ;;  %v5589_v60 = vpop.f32.mrf.mxu0  ;;  %vm9912_vm13 = vcmp.eq.s32.totalorder %v7364_v3, 1 }
 0x115   : > { %v2441_v54 = vld [vmem:[#allocation2 + $0x37] sm:$0xff]  ;;  %5886 = vmatpush3.bf16.msra.mxu1 %v6316_v59  ;;  %838 = vst.msk [vmem:[#allocation2 + $0x48] sm:$0xff] %vm825_vm8, %v799_v56  ;;  %v694_v12 = vadd.f32 %v5588_v22, %v7211_v51  ;;  %v7349_v25 = vsel %vm9932_vm3, %v7338_v57, 0.0  ;;  %v6312_v59 = vld [vmem:[%s9873_s4 + $0xa8] sm:$0xff]  }
 0x116   : > { %10062 = vst [vmem:[#allocation25_spill] sm:$0xff] %v7349_v25  ;;  %5970 = vmatmul.mubr.msk.bf16.vlgmr.msra.gmra.mxu0 %vm825_vm8, %v2502_v6  ;;  %5887 = vmatprep.subr.bf16.mxu1 %v6317_v8  ;;  %v5590_v0 = vpop.f32.mrf.mxu0  ;;  %v7361_v22 = vsel %vm1190_vm4, %v2441_v54, 0.0  ;;  %v4144_v56 = vld [vmem:[#allocation2 + $0x31] sm:$0xff] }
 0x117   : > { %6042 = vmatpush3.bf16.msra.mxu0 %v7147_v14  ;;  %10063 = vst [vmem:[#allocation26_spill] sm:$0xff] %v7361_v22  ;;  %v800_v6 = vmax.f32 %v694_v12, 0.0  ;;  %v5591_v1 = vadd.f32 %v5590_v0, %v5589_v60  ;;  %v1278_v61 = vld [vmem:[#allocation2 + $0x38] sm:$0xff]  ;;  %v7382_v48 = vsel %vm9909_vm7, %v4144_v56, 0.0  ;;  %vm1195_vm7 = vcmp.eq.s32.totalorder %v7164_v30, 1 }
 0x118   : > { %6043 = vmatprep.subr.bf16.mxu0 %v6311_v16  ;;  %v7369_v15 = vld [vmem:[#allocation2 + $0x39] sm:$0xff]  ;;  %v5592_v14 = vpop.f32.mrf.mxu0  ;;  %10066 = vst [vmem:[#allocation29_spill] sm:$0xff] %v7382_v48 }
 0x119   : > { %v1279_v25 = vld [vmem:[#allocation2 + $0x40] sm:$0xff]  ;;  %5888 = vmatpush3.bf16.msra.mxu1 %v6317_v8  ;;  %839 = vst.msk [vmem:[#allocation2 + $0x50] sm:$0xff] %vm825_vm8, %v800_v6  ;;  %v699_v20 = vadd.f32 %v5591_v1, %v7211_v51  ;;  %v7376_v60 = vsel %vm2089_vm5, %v7369_v15, 0.0  ;;  %v2473_v8 = vsel %vm1188_vm15, %v2441_v54, 0.0  ;;  %v7396_v1 = vpop.permute.xlu0 %2012 }
 0x11a   : > { %v2442_v26 = vld [vmem:[#allocation2 + $0x3f] sm:$0xff]  ;;  %10064 = vst [vmem:[#allocation27_spill] sm:$0xff] %v7376_v60  ;;  %v7378_v12 = vpack.c.bf16 %v1279_v25, %v1278_v61  ;;  %5921 = vmatprep.subr.bf16.mxu1 %v6320_v7  ;;  %v5593_v2 = vpop.f32.mrf.mxu0 }
 0x11b   : > { %v3470_v0 = vld [vmem:[#allocation2 + $0x3f] sm:$0xff]  ;;  %v2474_v6 = vsel %vm1189_vm1, %v2442_v26, 0.0  ;;  %6044 = vmatpush3.bf16.msra.mxu0 %v6311_v16  ;;  %v7391_v61 = vsel %vm1191_vm6, %v2442_v26, 0.0  ;;  %v801_v25 = vmax.f32 %v699_v20, 0.0  ;;  %v5594_v7 = vadd.f32 %v5593_v2, %v5592_v14  ;;  %v3469_v16 = vld [vmem:[#allocation2 + $0x37] sm:$0xff] }
 0x11c   : > { %10065 = vst [vmem:[#allocation28_spill] sm:$0xff] %v7378_v12  ;;  %10067 = vst [vmem:[#allocation30_spill] sm:$0xff] %v7391_v61  ;;  %5854 = vmatmul.mubr.msk.bf16.gmra.mxu1 %vm825_vm8, %v7378_v12  ;;  %v2503_v56 = vpack.c.bf16 %v2474_v6, %v2473_v8  ;;  %6045 = vmatprep.subr.bf16.mxu0 %v6312_v59  ;;  %v6313_v54 = vld [vmem:[%s9873_s4 + $0xa0] sm:$0xff]   ;;  %v5595_v26 = vpop.f32.mrf.mxu0  ;;  %v7407_v2 = vsel %vm1187_vm12, %v3470_v0, 0.0  ;;  %vm9906_vm12 = vcmp.eq.s32.totalorder %v7396_v1, 1  ;;  %v1280_v36 = vld [vmem:[#allocation2 + $0x48] sm:$0xff] }
 0x11d   : > { %v7401_v11 = vld [vmem:[#allocation2 + $0x41] sm:$0xff]  ;;  %10068 = vst [vmem:[#allocation31_spill] sm:$0xff] %v7407_v2  ;;  %840 = vst.msk [vmem:[#allocation2 + $0x58] sm:$0xff] %vm825_vm8, %v801_v25  ;;  %v702_v8 = vadd.f32 %v5594_v7, %v7211_v51  ;;  %v7428_v25 = vsel %vm1186_vm14, %v3469_v16, 0.0  ;;  %v7463_v22 = vpop.permute.xlu0 %2018 }
 0x11e   : > { %v2443_v9 = vld [vmem:[#allocation2 + $0x47] sm:$0xff]  ;;  %v7416_v6 = vsel %vm9912_vm13, %v7401_v11, 0.0  ;;  %5973 = vmatprep.mubr.msk.bf16.mxu0 %vm825_vm8, %v2503_v56  ;;  %v5596_v13 = vpop.f32.mrf.mxu0  ;;  %10071 = vst [vmem:[#allocation34_spill] sm:$0xff] %v7428_v25  ;;  %v7431_v56 = vpop.permute.xlu1 %2015  ;;  %vm1196_vm13 = vcmp.eq.s32.totalorder %v7166_v32, 1 }
 0x11f   : > { %10069 = vst [vmem:[#allocation32_spill] sm:$0xff] %v7416_v6  ;;  %6046 = vmatpush3.bf16.msra.mxu0 %v6312_v59  ;;  %v7424_v0 = vsel %vm1192_vm10, %v2443_v9, 0.0  ;;  %v802_v7 = vmax.f32 %v702_v8, 0.0  ;;  %v5597_v14 = vadd.f32 %v5596_v13, %v5595_v26  ;;  %v7436_v59 = vld [vmem:[%s9873_s4 + $0xf8] sm:$0xff]   ;;  %vm9920_vm14 = vcmp.eq.s32.totalorder %v7431_v56, 1 }
 0x120   : > { %10070 = vst [vmem:[#allocation33_spill] sm:$0xff] %v7424_v0  ;;  %6047 = vmatprep.subr.bf16.mxu0 %v6313_v54  ;;  %v7440_v48 = vld [vmem:[#allocation2 + $0x49] sm:$0xff]  ;;  %v5598_v10 = vpop.f32.mrf.mxu0  ;;  %v2475_v20 = vsel %vm1190_vm4, %v2443_v9, 0.0 }
 0x121   : > { %v1281_v16 = vld [vmem:[#allocation2 + $0x50] sm:$0xff]  ;;  %841 = vst.msk [vmem:[#allocation2 + $0x60] sm:$0xff] %vm825_vm8, %v802_v7  ;;  %v707_v26 = vadd.f32 %v5597_v14, %v7211_v51  ;;  %v7447_v8 = vsel %vm9906_vm12, %v7440_v48, 0.0  ;;  %v4146_v7 = vld [vmem:[#allocation2 + $0x41] sm:$0xff]  ;;  %vm1194_vm12 = vcmp.eq.s32.totalorder %v7162_v28, 1 }
 0x122   : > { %v2444_v60 = vld [vmem:[#allocation2 + $0x4f] sm:$0xff]  ;;  %10072 = vst [vmem:[#allocation35_spill] sm:$0xff] %v7447_v8  ;;  %v7449_v13 = vpack.c.bf16 %v1281_v16, %v1280_v36  ;;  %v5599_v12 = vpop.f32.mrf.mxu0  ;;  %v3471_v9 = vld [vmem:[#allocation2 + $0x47] sm:$0xff]  ;;  %v7488_v17 = vsel %vm2086_vm0, %v4146_v7, 0.0 }
 0x123   : > { %v3472_v6 = vld [vmem:[#allocation2 + $0x4f] sm:$0xff]  ;;  %v2476_v25 = vsel %vm1191_vm6, %v2444_v60, 0.0  ;;  %6048 = vmatpush3.bf16.msra.mxu0 %v6313_v54  ;;  %v7458_v14 = vsel %vm1193_vm9, %v2444_v60, 0.0  ;;  %v803_v36 = vmax.f32 %v707_v26, 0.0  ;;  %v5600_v16 = vadd.f32 %v5599_v12, %v5598_v10  ;;  %v4145_v10 = vld [vmem:[#allocation2 + $0x39] sm:$0xff]  ;;  %v7484_v26 = vpop.permute.xlu1 %2021  ;;  %10077 = vst [vmem:[#allocation40_spill] sm:$0xff] %v7488_v17 }
 0x124   : > { %10073 = vst [vmem:[#allocation36_spill] sm:$0xff] %v7449_v13  ;;  %10074 = vst [vmem:[#allocation37_spill] sm:$0xff] %v7458_v14  ;;  %5857 = vmatprep.mubr.msk.bf16.mxu1 %vm825_vm8, %v7449_v13  ;;  %v2504_v2 = vpack.c.bf16 %v2476_v25, %v2475_v20  ;;  %6121 = vmatprep.subr.bf16.mxu0 %v7436_v59  ;;  %v7467_v54 = vld [vmem:[#allocation2 + $0x51] sm:$0xff]  ;;  %v5601_v60 = vpop.f32.mrf.mxu0  ;;  %v7473_v12 = vsel %vm1189_vm1, %v3472_v6, 0.0  ;;  %vm9930_vm1 = vcmp.eq.s32.totalorder %v7463_v22, 1  ;;  %v7505_v6 = vsel %vm2085_vm11, %v4145_v10, 0.0 }
 0x125   : > { %v2445_v61 = vld [vmem:[#allocation2 + $0x57] sm:$0xff]  ;;  %10075 = vst [vmem:[#allocation38_spill] sm:$0xff] %v7473_v12  ;;  %842 = vst.msk [vmem:[#allocation2 + $0x68] sm:$0xff] %vm825_vm8, %v803_v36  ;;  %v710_v20 = vadd.f32 %v5600_v16, %v7211_v51  ;;  %v7481_v25 = vsel %vm9920_vm14, %v7467_v54, 0.0  ;;  %v4147_v8 = vld [vmem:[#allocation2 + $0x49] sm:$0xff]  ;;  %vm9929_vm14 = vcmp.eq.s32.totalorder %v7484_v26, 1 }
 0x126   : > { %10076 = vst [vmem:[#allocation39_spill] sm:$0xff] %v7481_v25  ;;  %5974 = vmatmul.mubr.msk.bf16.gmra.mxu0 %vm825_vm8, %v2504_v2  ;;  %v3473_v49 = vld [vmem:[#allocation2 + $0x57] sm:$0xff]  ;;  %v5602_v36 = vpop.f32.mrf.mxu0  ;;  %v7495_v16 = vsel %vm1194_vm12, %v2445_v61, 0.0  ;;  %v7499_v2 = vsel %vm1188_vm15, %v3471_v9, 0.0  ;;  %10079 = vst [vmem:[#allocation42_spill] sm:$0xff] %v7505_v6  ;;  %v7547_v6 = vpop.permute.xlu0 %2024  ;;  %vm1197_vm15 = vcmp.eq.s32.totalorder %v7168_v34, 1 }
 0x127   : > { %10078 = vst [vmem:[#allocation41_spill] sm:$0xff] %v7499_v2  ;;  %v4148_v13 = vld [vmem:[#allocation2 + $0x51] sm:$0xff]  ;;  %v804_v0 = vmax.f32 %v710_v20, 0.0  ;;  %v5603_v14 = vadd.f32 %v5602_v36, %v5601_v60  ;;  %v2477_v20 = vsel %vm1192_vm10, %v2445_v61, 0.0  ;;  %v7514_v60 = vsel %vm1190_vm4, %v3473_v49, 0.0 }
 0x128   : > { %v1282_v21 = vld [vmem:[#allocation2 + $0x58] sm:$0xff]  ;;  %v5604_v43 = vpop.f32.mrf.mxu0  ;;  %v1283_v18 = vld [vmem:[#allocation2 + $0x60] sm:$0xff]  ;;  %10080 = vst [vmem:[#allocation43_spill] sm:$0xff] %v7514_v60  ;;  %v7529_v24 = vsel %vm9932_vm3, %v4148_v13, 0.0  ;;  %vm2095_vm4 = vcmp.eq.s32.totalorder %v7547_v6, 1  ;;  %vm10098_vm11 = vcmp.eq.s32.totalorder %v7431_v56, 1 }
 0x129   : > { %v7507_v25 = vld [vmem:[#allocation2 + $0x59] sm:$0xff]  ;;  %843 = vst.msk [vmem:[#allocation2 + $0x70] sm:$0xff] %vm825_vm8, %v804_v0  ;;  %v715_v10 = vadd.f32 %v5603_v14, %v7211_v51  ;;  %v7525_v2 = vpack.c.bf16 %v1283_v18, %v1282_v21  ;;  %10083 = vst [vmem:[#allocation46_spill] sm:$0xff] %v7529_v24  ;;  %v7543_v21 = vsel %vm2087_vm2, %v4147_v8, 0.0 }
 0x12a   : > { %v2446_v9 = vld [vmem:[#allocation2 + $0x5f] sm:$0xff]  ;;  %v7523_v7 = vsel %vm9930_vm1, %v7507_v25, 0.0  ;;  %v5605_v49 = vpop.f32.mrf.mxu0  ;;  %10085 = vst [vmem:[#allocation48_spill] sm:$0xff] %v7543_v21  ;;  %vm10091_vm1 = vcmp.eq.s32.totalorder %v7220_v4, 1 }
 0x12b   : > { %10081 = vst [vmem:[#allocation44_spill] sm:$0xff] %v7523_v7  ;;  %10082 = vst [vmem:[#allocation45_spill] sm:$0xff] %v7525_v2  ;;  %v3474_v12 = vld [vmem:[#allocation2 + $0x5f] sm:$0xff]  ;;  %v2478_v61 = vsel %vm1193_vm9, %v2446_v9, 0.0  ;;  %v7535_v0 = vsel %vm1195_vm7, %v2446_v9, 0.0  ;;  %v805_v18 = vmax.f32 %v715_v10, 0.0  ;;  %v5606_v36 = vadd.f32 %v5605_v49, %v5604_v43  ;;  %5858 = vmatmul.mubr.msk.bf16.gmra.mxu1 %vm825_vm8, %v7525_v2  ;;  %v7565_v49 = vpop.permute.xlu1 %2027  ;;  %v7607_v7 = vpop.permute.xlu0 %2030 }
 0x12c   : > { %v7539_v14 = vsel %vm1191_vm6, %v3474_v12, 0.0  ;;  %v2505_v13 = vpack.c.bf16 %v2478_v61, %v2477_v20  ;;  %v7551_v17 = vld [vmem:[#allocation2 + $0x61] sm:$0xff]  ;;  %v5607_v19 = vpop.f32.mrf.mxu0  ;;  %v4149_v43 = vld [vmem:[#allocation2 + $0x59] sm:$0xff]  ;;  %vm10088_vm6 = vcmp.eq.s32.totalorder %v7364_v3, 1  ;;  %vm2096_vm3 = vcmp.eq.s32.totalorder %v7565_v49, 1 }
 0x12d   : > { %10084 = vst [vmem:[#allocation47_spill] sm:$0xff] %v7539_v14  ;;  %v2447_v12 = vld [vmem:[#allocation2 + $0x67] sm:$0xff]  ;;  %844 = vst.msk [vmem:[#allocation2 + $0x78] sm:$0xff] %vm825_vm8, %v805_v18  ;;  %v718_v20 = vadd.f32 %v5606_v36, %v7211_v51  ;;  %v7562_v10 = vsel %vm9929_vm14, %v7551_v17, 0.0  ;;  %vm10090_vm14 = vcmp.eq.s32.totalorder %v7222_v58, 1  ;;  %v3145_v14 = vsel %vm10091_vm1, %v7249_v63, 0.0 }
 0x12e   : > { %10086 = vst [vmem:[#allocation49_spill] sm:$0xff] %v7562_v10  ;;  %5977 = vmatprep.mubr.msk.bf16.mxu0 %vm825_vm8, %v2505_v13  ;;  %v4150_v61 = vld [vmem:[#allocation2 + $0x61] sm:$0xff]  ;;  %v5608_v45 = vpop.f32.mrf.mxu0  ;;  %v7573_v36 = vsel %vm1196_vm13, %v2447_v12, 0.0  ;;  %v7577_v13 = vsel %vm2089_vm5, %v4149_v43, 0.0  ;;  %v3146_v8 = vsel %vm10090_vm14, %v7278_v55, 0.0  ;;  %v2479_v63 = vsel %vm1194_vm12, %v2447_v12, 0.0 }
 0x12f   : > { %v806_v18 = vmax.f32 %v718_v20, 0.0  ;;  %v5609_v9 = vadd.f32 %v5608_v45, %v5607_v19  ;;  %v1284_v21 = vld [vmem:[#allocation2 + $0x68] sm:$0xff]  ;;  %10087 = vst [vmem:[#allocation50_spill] sm:$0xff] %v7577_v13  ;;  %v7581_v60 = vsel %vm10088_vm6, %v4150_v61, 0.0  ;;  %vm1199_vm14 = vcmp.eq.s32.totalorder %v7172_v33, 1 }
 0x130   : > { %v3475_v24 = vld [vmem:[#allocation2 + $0x67] sm:$0xff]  ;;  %10089 = vst [vmem:[#allocation51_spill] sm:$0xff] %v7581_v60  ;;  %v5610_v45 = vpop.f32.mrf.mxu0  ;;  %v1285_v19 = vld [vmem:[#allocation2 + $0x70] sm:$0xff]  ;;  %vm1198_vm1 = vcmp.eq.s32.totalorder %v7170_v27, 1  ;;  %v3177_v23 = vpack.c.bf16 %v3146_v8, %v3145_v14  ;;  %v7643_v8 = vpop.permute.xlu1 %2033  ;;  %v3151_v3 = vsel %vm2089_vm5, %v7440_v48, 0.0  ;;  %vm10106_vm5 = vcmp.eq.s32.totalorder %v7463_v22, 1 }
 0x131   : > { %v7589_v20 = vld [vmem:[#allocation2 + $0x69] sm:$0xff]  ;;  %845 = vst.msk [vmem:[#allocation2 + $0x80] sm:$0xff] %vm825_vm8, %v806_v18  ;;  %v723_v61 = vadd.f32 %v5609_v9, %v7211_v51  ;;  %v7601_v4 = vpack.c.bf16 %v1285_v19, %v1284_v21  ;;  %v7615_v18 = vsel %vm1192_vm10, %v3475_v24, 0.0  ;;  %vm10096_vm10 = vcmp.eq.s32.totalorder %v7396_v1, 1 }
 0x132   : > { %v2448_v43 = vld [vmem:[#allocation2 + $0x6f] sm:$0xff]  ;;  %v7599_v58 = vsel %vm2095_vm4, %v7589_v20, 0.0  ;;  %v5611_v10 = vpop.f32.mrf.mxu0  ;;  %10092 = vst [vmem:[#allocation52_spill] sm:$0xff] %v7615_v18 }
 0x133   : > { %v3476_v55 = vld [vmem:[#allocation2 + $0x6f] sm:$0xff]  ;;  %v2480_v2 = vsel %vm1195_vm7, %v2448_v43, 0.0  ;;  %v7611_v9 = vsel %vm1197_vm15, %v2448_v43, 0.0  ;;  %v807_v12 = vmax.f32 %v723_v61, 0.0  ;;  %v5612_v19 = vadd.f32 %v5611_v10, %v5610_v45  ;;  %5861 = vmatprep.mubr.msk.bf16.mxu1 %vm825_vm8, %v7601_v4 }
 0x134   : > { %v7619_v21 = vsel %vm1193_vm9, %v3476_v55, 0.0  ;;  %v2506_v13 = vpack.c.bf16 %v2480_v2, %v2479_v63  ;;  %v7627_v24 = vld [vmem:[#allocation2 + $0x71] sm:$0xff]  ;;  %v5613_v43 = vpop.f32.mrf.mxu0  ;;  %v4151_v10 = vld [vmem:[#allocation2 + $0x69] sm:$0xff]  ;;  %v3148_v2 = vsel %vm2086_vm0, %v7338_v57, 0.0  ;;  %vm2097_vm9 = vcmp.eq.s32.totalorder %v7607_v7, 1 }
 0x135   : > { %10093 = vst [vmem:[#allocation53_spill] sm:$0xff] %v7619_v21  ;;  %v910_v29 = vld [vmem:[#allocation2 + $0x77] sm:$0xff]  ;;  %846 = vst.msk [vmem:[#allocation2 + $0x88] sm:$0xff] %vm825_vm8, %v807_v12  ;;  %v726_v45 = vadd.f32 %v5612_v19, %v7211_v51  ;;  %v7639_v14 = vsel %vm2096_vm3, %v7627_v24, 0.0  ;;  %v7661_v31 = vsel %vm10096_vm10, %v4151_v10, 0.0  ;;  %v3149_v57 = vsel %vm2087_vm2, %v7369_v15, 0.0 }
 0x136   : > { %5978 = vmatmul.mubr.msk.bf16.gmra.mxu0 %vm825_vm8, %v2506_v13  ;;  %v4152_v63 = vld [vmem:[#allocation2 + $0x71] sm:$0xff]  ;;  %v5614_v55 = vpop.f32.mrf.mxu0  ;;  %v7653_v12 = vsel %vm1196_vm13, %v910_v29, 0.0  ;;  %v7657_v13 = vsel %vm1194_vm12, %v910_v29, 0.0  ;;  %10097 = vst [vmem:[#allocation56_spill] sm:$0xff] %v7661_v31  ;;  %vm2098_vm0 = vcmp.eq.s32.totalorder %v7643_v8, 1  ;;  %vm10100_vm12 = vcmp.eq.s32.totalorder %v7297_v62, 1 }
 0x137   : > { %6049 = vmatprep.mubr.msk.bf16.mxu0 %vm825_vm8, %v3177_v23  ;;  %10094 = vst [vmem:[#allocation54_spill] sm:$0xff] %v7653_v12  ;;  %10095 = vst [vmem:[#allocation55_spill] sm:$0xff] %v7657_v13  ;;  %v808_v19 = vmax.f32 %v726_v45, 0.0  ;;  %v5615_v61 = vadd.f32 %v5614_v55, %v5613_v43  ;;  %v1286_v60 = vld [vmem:[#allocation2 + $0x78] sm:$0xff]  ;;  %v7665_v5 = vsel %vm10098_vm11, %v4152_v63, 0.0  ;;  %v3178_v23 = vpack.c.bf16 %v3148_v2, %v3147_v52  ;;  %v7687_v55 = vpop.permute.xlu0 %2036  ;;  %v6321_v48 = vld [vmem:[%s9873_s4 + $0xe8] sm:$0xff]  }
 0x138   : > { %10099 = vst [vmem:[#allocation57_spill] sm:$0xff] %v7665_v5  ;;  %v7670_v18 = vld [vmem:[#allocation2 + $0x79] sm:$0xff]  ;;  %v5616_v28 = vpop.f32.mrf.mxu0  ;;  %v3150_v63 = vsel %vm10100_vm12, %v7401_v11, 0.0  ;;  %v7691_v10 = vsel %vm1198_vm1, %v910_v29, 0.0  ;;  %v6319_v29 = vld [vmem:[%s9873_s4 + $0xf0] sm:$0xff]   ;;  %vm1201_vm2 = vcmp.eq.s32.totalorder %v7182_v39, 1 }
 0x139   : > { %v1287_v43 = vld [vmem:[#allocation2 + $0x80] sm:$0xff]  ;;  %847 = vst.msk [vmem:[#allocation2 + $0x90] sm:$0xff] %vm825_vm8, %v808_v19  ;;  %v731_v2 = vadd.f32 %v5615_v61, %v7211_v51  ;;  %v7683_v50 = vsel %vm2097_vm9, %v7670_v18, 0.0  ;;  %v3179_v30 = vpack.c.bf16 %v3150_v63, %v3149_v57  ;;  %vm2099_vm10 = vcmp.eq.s32.totalorder %v7687_v55, 1  ;;  %v7732_v63 = vpop.permute.xlu1 %2039 }
 0x13a   : > { %v911_v45 = vld [vmem:[#allocation2 + $0x7f] sm:$0xff]  ;;  %10101 = vst [vmem:[#allocation58_spill] sm:$0xff] %v7683_v50  ;;  %v7685_v15 = vpack.c.bf16 %v1287_v43, %v1286_v60  ;;  %v5617_v52 = vpop.f32.mrf.mxu0  ;;  %v3152_v43 = vsel %vm10088_vm6, %v7467_v54, 0.0  ;;  %vm10108_vm11 = vcmp.eq.s32.totalorder %v7484_v26, 1  ;;  %vm2100_vm12 = vcmp.eq.s32.totalorder %v7732_v63, 1 }
 0x13b   : > { %v7695_v11 = vsel %vm1199_vm14, %v911_v45, 0.0  ;;  %v7699_v62 = vsel %vm1197_vm15, %v911_v45, 0.0  ;;  %v7703_v61 = vsel %vm1195_vm7, %v911_v45, 0.0  ;;  %v809_v60 = vmax.f32 %v731_v2, 0.0  ;;  %v4153_v5 = vld [vmem:[#allocation2 + $0x79] sm:$0xff]  ;;  %v7780_v12 = vpop.permute.xlu0 %2042 }
 0x13c   : > { %10102 = vst [vmem:[#allocation59_spill] sm:$0xff] %v7699_v62  ;;  %10103 = vst [vmem:[#allocation60_spill] sm:$0xff] %v7703_v61  ;;  %v5618_v19 = vadd.f32 %v5617_v52, %v5616_v28  ;;  %5862 = vmatmul.mubr.msk.bf16.gmra.mxu1 %vm825_vm8, %v7685_v15  ;;  %vm1200_vm7 = vcmp.eq.s32.totalorder %v7180_v38, 1  ;;  %v7716_v45 = vld [vmem:[#allocation2 + $0x81] sm:$0xff]  ;;  %v5619_v28 = vpop.f32.mrf.mxu0  ;;  %v3180_v54 = vpack.c.bf16 %v3152_v43, %v3151_v3  ;;  %vm10111_vm6 = vcmp.eq.s32.totalorder %v7431_v56, 1 }
 0x13d   : > { %v912_v2 = vld [vmem:[#allocation2 + $0x87] sm:$0xff]  ;;  %848 = vst.msk [vmem:[#allocation2 + $0x98] sm:$0xff] %vm825_vm8, %v809_v60  ;;  %v7728_v57 = vsel %vm2098_vm0, %v7716_v45, 0.0  ;;  %v7936_v8 = vld [vmem:[%s9872_s3] ss:$0 sm:$0xff] }
 0x13e   : > { %v734_v31 = vadd.f32 %v5618_v19, %v7211_v51  ;;  %6050 = vmatmul.mubr.msk.bf16.vlgmr.msra.gmra.mxu0 %vm825_vm8, %v3178_v23  ;;  %v4154_v52 = vld [vmem:[#allocation2 + $0x81] sm:$0xff]  ;;  %v5620_v60 = vpop.f32.mrf.mxu0  ;;  %v7743_v23 = vsel %vm1198_vm1, %v912_v2, 0.0  ;;  %v7747_v19 = vsel %vm1196_vm13, %v912_v2, 0.0  ;;  %vm10110_vm13 = vcmp.eq.s32.totalorder %v7396_v1, 1 }
 0x13f   : > { %6053 = vmatprep.mubr.msk.bf16.mxu0 %vm825_vm8, %v3179_v30  ;;  %6122 = vmatpush3.bf16.msra.mxu0 %v7436_v59  ;;  %10104 = vst [vmem:[#allocation61_spill] sm:$0xff] %v7743_v23  ;;  %10105 = vst [vmem:[#allocation62_spill] sm:$0xff] %v7747_v19  ;;  %v5621_v61 = vadd.f32 %v5620_v60, %v5619_v28  ;;  %v1288_v53 = vld [vmem:[#allocation2 + $0x88] sm:$0xff]  ;;  %v7754_v30 = vsel %vm10106_vm5, %v4153_v5, 0.0  ;;  %v7758_v59 = vsel %vm10108_vm11, %v4154_v52, 0.0  ;;  %v3153_v32 = vsel %vm10110_vm13, %v7507_v25, 0.0 }
 0x140   : > { %v810_v13 = vmax.f32 %v734_v31, 0.0  ;;  %6123 = vmatprep.subr.bf16.mxu0 %v6319_v29  ;;  %10107 = vst [vmem:[#allocation63_spill] sm:$0xff] %v7754_v30  ;;  %10109 = vst [vmem:[#allocation64_spill] sm:$0xff] %v7758_v59  ;;  %v7763_v31 = vld [vmem:[#allocation2 + $0x89] sm:$0xff]  ;;  %v5622_v28 = vpop.f32.mrf.mxu0  ;;  %v3154_v52 = vsel %vm10111_vm6, %v7551_v17, 0.0  ;;  %v7784_v5 = vsel %vm1200_vm7, %v912_v2, 0.0 }
 0x141   : > { %v1289_v60 = vld [vmem:[#allocation2 + $0x90] sm:$0xff]  ;;  %v739_v43 = vadd.f32 %v5621_v61, %v7211_v51  ;;  %v7776_v1 = vsel %vm2099_vm10, %v7763_v31, 0.0  ;;  %vm1203_vm5 = vcmp.eq.s32.totalorder %v7186_v37, 1  ;;  %v3181_v34 = vpack.c.bf16 %v3154_v52, %v3153_v32  ;;  %v7822_v32 = vpop.permute.xlu1 %2045 }
 0x142   : > { %v913_v21 = vld [vmem:[#allocation2 + $0x8f] sm:$0xff]  ;;  %849 = vst.msk [vmem:[#allocation2 + $0xa0] sm:$0xff] %vm825_vm8, %v810_v13  ;;  %10112 = vst [vmem:[#allocation65_spill] sm:$0xff] %v7776_v1  ;;  %v7778_v25 = vpack.c.bf16 %v1289_v60, %v1288_v53  ;;  %v5623_v3 = vpop.f32.mrf.mxu0  ;;  %v3156_v59 = vsel %vm10108_vm11, %v7627_v24, 0.0  ;;  %vm2101_vm13 = vcmp.eq.s32.totalorder %v7780_v12, 1  ;;  %vm10116_vm6 = vcmp.eq.s32.totalorder %v7463_v22, 1 }
 0x143   : > { %6124 = vmatpush3.bf16.msra.mxu0 %v6319_v29  ;;  %v7788_v56 = vsel %vm1201_vm2, %v913_v21, 0.0  ;;  %v7792_v17 = vsel %vm1199_vm14, %v913_v21, 0.0  ;;  %v7796_v13 = vsel %vm1197_vm15, %v913_v21, 0.0  ;;  %v811_v61 = vmax.f32 %v739_v43, 0.0  ;;  %v6322_v29 = vld [vmem:[%s9873_s4 + $0xe0] sm:$0xff]   ;;  %v4155_v30 = vld [vmem:[#allocation2 + $0x89] sm:$0xff] }
 0x144   : > { %10113 = vst [vmem:[#allocation66_spill] sm:$0xff] %v7792_v17  ;;  %10114 = vst [vmem:[#allocation67_spill] sm:$0xff] %v7796_v13  ;;  %v5624_v53 = vadd.f32 %v5623_v3, %v5622_v28  ;;  %5865 = vmatprep.mubr.msk.bf16.mxu1 %vm825_vm8, %v7778_v25  ;;  %6125 = vmatprep.subr.bf16.mxu0 %v6321_v48  ;;  %vm1202_vm15 = vcmp.eq.s32.totalorder %v7184_v35, 1  ;;  %v3128_v21 = vld [vmem:[#allocation2 + $0x91] sm:$0xff]  ;;  %v5625_v28 = vpop.f32.mrf.mxu0  ;;  %v3155_v26 = vsel %vm10116_vm6, %v7589_v20, 0.0  ;;  %v7840_v22 = vsel %vm2095_vm4, %v4155_v30, 0.0 }
 0x145   : > { %v914_v43 = vld [vmem:[#allocation2 + $0x97] sm:$0xff]  ;;  %850 = vst.msk [vmem:[#allocation2 + $0xa8] sm:$0xff] %vm825_vm8, %v811_v61  ;;  %v7818_v2 = vsel %vm2100_vm12, %v3128_v21, 0.0  ;;  %10119 = vst [vmem:[#allocation71_spill] sm:$0xff] %v7840_v22  ;;  %v3158_v30 = vsel %vm2096_vm3, %v7716_v45, 0.0 }
 0x146   : > { %v742_v60 = vadd.f32 %v5624_v53, %v7211_v51  ;;  %10115 = vst [vmem:[#allocation68_spill] sm:$0xff] %v7818_v2  ;;  %6054 = vmatmul.mubr.msk.bf16.gmra.mxu0 %vm825_vm8, %v3180_v54  ;;  %v4156_v52 = vld [vmem:[#allocation2 + $0x91] sm:$0xff]  ;;  %v5626_v61 = vpop.f32.mrf.mxu0  ;;  %v7832_v53 = vsel %vm1200_vm7, %v914_v43, 0.0  ;;  %v7836_v54 = vsel %vm1198_vm1, %v914_v43, 0.0  ;;  %vm2102_vm1 = vcmp.eq.s32.totalorder %v7822_v32, 1 }
 0x147   : > { %6057 = vmatprep.mubr.msk.bf16.mxu0 %vm825_vm8, %v3181_v34  ;;  %6126 = vmatpush3.bf16.msra.mxu0 %v6321_v48  ;;  %10117 = vst [vmem:[#allocation69_spill] sm:$0xff] %v7832_v53  ;;  %10118 = vst [vmem:[#allocation70_spill] sm:$0xff] %v7836_v54  ;;  %v5627_v19 = vadd.f32 %v5626_v61, %v5625_v28  ;;  %v1290_v13 = vld [vmem:[#allocation2 + $0x98] sm:$0xff]  ;;  %v7844_v20 = vsel %vm2096_vm3, %v4156_v52, 0.0  ;;  %v3182_v48 = vpack.c.bf16 %v3156_v59, %v3155_v26  ;;  %v7863_v26 = vpop.permute.xlu0 %2048 }
 0x148   : > { %v812_v3 = vmax.f32 %v742_v60, 0.0  ;;  %6127 = vmatprep.subr.bf16.mxu0 %v6322_v29  ;;  %10120 = vst [vmem:[#allocation72_spill] sm:$0xff] %v7844_v20  ;;  %v3157_v34 = vsel %vm2095_vm4, %v7670_v18, 0.0  ;;  %v5628_v24 = vpop.f32.mrf.mxu0  ;;  %v7867_v61 = vsel %vm1202_vm15, %v914_v43, 0.0  ;;  %vm1205_vm3 = vcmp.eq.s32.totalorder %v7190_v41, 1  ;;  %v10167_v2 = vld [vmem:[#allocation7_spill] sm:$0xff] }
 0x149   : > { %v3129_v27 = vld [vmem:[#allocation2 + $0x99] sm:$0xff]  ;;  %v747_v59 = vadd.f32 %v5627_v19, %v7211_v51  ;;  %vm1204_vm4 = vcmp.eq.s32.totalorder %v7188_v40, 1  ;;  %v10148_v40 = vld [vmem:[#allocation9_spill] sm:$0xff] }
 0x14a   : > { %v1291_v60 = vld [vmem:[#allocation2 + $0xa0] sm:$0xff]  ;;  %851 = vst.msk [vmem:[#allocation2 + $0xb0] sm:$0xff] %vm825_vm8, %v812_v3  ;;  %v7859_v6 = vsel %vm2101_vm13, %v3129_v27, 0.0  ;;  %v5629_v52 = vpop.f32.mrf.mxu0 }
 0x14b   : > { %v915_v28 = vld [vmem:[#allocation2 + $0x9f] sm:$0xff]  ;;  %10121 = vst [vmem:[#allocation73_spill] sm:$0xff] %v7859_v6  ;;  %v7861_v18 = vpack.c.bf16 %v1291_v60, %v1290_v13  ;;  %6128 = vmatpush3.bf16.msra.mxu0 %v6322_v29  ;;  %v813_v13 = vmax.f32 %v747_v59, 0.0  ;;  %v5630_v3 = vadd.f32 %v5629_v52, %v5628_v24  ;;  %v3183_v60 = vpack.c.bf16 %v3158_v30, %v3157_v34  ;;  %v7901_v34 = vpop.permute.xlu1 %2051 }
 0x14c   : > { %v7871_v49 = vsel %vm1203_vm5, %v915_v28, 0.0  ;;  %v7875_v45 = vsel %vm1201_vm2, %v915_v28, 0.0  ;;  %v7879_v19 = vsel %vm1199_vm14, %v915_v28, 0.0  ;;  %v3130_v22 = vld [vmem:[#allocation2 + $0xa1] sm:$0xff]  ;;  %v5631_v33 = vpop.f32.mrf.mxu0  ;;  %v4157_v59 = vld [vmem:[#allocation2 + $0x99] sm:$0xff]  ;;  %v3160_v52 = vsel %vm2098_vm0, %v3128_v21, 0.0 }
 0x14d   : > { %10122 = vst [vmem:[#allocation74_spill] sm:$0xff] %v7875_v45  ;;  %10123 = vst [vmem:[#allocation75_spill] sm:$0xff] %v7879_v19  ;;  %5866 = vmatmul.mubr.msk.bf16.gmra.mxu1 %vm825_vm8, %v7861_v18  ;;  %v916_v28 = vld [vmem:[#allocation2 + $0xa7] sm:$0xff]  ;;  %v750_v29 = vadd.f32 %v5630_v3, %v7211_v51  ;;  %v7897_v43 = vsel %vm2102_vm1, %v3130_v22, 0.0  ;;  %vm2103_vm14 = vcmp.eq.s32.totalorder %v7863_v26, 1  ;;  %v3159_v24 = vsel %vm2097_vm9, %v7763_v31, 0.0 }
 0x14e   : > { %852 = vst.msk [vmem:[#allocation2 + $0xb8] sm:$0xff] %vm825_vm8, %v813_v13  ;;  %10124 = vst [vmem:[#allocation76_spill] sm:$0xff] %v7897_v43  ;;  %6058 = vmatmul.mubr.msk.bf16.gmra.mxu0 %vm825_vm8, %v3182_v48  ;;  %v4158_v30 = vld [vmem:[#allocation2 + $0xa1] sm:$0xff]  ;;  %v5632_v51 = vpop.f32.mrf.mxu0  ;;  %v7911_v13 = vsel %vm1202_vm15, %v916_v28, 0.0  ;;  %v7915_v48 = vsel %vm1200_vm7, %v916_v28, 0.0  ;;  %v7919_v31 = vsel %vm2097_vm9, %v4157_v59, 0.0 }
 0x14f   : > { %6061 = vmatprep.mubr.msk.bf16.mxu0 %vm825_vm8, %v3183_v60  ;;  %10125 = vst [vmem:[#allocation77_spill] sm:$0xff] %v7911_v13  ;;  %10126 = vst [vmem:[#allocation78_spill] sm:$0xff] %v7915_v48  ;;  %v814_v3 = vmax.f32 %v750_v29, 0.0  ;;  %v5633_v20 = vadd.f32 %v5632_v51, %v5631_v33  ;;  %v1292_v54 = vld [vmem:[#allocation2 + $0xa8] sm:$0xff]  ;;  %v7923_v21 = vsel %vm2098_vm0, %v4158_v30, 0.0  ;;  %v3184_v60 = vpack.c.bf16 %v3160_v52, %v3159_v24  ;;  %v7945_v30 = vpop.permute.xlu0 %2054 }
 0x150   : > { %10127 = vst [vmem:[#allocation79_spill] sm:$0xff] %v7919_v31  ;;  %10128 = vst [vmem:[#allocation80_spill] sm:$0xff] %v7923_v21  ;;  %v3161_v19 = vsel %vm2099_vm10, %v3129_v27, 0.0  ;;  %v5634_v45 = vpop.f32.mrf.mxu0  ;;  %vm2104_vm7 = vcmp.eq.s32.totalorder %v7901_v34, 1  ;;  %v3162_v7 = vsel %vm2100_vm12, %v3130_v22, 0.0  ;;  %v7949_v22 = vsel %vm1204_vm4, %v916_v28, 0.0 }
 0x151   : > { %v3131_v53 = vld [vmem:[#allocation2 + $0xa9] sm:$0xff]  ;;  %853 = vst.msk [vmem:[#allocation2 + $0xc0] sm:$0xff] %vm825_vm8, %v814_v3  ;;  %v755_v27 = vadd.f32 %v7936_v8, %v5633_v20  ;;  %vm1207_vm9 = vcmp.eq.s32.totalorder %v7194_v44, 1  ;;  %v3185_v21 = vpack.c.bf16 %v3162_v7, %v3161_v19  ;;  %vm1206_vm0 = vcmp.eq.s32.totalorder %v7192_v42, 1  ;;  %v7981_v19 = vpop.permute.xlu1 %2057  ;;  %v10158_v42 = vld [vmem:[#allocation11_spill] sm:$0xff] }
 0x152   : > { %v1293_v38 = vld [vmem:[#allocation2 + $0xb0] sm:$0xff]  ;;  %v7941_v24 = vsel %vm2103_vm14, %v3131_v53, 0.0  ;;  %v5635_v52 = vpop.f32.mrf.mxu0 }
 0x153   : > { %v917_v29 = vld [vmem:[#allocation2 + $0xaf] sm:$0xff]  ;;  %10129 = vst [vmem:[#allocation81_spill] sm:$0xff] %v7941_v24  ;;  %v7943_v59 = vpack.c.bf16 %v1293_v38, %v1292_v54  ;;  %v815_v54 = vmax.f32 %v755_v27, 0.0  ;;  %v5636_v38 = vadd.f32 %v5635_v52, %v5634_v45 }
 0x154   : > { %v7953_v51 = vsel %vm1205_vm3, %v917_v29, 0.0  ;;  %v7957_v20 = vsel %vm1203_vm5, %v917_v29, 0.0  ;;  %v7961_v3 = vsel %vm1201_vm2, %v917_v29, 0.0  ;;  %v4159_v31 = vld [vmem:[#allocation2 + $0xa9] sm:$0xff]  ;;  %v5637_v17 = vpop.f32.mrf.mxu0  ;;  %vm2105_vm2 = vcmp.eq.s32.totalorder %v7945_v30, 1 }
 0x155   : > { %10130 = vst [vmem:[#allocation82_spill] sm:$0xff] %v7957_v20  ;;  %10131 = vst [vmem:[#allocation83_spill] sm:$0xff] %v7961_v3  ;;  %5869 = vmatprep.mubr.msk.bf16.mxu1 %vm825_vm8, %v7943_v59  ;;  %v3132_v23 = vld [vmem:[#allocation2 + $0xb1] sm:$0xff]  ;;  %v758_v45 = vadd.f32 %v7936_v8, %v5636_v38  ;;  %v3163_v3 = vsel %vm2101_vm13, %v3131_v53, 0.0  ;;  %v8017_v53 = vpop.permute.xlu0 %2060 }
 0x156   : > { %v918_v39 = vld [vmem:[#allocation2 + $0xb7] sm:$0xff]  ;;  %854 = vst.msk [vmem:[#allocation2 + $0xc8] sm:$0xff] %vm825_vm8, %v815_v54  ;;  %v7977_v27 = vsel %vm2104_vm7, %v3132_v23, 0.0  ;;  %6062 = vmatmul.mubr.msk.bf16.gmra.mxu0 %vm825_vm8, %v3184_v60  ;;  %v5638_v29 = vpop.f32.mrf.mxu0  ;;  %v7996_v60 = vsel %vm2099_vm10, %v4159_v31, 0.0  ;;  %v3164_v33 = vsel %vm2102_vm1, %v3132_v23, 0.0  ;;  %vm1209_vm10 = vcmp.eq.s32.totalorder %v7198_v47, 1 }
 0x157   : > { %10132 = vst [vmem:[#allocation84_spill] sm:$0xff] %v7977_v27  ;;  %v4160_v7 = vld [vmem:[#allocation2 + $0xb1] sm:$0xff]  ;;  %6065 = vmatprep.mubr.msk.bf16.mxu0 %vm825_vm8, %v3185_v21  ;;  %v7988_v54 = vsel %vm1204_vm4, %v918_v39, 0.0  ;;  %v7992_v38 = vsel %vm1202_vm15, %v918_v39, 0.0  ;;  %10135 = vst [vmem:[#allocation87_spill] sm:$0xff] %v7996_v60  ;;  %v816_v28 = vmax.f32 %v758_v45, 0.0  ;;  %v5639_v52 = vadd.f32 %v5638_v29, %v5637_v17 }
 0x158   : > { %10133 = vst [vmem:[#allocation85_spill] sm:$0xff] %v7988_v54  ;;  %10134 = vst [vmem:[#allocation86_spill] sm:$0xff] %v7992_v38  ;;  %v1294_v48 = vld [vmem:[#allocation2 + $0xb8] sm:$0xff]  ;;  %v8002_v21 = vsel %vm2100_vm12, %v4160_v7, 0.0  ;;  %v5640_v13 = vpop.f32.mrf.mxu0  ;;  %vm2106_vm15 = vcmp.eq.s32.totalorder %v7981_v19, 1  ;;  %v1295_v55 = vld [vmem:[#allocation2 + $0xc0] sm:$0xff]  ;;  %v3186_v45 = vpack.c.bf16 %v3164_v33, %v3163_v3 }
 0x159   : > { %10136 = vst [vmem:[#allocation88_spill] sm:$0xff] %v8002_v21  ;;  %v3133_v35 = vld [vmem:[#allocation2 + $0xb9] sm:$0xff]  ;;  %855 = vst.msk [vmem:[#allocation2 + $0xd0] sm:$0xff] %vm825_vm8, %v816_v28  ;;  %v763_v23 = vadd.f32 %v7936_v8, %v5639_v52  ;;  %v8015_v17 = vpack.c.bf16 %v1295_v55, %v1294_v48  ;;  %v8021_v29 = vsel %vm1206_vm0, %v918_v39, 0.0  ;;  %vm1208_vm12 = vcmp.eq.s32.totalorder %v7196_v46, 1 }
 0x15a   : > { %v919_v31 = vld [vmem:[#allocation2 + $0xbf] sm:$0xff]  ;;  %v8013_v63 = vsel %vm2105_vm2, %v3133_v35, 0.0  ;;  %v5641_v7 = vpop.f32.mrf.mxu0 }
 0x15b   : > { %10137 = vst [vmem:[#allocation89_spill] sm:$0xff] %v8013_v63  ;;  %v8025_v20 = vsel %vm1207_vm9, %v919_v31, 0.0  ;;  %v8029_v28 = vsel %vm1205_vm3, %v919_v31, 0.0  ;;  %v8033_v48 = vsel %vm1203_vm5, %v919_v31, 0.0  ;;  %v817_v52 = vmax.f32 %v763_v23, 0.0  ;;  %5870 = vmatmul.mubr.msk.bf16.gmra.mxu1 %vm825_vm8, %v8015_v17  ;;  %v4161_v31 = vld [vmem:[#allocation2 + $0xb9] sm:$0xff] }
 0x15c   : > { %10138 = vst [vmem:[#allocation90_spill] sm:$0xff] %v8029_v28  ;;  %10139 = vst [vmem:[#allocation91_spill] sm:$0xff] %v8033_v48  ;;  %v5642_v55 = vadd.f32 %v5641_v7, %v5640_v13  ;;  %v5643_v60 = vpop.f32.mrf.mxu0  ;;  %vm2107_vm5 = vcmp.eq.s32.totalorder %v8017_v53, 1  ;;  %v3165_v23 = vsel %vm2103_vm14, %v3133_v35, 0.0  ;;  %v8059_v35 = vpop.permute.xlu1 %2063 }
 0x15d   : > { %v3134_v39 = vld [vmem:[#allocation2 + $0xc1] sm:$0xff]  ;;  %856 = vst.msk [vmem:[#allocation2 + $0xd8] sm:$0xff] %vm825_vm8, %v817_v52  ;;  %vm2108_vm11 = vcmp.eq.s32.totalorder %v8059_v35, 1 }
 0x15e   : > { %v920_v37 = vld [vmem:[#allocation2 + $0xc7] sm:$0xff]  ;;  %v3166_v7 = vsel %vm2104_vm7, %v3134_v39, 0.0  ;;  %v766_v3 = vadd.f32 %v7936_v8, %v5642_v55  ;;  %v8054_v33 = vsel %vm2106_vm15, %v3134_v39, 0.0  ;;  %6066 = vmatmul.mubr.msk.bf16.gmra.mxu0 %vm825_vm8, %v3186_v45  ;;  %v5644_v38 = vpop.f32.mrf.mxu0  ;;  %v8071_v45 = vsel %vm2101_vm13, %v4161_v31, 0.0 }
 0x15f   : > { %10140 = vst [vmem:[#allocation92_spill] sm:$0xff] %v8054_v33  ;;  %v4162_v21 = vld [vmem:[#allocation2 + $0xc1] sm:$0xff]  ;;  %v3187_v54 = vpack.c.bf16 %v3166_v7, %v3165_v23  ;;  %v8063_v48 = vsel %vm1206_vm0, %v920_v37, 0.0  ;;  %v8067_v52 = vsel %vm1204_vm4, %v920_v37, 0.0  ;;  %v5645_v39 = vadd.f32 %v5644_v38, %v5643_v60  ;;  %10143 = vst [vmem:[#allocation95_spill] sm:$0xff] %v8071_v45  ;;  %v8089_v60 = vpop.permute.xlu0 %2066 }
 0x160   : > { %10141 = vst [vmem:[#allocation93_spill] sm:$0xff] %v8063_v48  ;;  %10142 = vst [vmem:[#allocation94_spill] sm:$0xff] %v8067_v52  ;;  %v818_v55 = vmax.f32 %v766_v3, 0.0  ;;  %v1296_v28 = vld [vmem:[#allocation2 + $0xc8] sm:$0xff]  ;;  %v8075_v23 = vsel %vm2102_vm1, %v4162_v21, 0.0  ;;  %v5646_v13 = vpop.f32.mrf.mxu0  ;;  %v1297_v62 = vld [vmem:[#allocation2 + $0xd0] sm:$0xff] }
 0x161   : > { %10144 = vst [vmem:[#allocation96_spill] sm:$0xff] %v8075_v23  ;;  %v3135_v7 = vld [vmem:[#allocation2 + $0xc9] sm:$0xff]  ;;  %6069 = vmatprep.mubr.msk.bf16.mxu0 %vm825_vm8, %v3187_v54  ;;  %v771_v38 = vadd.f32 %v7936_v8, %v5645_v39  ;;  %v8087_v32 = vpack.c.bf16 %v1297_v62, %v1296_v28  ;;  %v8093_v21 = vsel %vm1208_vm12, %v920_v37, 0.0  ;;  %vm1211_vm13 = vcmp.eq.s32.totalorder %v10148_v40, 1  ;;  %v10149_v45 = vld [vmem:[#allocation8_spill] sm:$0xff] }
 0x162   : > { %v921_v63 = vld [vmem:[#allocation2 + $0xcf] sm:$0xff]  ;;  %857 = vst.msk [vmem:[#allocation2 + $0xe0] sm:$0xff] %vm825_vm8, %v818_v55  ;;  %v8084_v12 = vsel %vm2107_vm5, %v3135_v7, 0.0  ;;  %v5647_v54 = vpop.f32.mrf.mxu0  ;;  %vm1210_vm6 = vcmp.eq.s32.totalorder %v10149_v45, 1  ;;  %vm2109_vm1 = vcmp.eq.s32.totalorder %v8089_v60, 1  ;;  %vm1213_vm4 = vcmp.eq.s32.totalorder %v10158_v42, 1 }
 0x163   : > { %10145 = vst [vmem:[#allocation97_spill] sm:$0xff] %v8084_v12  ;;  %v8097_v3 = vsel %vm1209_vm10, %v921_v63, 0.0  ;;  %v8101_v31 = vsel %vm1207_vm9, %v921_v63, 0.0  ;;  %v8105_v55 = vsel %vm1205_vm3, %v921_v63, 0.0  ;;  %v819_v62 = vmax.f32 %v771_v38, 0.0  ;;  %5873 = vmatprep.mubr.msk.bf16.mxu1 %vm825_vm8, %v8087_v32  ;;  %v6324_v42 = vld [vmem:[%s9873_s4 + $0x48] sm:$0xff]  }
 0x164   : > { %10146 = vst [vmem:[#allocation98_spill] sm:$0xff] %v8101_v31  ;;  %10147 = vst [vmem:[#allocation99_spill] sm:$0xff] %v8105_v55  ;;  %v5648_v28 = vadd.f32 %v5647_v54, %v5646_v13  ;;  %v3136_v23 = vld [vmem:[#allocation2 + $0xd1] sm:$0xff]  ;;  %v5649_v33 = vpop.f32.mrf.mxu0  ;;  %v4163_v13 = vld [vmem:[#allocation2 + $0xc9] sm:$0xff]  ;;  %v3167_v38 = vsel %vm2105_vm2, %v3135_v7, 0.0  ;;  %v8130_v55 = vpop.permute.xlu1 %2069 }
 0x165   : > { %v922_v41 = vld [vmem:[#allocation2 + $0xd7] sm:$0xff]  ;;  %v3168_v54 = vsel %vm2106_vm15, %v3136_v23, 0.0  ;;  %858 = vst.msk [vmem:[#allocation2 + $0xe8] sm:$0xff] %vm825_vm8, %v819_v62  ;;  %v8126_v37 = vsel %vm2108_vm11, %v3136_v23, 0.0  ;;  %vm2110_vm3 = vcmp.eq.s32.totalorder %v8130_v55, 1 }
 0x166   : > { %v774_v39 = vadd.f32 %v7936_v8, %v5648_v28  ;;  %10150 = vst [vmem:[#allocation9_spill] sm:$0xff] %v8126_v37  ;;  %v4164_v48 = vld [vmem:[#allocation2 + $0xd1] sm:$0xff]  ;;  %v3188_v31 = vpack.c.bf16 %v3168_v54, %v3167_v38  ;;  %v5650_v52 = vpop.f32.mrf.mxu0  ;;  %v8134_v7 = vsel %vm1208_vm12, %v922_v41, 0.0  ;;  %v8138_v62 = vsel %vm1206_vm0, %v922_v41, 0.0 }
 0x167   : > { %10151 = vst [vmem:[#allocation8_spill] sm:$0xff] %v8134_v7  ;;  %10152 = vst [vmem:[#allocation100_spill] sm:$0xff] %v8138_v62  ;;  %v5651_v24 = vadd.f32 %v5650_v52, %v5649_v33  ;;  %v1298_v23 = vld [vmem:[#allocation2 + $0xd8] sm:$0xff]  ;;  %v8142_v38 = vsel %vm2103_vm14, %v4163_v13, 0.0  ;;  %v8146_v54 = vsel %vm2104_vm7, %v4164_v48, 0.0  ;;  %v8160_v48 = vpop.permute.xlu0 %2072 }
 0x168   : > { %v820_v28 = vmax.f32 %v774_v39, 0.0  ;;  %10153 = vst [vmem:[#allocation101_spill] sm:$0xff] %v8142_v38  ;;  %10154 = vst [vmem:[#allocation102_spill] sm:$0xff] %v8146_v54  ;;  %v5652_v12 = vpop.f32.mrf.mxu0  ;;  %6070 = vmatmul.mubr.msk.bf16.gmra.mxu0 %vm825_vm8, %v3188_v31  ;;  %v8164_v31 = vsel %vm1210_vm6, %v922_v41, 0.0  ;;  %v10159_v38 = vld [vmem:[#allocation10_spill] sm:$0xff]  ;;  %vm2111_vm7 = vcmp.eq.s32.totalorder %v8160_v48, 1 }
 0x169   : > { %v3137_v63 = vld [vmem:[#allocation2 + $0xd9] sm:$0xff]  ;;  %v779_v33 = vadd.f32 %v7936_v8, %v5651_v24  ;;  %vm1212_vm14 = vcmp.eq.s32.totalorder %v10159_v38, 1 }
 0x16a   : > { %v1299_v37 = vld [vmem:[#allocation2 + $0xe0] sm:$0xff]  ;;  %859 = vst.msk [vmem:[#allocation2 + $0xf0] sm:$0xff] %vm825_vm8, %v820_v28  ;;  %v8155_v26 = vsel %vm2109_vm1, %v3137_v63, 0.0  ;;  %v5653_v52 = vpop.f32.mrf.mxu0 }
 0x16b   : > { %v923_v27 = vld [vmem:[#allocation2 + $0xdf] sm:$0xff]  ;;  %10155 = vst [vmem:[#allocation103_spill] sm:$0xff] %v8155_v26  ;;  %v8158_v34 = vpack.c.bf16 %v1299_v37, %v1298_v23  ;;  %v821_v37 = vmax.f32 %v779_v33, 0.0  ;;  %v5654_v28 = vadd.f32 %v5653_v52, %v5652_v12  ;;  %v3169_v33 = vsel %vm2107_vm5, %v3137_v63, 0.0 }
 0x16c   : > { %v8168_v39 = vsel %vm1211_vm13, %v923_v27, 0.0  ;;  %v8172_v24 = vsel %vm1209_vm10, %v923_v27, 0.0  ;;  %v8176_v13 = vsel %vm1207_vm9, %v923_v27, 0.0  ;;  %v3138_v54 = vld [vmem:[#allocation2 + $0xe1] sm:$0xff]  ;;  %v5655_v6 = vpop.f32.mrf.mxu0  ;;  %v4165_v12 = vld [vmem:[#allocation2 + $0xd9] sm:$0xff] }
 0x16d   : > { %10156 = vst [vmem:[#allocation104_spill] sm:$0xff] %v8172_v24  ;;  %10157 = vst [vmem:[#allocation105_spill] sm:$0xff] %v8176_v13  ;;  %5874 = vmatmul.mubr.msk.bf16.gmra.mxu1 %vm825_vm8, %v8158_v34  ;;  %v924_v44 = vld [vmem:[#allocation2 + $0xe7] sm:$0xff]  ;;  %v3170_v52 = vsel %vm2108_vm11, %v3138_v54, 0.0  ;;  %v782_v23 = vadd.f32 %v7936_v8, %v5654_v28  ;;  %v8197_v41 = vsel %vm2110_vm3, %v3138_v54, 0.0  ;;  %v8201_v13 = vpop.permute.xlu1 %2075 }
 0x16e   : > { %860 = vst.msk [vmem:[#allocation2 + $0xf8] sm:$0xff] %vm825_vm8, %v821_v37  ;;  %10160 = vst [vmem:[#allocation11_spill] sm:$0xff] %v8197_v41  ;;  %v4166_v7 = vld [vmem:[#allocation2 + $0xe1] sm:$0xff]  ;;  %v3189_v24 = vpack.c.bf16 %v3170_v52, %v3169_v33  ;;  %v5656_v62 = vpop.f32.mrf.mxu0  ;;  %v8205_v63 = vsel %vm1210_vm6, %v924_v44, 0.0  ;;  %v8209_v37 = vsel %vm1208_vm12, %v924_v44, 0.0  ;;  %v8213_v33 = vsel %vm2105_vm2, %v4165_v12, 0.0 }
 0x16f   : > { %10161 = vst [vmem:[#allocation10_spill] sm:$0xff] %v8209_v37  ;;  %v822_v28 = vmax.f32 %v782_v23, 0.0  ;;  %v5657_v43 = vadd.f32 %v5656_v62, %v5655_v6  ;;  %v1300_v54 = vld [vmem:[#allocation2 + $0xe8] sm:$0xff]  ;;  %10162 = vst [vmem:[#allocation106_spill] sm:$0xff] %v8213_v33  ;;  %v8217_v52 = vsel %vm2106_vm15, %v4166_v7, 0.0  ;;  %vm2112_vm9 = vcmp.eq.s32.totalorder %v8201_v13, 1 }
 0x170   : > { %10163 = vst [vmem:[#allocation107_spill] sm:$0xff] %v8217_v52  ;;  %v5658_v26 = vpop.f32.mrf.mxu0  ;;  %6073 = vmatprep.mubr.msk.bf16.mxu0 %vm825_vm8, %v3189_v24  ;;  %v896_v23 = vld [vmem:[#allocation2 + $0x7] sm:$0xff]  ;;  %v897_v6 = vld [vmem:[#allocation2 + $0xf] sm:$0xff]  ;;  %v8233_v24 = vsel %vm1212_vm14, %v924_v44, 0.0  ;;  %vm10168_vm2 = vcmp.eq.s32.totalorder %v10167_v2, 1 }
 0x171   : > { %v3139_v27 = vld [vmem:[#allocation2 + $0xe9] sm:$0xff]  ;;  %861 = vst.msk [vmem:[#allocation2 + $0x100] sm:$0xff] %vm825_vm8, %v822_v28  ;;  %v787_v30 = vadd.f32 %v7936_v8, %v5657_v43  ;;  %v1217_v50 = vsel %vm10168_vm2, %v897_v6, 0.0  ;;  %v8299_v53 = vpop.permute.xlu1 %2081 }
 0x172   : > { %v1301_v41 = vld [vmem:[#allocation2 + $0xf0] sm:$0xff]  ;;  %v8226_v19 = vsel %vm2111_vm7, %v3139_v27, 0.0  ;;  %v5659_v62 = vpop.f32.mrf.mxu0  ;;  %10173 = vst [vmem:[#allocation112_spill] sm:$0xff] %v8299_v53 }
 0x173   : > { %v925_v1 = vld [vmem:[#allocation2 + $0xef] sm:$0xff]  ;;  %v8229_v7 = vpack.c.bf16 %v1301_v41, %v1300_v54  ;;  %v823_v46 = vmax.f32 %v787_v30, 0.0  ;;  %v5660_v41 = vadd.f32 %v5659_v62, %v5658_v26  ;;  %v3171_v62 = vsel %vm2109_vm1, %v3139_v27, 0.0 }
 0x174   : > { %v8237_v12 = vsel %vm1213_vm4, %v925_v1, 0.0  ;;  %v8241_v43 = vsel %vm1211_vm13, %v925_v1, 0.0  ;;  %v8245_v28 = vsel %vm1209_vm10, %v925_v1, 0.0  ;;  %v10165_v33 = vld [vmem:[#allocation6_spill] sm:$0xff]  ;;  %vm2114_vm10 = vcmp.eq.s32.totalorder %v8299_v53, 1  ;;  %v10182_v53 = vld [vmem:[#allocation24_spill] sm:$0xff] }
 0x175   : > { %10164 = vst [vmem:[#allocation108_spill] sm:$0xff] %v8245_v28  ;;  %5877 = vmatprep.mubr.msk.bf16.mxu1 %vm825_vm8, %v8229_v7  ;;  %vm10166_vm0 = vcmp.eq.s32.totalorder %v10165_v33, 1  ;;  %v3140_v47 = vld [vmem:[#allocation2 + $0xf1] sm:$0xff]  ;;  %v4167_v30 = vld [vmem:[#allocation2 + $0xe9] sm:$0xff]  ;;  %862 = vst.msk [vmem:[#allocation2 + $0x108] sm:$0xff] %vm825_vm8, %v823_v46 }
 0x176   : > { %v1216_v52 = vsel %vm10166_vm0, %v896_v23, 0.0  ;;  %v8257_v1 = vld [vmem:[#allocation2 + $0xf7] sm:$0xff]  ;;  %v3172_v44 = vsel %vm2110_vm3, %v3140_v47, 0.0  ;;  %v790_v23 = vadd.f32 %v7936_v8, %v5660_v41  ;;  %v8269_v6 = vsel %vm2112_vm9, %v3140_v47, 0.0  ;;  %v8283_v41 = vpop.permute.xlu0 %2078 }
 0x177   : > { %v4168_v54 = vld [vmem:[#allocation2 + $0xf1] sm:$0xff]  ;;  %v3190_v33 = vpack.c.bf16 %v3172_v44, %v3171_v62  ;;  %v8276_v27 = vsel %vm1212_vm14, %v8257_v1, 0.0  ;;  %v8281_v46 = vsel %vm1210_vm6, %v8257_v1, 0.0  ;;  %10170 = vst [vmem:[#allocation109_spill] sm:$0xff] %v8283_v41  ;;  %v8287_v47 = vsel %vm2107_vm5, %v4167_v30, 0.0 }
 0x178   : > { %10169 = vst [vmem:[#allocation7_spill] sm:$0xff] %v8281_v46  ;;  %v824_v8 = vmax.f32 %v790_v23, 0.0  ;;  %10171 = vst [vmem:[#allocation110_spill] sm:$0xff] %v8287_v47  ;;  %v8291_v44 = vsel %vm2108_vm11, %v4168_v54, 0.0  ;;  %v1248_v62 = vpack.c.bf16 %v1217_v50, %v1216_v52  ;;  %v1302_v26 = vld [vmem:[#allocation2 + $0xf8] sm:$0xff]  ;;  %v1303_v37 = vld [vmem:[#allocation2 + $0x100] sm:$0xff] }
 0x179   : > { %10172 = vst [vmem:[#allocation111_spill] sm:$0xff] %v8291_v44  ;;  %6074 = vmatmul.mubr.msk.bf16.gmra.mxu0 %vm825_vm8, %v3190_v33  ;;  %v8294_v28 = vld [vmem:[#allocation2 + $0xff] sm:$0xff]  ;;  %v8301_v30 = vpack.c.bf16 %v1303_v37, %v1302_v26  ;;  %vm2113_vm15 = vcmp.eq.s32.totalorder %v8283_v41, 1  ;;  %v10180_v13 = vld [vmem:[#allocation18_spill] sm:$0xff]  ;;  %vm10278_vm11 = vmmov %vm10168_vm2 }
 0x17a   : > { %v3141_v23 = vld [vmem:[#allocation2 + $0xf9] sm:$0xff]  ;;  %863 = vst.msk [vmem:[#allocation2 + $0x110] sm:$0xff] %vm825_vm8, %v824_v8  ;;  %v8307_v50 = vsel %vm1213_vm4, %v8294_v28, 0.0  ;;  %v8312_v35 = vsel %vm1211_vm13, %v8294_v28, 0.0  ;;  %vm10280_vm13 = vmmov %vm10166_vm0  ;;  %v6335_v2 = vld [vmem:[%s9873_s4 + $0x110] sm:$0xff]  }
 0x17b   : > { %10174 = vst [vmem:[#allocation113_spill] sm:$0xff] %v8312_v35  ;;  %5878 = vmatmul.mubr.msk.bf16.gmra.mxu1 %vm825_vm8, %v8301_v30  ;;  %v4169_v52 = vld [vmem:[#allocation2 + $0xf9] sm:$0xff]  ;;  %v3173_v54 = vsel %vm2111_vm7, %v3141_v23, 0.0  ;;  %v8330_v45 = vsel %vm2113_vm15, %v3141_v23, 0.0 }
 0x17c   : > { %v3142_v26 = vld [vmem:[#allocation2 + $0x101] sm:$0xff]  ;;  %5889 = vmatprep.mubr.msk.bf16.mxu1 %vm825_vm8, %v1248_v62  ;;  %v8345_v46 = vsel %vm2109_vm1, %v4169_v52, 0.0  ;;  %v6323_v52 = vld [vmem:[%s9873_s4 + $0x50] sm:$0xff]  }
 0x17d   : > { %v8324_v40 = vld [vmem:[#allocation2 + $0x107] sm:$0xff]  ;;  %v3174_v8 = vsel %vm2112_vm9, %v3142_v26, 0.0  ;;  %v8334_v37 = vsel %vm2114_vm10, %v3142_v26, 0.0  ;;  %10175 = vst [vmem:[#allocation114_spill] sm:$0xff] %v8345_v46 }
 0x17e   : > { %v8339_v33 = vsel %vm1212_vm14, %v8324_v40, 0.0  ;;  %v4170_v47 = vld [vmem:[#allocation2 + $0x101] sm:$0xff]  ;;  %v3191_v62 = vpack.c.bf16 %v3174_v8, %v3173_v54 }
 0x17f   : > { %v8349_v23 = vsel %vm2110_vm3, %v4170_v47, 0.0  ;;  %v10179_v26 = vld [vmem:[#allocation17_spill] sm:$0xff]  ;;  %v10183_v41 = vld [vmem:[#allocation20_spill] sm:$0xff] }
 0x180   : > { %10176 = vst [vmem:[#allocation115_spill] sm:$0xff] %v8349_v23  ;;  %6077 = vmatprep.mubr.msk.bf16.mxu0 %vm825_vm8, %v3191_v62  ;;  %v10181_v44 = vpack.c.bf16 %v10179_v26, %v10180_v13  ;;  %v10184_v46 = vpack.c.bf16 %v10182_v53, %v10183_v41  ;;  %v6325_v41 = vld [vmem:[%s9873_s4 + $0x40] sm:$0xff]   ;;  %v10187_v53 = vld [vmem:[#allocation26_spill] sm:$0xff]  ;;  %v2815_v26 = vld [vmem:[#allocation2 + $0xd8] sm:$0xff] }
 0x181   : > { %v4171_v35 = vld [vmem:[#allocation2 + $0x109] sm:$0xff]  ;;  %v4172_v38 = vld [vmem:[#allocation2 + $0x111] sm:$0xff] }
 0x182   : > { %v8356_v54 = vsel %vm2111_vm7, %v4171_v35, 0.0  ;;  %v8360_v60 = vsel %vm2112_vm9, %v4172_v38, 0.0  ;;  %v3175_v55 = vsel %vm2113_vm15, %v4171_v35, 0.0  ;;  %v3176_v47 = vsel %vm2114_vm10, %v4172_v38, 0.0  ;;  %v8369_v8 = vld [vmem:[#allocation2 + $0x10f] sm:$0xff]  ;;  %v6351_v38 = vld [vmem:[%s9873_s4 + $0x58] sm:$0xff]  }
 0x183   : > { %10177 = vst [vmem:[#allocation116_spill] sm:$0xff] %v8356_v54  ;;  %10178 = vst [vmem:[#allocation117_spill] sm:$0xff] %v8360_v60  ;;  %v3192_v62 = vpack.c.bf16 %v3176_v47, %v3175_v55  ;;  %5890 = vmatmul.mubr.msk.bf16.vlgmr.msra.gmra.mxu1 %vm825_vm8, %v10181_v44  ;;  %v8380_v35 = vsel %vm1213_vm4, %v8369_v8, 0.0  ;;  %v10185_v44 = vld [vmem:[#allocation23_spill] sm:$0xff]  ;;  %v10189_v47 = vld [vmem:[#allocation37_spill] sm:$0xff] }
 0x184   : > { %5922 = vmatpush3.bf16.msra.mxu1 %v6351_v38  ;;  %5893 = vmatprep.mubr.msk.bf16.mxu1 %vm825_vm8, %v10184_v46  ;;  %v10186_v46 = vld [vmem:[#allocation30_spill] sm:$0xff]  ;;  %v10192_v38 = vld [vmem:[#allocation28_spill] sm:$0xff] }
 0x185   : > { %6078 = vmatmul.mubr.msk.bf16.gmra.mxu0 %vm825_vm8, %v3192_v62  ;;  %5923 = vmatprep.subr.bf16.mxu1 %v6323_v52  ;;  %v10188_v55 = vpack.c.bf16 %v10186_v46, %v10187_v53  ;;  %v10190_v62 = vld [vmem:[#allocation33_spill] sm:$0xff]  ;;  %v10194_v46 = vpack.c.bf16 %v7535_v0, %v7495_v16  ;;  %v10198_v16 = vpack.c.bf16 %v7788_v56, %v7784_v5  ;;  %v10206_v5 = vld [vmem:[#allocation12_spill] sm:$0xff] }
 0x186   : > { %6129 = vmatprep.mubr.msk.bf16.mxu0 %vm825_vm8, %v10185_v44  ;;  %v10191_v13 = vpack.c.bf16 %v10189_v47, %v10190_v62  ;;  %v6352_v44 = vld [vmem:[%s9873_s4 + $0x78] sm:$0xff]   ;;  %v10196_v53 = vld [vmem:[#allocation45_spill] sm:$0xff]  ;;  %v10199_v0 = vpack.c.bf16 %v7871_v49, %v7867_v61  ;;  %vm1214_vm5 = vcmp.eq.s32.totalorder %v10206_v5, 1  ;;  %v3850_v61 = vld [vmem:[#allocation2 + $0x110] sm:$0xff] }
 0x187   : > { %v3849_v56 = vld [vmem:[#allocation2 + $0x108] sm:$0xff]  ;;  %v6355_v62 = vld [vmem:[%s9873_s4 + $0x60] sm:$0xff]  }
 0x188   : > { %5924 = vmatpush3.bf16.msra.mxu1 %v6323_v52  ;;  %v10193_v52 = vld [vmem:[#allocation36_spill] sm:$0xff] }
 0x189   : > { %5925 = vmatprep.subr.bf16.mxu1 %v6324_v42 }
 0x18b   : > { %5894 = vmatmul.mubr.msk.bf16.gmra.mxu1 %vm825_vm8, %v10188_v55  ;;  %v10220_v55 = vld [vmem:[#allocation35_spill] sm:$0xff] }
 0x18c   : > { %5897 = vmatprep.mubr.msk.bf16.mxu1 %vm825_vm8, %v10191_v13  ;;  %5926 = vmatpush3.bf16.msra.mxu1 %v6324_v42  ;;  %v10195_v42 = vpack.c.bf16 %v7611_v9, %v7573_v36  ;;  %v10200_v36 = vpack.c.bf16 %v7953_v51, %v7949_v22  ;;  %v10202_v9 = vpack.c.bf16 %v8097_v3, %v8093_v21  ;;  %v10207_v22 = vld [vmem:[#allocation15_spill] sm:$0xff]  ;;  %v10208_v51 = vld [vmem:[#allocation14_spill] sm:$0xff]  ;;  %v10213_v21 = vld [vmem:[#allocation25_spill] sm:$0xff] }
 0x18d   : > { %6130 = vmatmul.mubr.msk.bf16.vlgmr.msra.gmra.mxu0 %vm825_vm8, %v10192_v38  ;;  %5927 = vmatprep.subr.bf16.mxu1 %v6325_v41  ;;  %v10214_v3 = vld [vmem:[#allocation22_spill] sm:$0xff]  ;;  %v6326_v13 = vld [vmem:[%s9873_s4 + $0x98] sm:$0xff]   ;;  %v10222_v38 = vld [vmem:[#allocation49_spill] sm:$0xff] }
 0x18e   : > { %6133 = vmatprep.mubr.msk.bf16.mxu0 %vm825_vm8, %v10193_v52  ;;  %v10223_v52 = vld [vmem:[#allocation44_spill] sm:$0xff] }
 0x190   : > { %5928 = vmatpush3.bf16.msra.mxu1 %v6325_v41  ;;  %v10197_v41 = vpack.c.bf16 %v7695_v11, %v7691_v10  ;;  %v10203_v10 = vld [vmem:[#allocation13_spill] sm:$0xff]  ;;  %v10205_v11 = vpack.c.bf16 %v8237_v12, %v8233_v24  ;;  %v10216_v24 = vld [vmem:[#allocation32_spill] sm:$0xff]  ;;  %v10217_v12 = vld [vmem:[#allocation27_spill] sm:$0xff] }
 0x191   : > { %6201 = vmatprep.subr.bf16.mxu1 %v6352_v44  ;;  %vm1215_vm12 = vcmp.eq.s32.totalorder %v10203_v10, 1 }
 0x193   : > { %5898 = vmatmul.mubr.msk.bf16.gmra.mxu1 %vm825_vm8, %v10194_v46  ;;  %v10225_v46 = vpack.c.bf16 %v7639_v14, %v7599_v58  ;;  %v10232_v58 = vld [vmem:[#allocation73_spill] sm:$0xff] }
 0x194   : > { %5901 = vmatprep.mubr.msk.bf16.mxu1 %vm825_vm8, %v10195_v42 }
 0x195   : > { %6134 = vmatmul.mubr.msk.bf16.gmra.mxu0 %vm825_vm8, %v10196_v53  ;;  %v10226_v53 = vld [vmem:[#allocation58_spill] sm:$0xff] }
 0x196   : > { %6137 = vmatprep.mubr.msk.bf16.mxu0 %vm825_vm8, %v7601_v4  ;;  %v10201_v4 = vpack.c.bf16 %v8025_v20, %v8021_v29  ;;  %v10209_v20 = vpack.c.bf16 %v10207_v22, %v10208_v51  ;;  %v10211_v29 = vld [vmem:[#allocation16_spill] sm:$0xff]  ;;  %v10238_v22 = vld [vmem:[#allocation89_spill] sm:$0xff] }
 0x19b   : > { %5902 = vmatmul.mubr.msk.bf16.gmra.mxu1 %vm825_vm8, %v10197_v41  ;;  %v10227_v41 = vpack.c.bf16 %v7728_v57, %v10226_v53 }
 0x19c   : > { %5905 = vmatprep.mubr.msk.bf16.mxu1 %vm825_vm8, %v10198_v16  ;;  %v10228_v16 = vld [vmem:[#allocation68_spill] sm:$0xff] }
 0x19d   : > { %6138 = vmatmul.mubr.msk.bf16.gmra.mxu0 %vm825_vm8, %v7685_v15  ;;  %v10204_v15 = vpack.c.bf16 %v8168_v39, %v8164_v31  ;;  %v6353_v31 = vld [vmem:[%s9873_s4 + $0x70] sm:$0xff]   ;;  %v6354_v39 = vld [vmem:[%s9873_s4 + $0x68] sm:$0xff]  }
 0x19e   : > { %6141 = vmatprep.mubr.msk.bf16.mxu0 %vm825_vm8, %v7778_v25  ;;  %v1247_v25 = vsel %vm1215_vm12, %v8294_v28, 0.0  ;;  %v10218_v28 = vpack.c.bf16 %v10216_v24, %v10217_v12 }
 0x1a3   : > { %5906 = vmatmul.mubr.msk.bf16.gmra.mxu1 %vm825_vm8, %v10199_v0  ;;  %v10229_v0 = vld [vmem:[#allocation65_spill] sm:$0xff] }
 0x1a4   : > { %5909 = vmatprep.mubr.msk.bf16.mxu1 %vm825_vm8, %v10200_v36  ;;  %v10230_v36 = vpack.c.bf16 %v10228_v16, %v10229_v0  ;;  %v6329_v0 = vld [vmem:[%s9873_s4 + $0x80] sm:$0xff]  }
 0x1a5   : > { %6142 = vmatmul.mubr.msk.bf16.gmra.mxu0 %vm825_vm8, %v7861_v18  ;;  %v1246_v18 = vsel %vm1214_vm5, %v8257_v1, 0.0  ;;  %v10219_v1 = vld [vmem:[#allocation39_spill] sm:$0xff] }
 0x1a6   : > { %6145 = vmatprep.mubr.msk.bf16.mxu0 %vm825_vm8, %v7943_v59  ;;  %v1263_v49 = vpack.c.bf16 %v1247_v25, %v1246_v18  ;;  %v8483_v59 = vpack.c.bf16 %v3850_v61, %v3849_v56  ;;  %v10221_v47 = vpack.c.bf16 %v10219_v1, %v10220_v55  ;;  %v10235_v25 = vld [vmem:[#allocation81_spill] sm:$0xff]  ;;  %v10248_v1 = vld [vmem:[#allocation59_spill] sm:$0xff]  ;;  %v10249_v55 = vld [vmem:[#allocation54_spill] sm:$0xff] }
 0x1ab   : > { %5910 = vmatmul.mubr.msk.bf16.gmra.mxu1 %vm825_vm8, %v10201_v4 }
 0x1ac   : > { %5913 = vmatprep.mubr.msk.bf16.mxu1 %vm825_vm8, %v10202_v9 }
 0x1ad   : > { %6146 = vmatmul.mubr.msk.bf16.gmra.mxu0 %vm825_vm8, %v8015_v17  ;;  %v10210_v17 = vld [vmem:[#allocation19_spill] sm:$0xff] }
 0x1ae   : > { %6149 = vmatprep.mubr.msk.bf16.mxu0 %vm825_vm8, %v8087_v32  ;;  %v10212_v32 = vpack.c.bf16 %v10210_v17, %v10211_v29  ;;  %v10241_v17 = vld [vmem:[#allocation97_spill] sm:$0xff] }
 0x1b3   : > { %5914 = vmatmul.mubr.msk.bf16.gmra.mxu1 %vm825_vm8, %v10204_v15  ;;  %v10231_v15 = vld [vmem:[#allocation76_spill] sm:$0xff] }
 0x1b4   : > { %5917 = vmatprep.mubr.msk.bf16.mxu1 %vm825_vm8, %v10205_v11  ;;  %v10233_v14 = vpack.c.bf16 %v10231_v15, %v10232_v58  ;;  %v10234_v11 = vld [vmem:[#allocation84_spill] sm:$0xff]  ;;  %v10258_v15 = vld [vmem:[#allocation77_spill] sm:$0xff] }
 0x1b5   : > { %6150 = vmatmul.mubr.msk.bf16.gmra.mxu0 %vm825_vm8, %v8158_v34  ;;  %v10215_v34 = vpack.c.bf16 %v10213_v21, %v10214_v3  ;;  %v10236_v56 = vpack.c.bf16 %v10234_v11, %v10235_v25  ;;  %v10243_v3 = vld [vmem:[#allocation11_spill] sm:$0xff]  ;;  %v10261_v11 = vld [vmem:[#allocation85_spill] sm:$0xff] }
 0x1b6   : > { %6153 = vmatprep.mubr.msk.bf16.mxu0 %vm825_vm8, %v8229_v7 }
 0x1bb   : > { %5918 = vmatmul.mubr.msk.bf16.gmra.mxu1 %vm825_vm8, %v1263_v49  ;;  %v10237_v49 = vld [vmem:[#allocation92_spill] sm:$0xff] }
 0x1bc   : > { %5929 = vmatprep.mubr.msk.bf16.mxu1 %vm825_vm8, %v10209_v20  ;;  %v10239_v51 = vpack.c.bf16 %v10237_v49, %v10238_v22  ;;  %v10240_v20 = vld [vmem:[#allocation9_spill] sm:$0xff] }
 0x1bd   : > { %6154 = vmatmul.mubr.msk.bf16.gmra.mxu0 %vm825_vm8, %v8301_v30  ;;  %v10242_v29 = vpack.c.bf16 %v10240_v20, %v10241_v17  ;;  %v10264_v20 = vld [vmem:[#allocation93_spill] sm:$0xff] }
 0x1be   : > { %6157 = vmatprep.mubr.msk.bf16.mxu0 %vm825_vm8, %v8483_v59 }
 0x1c3   : > { %5930 = vmatmul.mubr.msk.bf16.vlgmr.msra.gmra.mxu1 %vm825_vm8, %v10212_v32 }
 0x1c4   : > { %6205 = vmatpush3.bf16.msra.mxu1 %v6352_v44  ;;  %5933 = vmatprep.mubr.msk.bf16.mxu1 %vm825_vm8, %v10215_v34  ;;  %v10224_v44 = vpack.c.bf16 %v10222_v38, %v10223_v52  ;;  %v10244_v34 = vld [vmem:[#allocation103_spill] sm:$0xff]  ;;  %v10251_v52 = vld [vmem:[#allocation66_spill] sm:$0xff] }
 0x1c5   : > { %6202 = vmatprep.subr.bf16.mxu1 %v6353_v31 }
 0x1c8   : > { %6206 = vmatpush3.bf16.msra.mxu1 %v6353_v31  ;;  %v10245_v31 = vpack.c.bf16 %v10243_v3, %v10244_v34  ;;  %v10267_v3 = vld [vmem:[#allocation8_spill] sm:$0xff] }
 0x1c9   : > { %6203 = vmatprep.subr.bf16.mxu1 %v6354_v39 }
 0x1cb   : > { %5934 = vmatmul.mubr.msk.bf16.gmra.mxu1 %vm825_vm8, %v10218_v28  ;;  %v10247_v28 = vpack.c.bf16 %v8334_v37, %v8330_v45  ;;  %v10254_v37 = vld [vmem:[#allocation74_spill] sm:$0xff] }
 0x1cc   : > { %5937 = vmatprep.mubr.msk.bf16.mxu1 %vm825_vm8, %v10221_v47  ;;  %6207 = vmatpush3.bf16.msra.mxu1 %v6354_v39  ;;  %v8530_v42 = vpop.f32.mrf.mxu1  ;;  %v10246_v39 = vpack.c.bf16 %v8269_v6, %v8226_v19  ;;  %v10250_v47 = vpack.c.bf16 %v10248_v1, %v10249_v55  ;;  %v6327_v19 = vld [vmem:[%s9873_s4 + $0x90] sm:$0xff]   ;;  %v10270_v1 = vpack.c.bf16 %v8307_v50, %v8276_v27  ;;  %v3851_v50 = vld [vmem:[#allocation2 + $0x118] sm:$0xff] }
 0x1cd   : > { %6204 = vmatprep.subr.bf16.mxu1 %v6355_v62  ;;  %v2794_v27 = vld [vmem:[#allocation2 + $0x30] sm:$0xff] }
 0x1ce   : > { %v8540_v4 = vpop.f32.mrf.mxu1 }
 0x1d0   : > { %6208 = vmatpush3.bf16.msra.mxu1 %v6355_v62  ;;  %v8542_v9 = vpop.f32.mrf.mxu1 }
 0x1d1   : > { %6001 = vmatprep.subr.bf16.mxu1 %v6326_v13 }
 0x1d2   : > { %v8552_v57 = vpop.f32.mrf.mxu1 }
 0x1d3   : > { %5938 = vmatmul.mubr.msk.bf16.gmra.mxu1 %vm825_vm8, %v10224_v44  ;;  %v10252_v44 = vld [vmem:[#allocation61_spill] sm:$0xff] }
 0x1d4   : > { %5941 = vmatprep.mubr.msk.bf16.mxu1 %vm825_vm8, %v10225_v46  ;;  %v10253_v45 = vpack.c.bf16 %v10251_v52, %v10252_v44  ;;  %v10255_v46 = vld [vmem:[#allocation69_spill] sm:$0xff]  ;;  %v2792_v52 = vld [vmem:[#allocation2 + $0x20] sm:$0xff]  ;;  %v2791_v44 = vld [vmem:[#allocation2 + $0x18] sm:$0xff] }
 0x1d5   : > { %v10256_v53 = vpack.c.bf16 %v10254_v37, %v10255_v46  ;;  %v3852_v46 = vld [vmem:[#allocation2 + $0x120] sm:$0xff] }
 0x1db   : > { %5942 = vmatmul.mubr.msk.bf16.gmra.mxu1 %vm825_vm8, %v10227_v41  ;;  %v6328_v41 = vld [vmem:[%s9873_s4 + $0x88] sm:$0xff]  }
 0x1dc   : > { %5945 = vmatprep.mubr.msk.bf16.mxu1 %vm825_vm8, %v10230_v36  ;;  %v8554_v61 = vpop.f32.mrf.mxu1 }
 0x1de   : > { %v8556_v18 = vpop.f32.mrf.mxu1 }
 0x1e0   : > { %v8566_v32 = vpop.f32.mrf.mxu1 }
 0x1e2   : > { %v8568_v21 = vpop.f32.mrf.mxu1 }
 0x1e3   : > { %5946 = vmatmul.mubr.msk.bf16.gmra.mxu1 %vm825_vm8, %v10233_v14  ;;  %v10260_v14 = vld [vmem:[#allocation90_spill] sm:$0xff] }
 0x1e4   : > { %5949 = vmatprep.mubr.msk.bf16.mxu1 %vm825_vm8, %v10236_v56  ;;  %v10262_v25 = vpack.c.bf16 %v10260_v14, %v10261_v11  ;;  %v6330_v56 = vld [vmem:[%s9873_s4 + $0xd8] sm:$0xff]   ;;  %v10273_v14 = vmov 0  }
 0x1eb   : > { %5950 = vmatmul.mubr.msk.bf16.gmra.mxu1 %vm825_vm8, %v10239_v51  ;;  %v8578_v24 = vpop.f32.mrf.mxu1  ;;  %v10263_v51 = vld [vmem:[#allocation98_spill] sm:$0xff] }
 0x1ec   : > { %5953 = vmatprep.mubr.msk.bf16.mxu1 %vm825_vm8, %v10242_v29  ;;  %v10265_v17 = vpack.c.bf16 %v10263_v51, %v10264_v20  ;;  %v10266_v29 = vld [vmem:[#allocation104_spill] sm:$0xff]  ;;  %v6332_v51 = vld [vmem:[%s9873_s4 + $0xc8] sm:$0xff]   ;;  %v2798_v20 = vld [vmem:[#allocation2 + $0x50] sm:$0xff] }
 0x1ed   : > { %v8580_v12 = vpop.f32.mrf.mxu1  ;;  %v10268_v34 = vpack.c.bf16 %v10266_v29, %v10267_v3  ;;  %v2797_v29 = vld [vmem:[#allocation2 + $0x48] sm:$0xff] }
 0x1ef   : > { %v8590_v62 = vpop.f32.mrf.mxu1 }
 0x1f1   : > { %v8592_v38 = vpop.f32.mrf.mxu1 }
 0x1f3   : > { %5954 = vmatmul.mubr.msk.bf16.gmra.mxu1 %vm825_vm8, %v10245_v31 }
 0x1f4   : > { %5957 = vmatprep.mubr.msk.bf16.mxu1 %vm825_vm8, %v10246_v39 }
 0x1fb   : > { %5958 = vmatmul.mubr.msk.bf16.gmra.mxu1 %vm825_vm8, %v10247_v28  ;;  %v10269_v28 = vpack.c.bf16 %v8241_v43, %v8205_v63  ;;  %v2499_v63 = vsel %vm1214_vm5, %v8324_v40, 0.0  ;;  %v6331_v40 = vld [vmem:[%s9873_s4 + $0xd0] sm:$0xff]  }
 0x1fc   : > { %5981 = vmatprep.mubr.msk.bf16.mxu1 %vm825_vm8, %v10250_v47  ;;  %v8597_v6 = vpop.f32.mrf.mxu1  ;;  %v2500_v47 = vsel %vm1215_vm12, %v8369_v8, 0.0 }
 0x1fd   : > { %v2516_v43 = vpack.c.bf16 %v2500_v47, %v2499_v63  ;;  %v2802_v63 = vld [vmem:[#allocation2 + $0x70] sm:$0xff] }
 0x1fe   : > { %v8610_v16 = vpop.f32.mrf.mxu1 }
 0x200   : > { %v8615_v36 = vpop.f32.mrf.mxu1 }
 0x202   : > { %v8628_v49 = vpop.f32.mrf.mxu1 }
 0x203   : > { %5982 = vmatmul.mubr.msk.bf16.vlgmr.msra.gmra.mxu1 %vm825_vm8, %v10253_v45  ;;  %v2823_v45 = vpack.c.bf16 %v2792_v52, %v2791_v44  ;;  %v8694_v52 = vld [vmem:[%s9873_s4 + $0x118] sm:$0xff]   ;;  %v2801_v44 = vld [vmem:[#allocation2 + $0x68] sm:$0xff] }
 0x204   : > { %6002 = vmatpush3.bf16.msra.mxu1 %v6326_v13  ;;  %5985 = vmatprep.mubr.msk.bf16.mxu1 %vm825_vm8, %v10256_v53  ;;  %v10257_v13 = vld [vmem:[#allocation82_spill] sm:$0xff]  ;;  %v2796_v53 = vld [vmem:[#allocation2 + $0x40] sm:$0xff] }
 0x205   : > { %6003 = vmatprep.subr.bf16.mxu1 %v6327_v19  ;;  %v10259_v58 = vpack.c.bf16 %v10257_v13, %v10258_v15  ;;  %v2795_v15 = vld [vmem:[#allocation2 + $0x38] sm:$0xff] }
 0x208   : > { %6004 = vmatpush3.bf16.msra.mxu1 %v6327_v19 }
 0x209   : > { %6005 = vmatprep.subr.bf16.mxu1 %v6328_v41 }
 0x20b   : > { %5986 = vmatmul.mubr.msk.bf16.gmra.mxu1 %vm825_vm8, %v10259_v58  ;;  %v2825_v58 = vpack.c.bf16 %v2796_v53, %v2795_v15  ;;  %v2808_v15 = vld [vmem:[#allocation2 + $0xa0] sm:$0xff] }
 0x20c   : > { %5989 = vmatprep.mubr.msk.bf16.mxu1 %vm825_vm8, %v10262_v25  ;;  %6006 = vmatpush3.bf16.msra.mxu1 %v6328_v41  ;;  %v3868_v41 = vpack.c.bf16 %v3852_v46, %v3851_v50  ;;  %v2803_v50 = vld [vmem:[#allocation2 + $0x78] sm:$0xff] }
 0x20d   : > { %6007 = vmatprep.subr.bf16.mxu1 %v6329_v0  ;;  %v8630_v22 = vpop.f32.mrf.mxu1 }
 0x20e   : > { %6158 = vmatmul.mubr.msk.bf16.gmra.mxu0 %vm825_vm8, %v3868_v41 }
 0x20f   : > { %v8640_v31 = vpop.f32.mrf.mxu1  ;;  %4724 = vmatprep.mubr.bf16.mxu0 %v10273_v14 }
 0x210   : > { %6008 = vmatpush3.bf16.msra.mxu1 %v6329_v0  ;;  %v2793_v0 = vld [vmem:[#allocation2 + $0x28] sm:$0xff] }
 0x211   : > { %6081 = vmatprep.subr.bf16.mxu1 %v6330_v56  ;;  %v8642_v39 = vpop.f32.mrf.mxu1  ;;  %v2824_v13 = vpack.c.bf16 %v2794_v27, %v2793_v0  ;;  %v2828_v27 = vpack.c.bf16 %v2802_v63, %v2801_v44  ;;  %v2806_v0 = vld [vmem:[#allocation2 + $0x90] sm:$0xff]  ;;  %v2809_v63 = vld [vmem:[#allocation2 + $0xa8] sm:$0xff] }
 0x213   : > { %5990 = vmatmul.mubr.msk.bf16.gmra.mxu1 %vm825_vm8, %v10265_v17  ;;  %v8652_v55 = vpop.f32.mrf.mxu1  ;;  %v2800_v17 = vld [vmem:[#allocation2 + $0x60] sm:$0xff] }
 0x214   : > { %5993 = vmatprep.mubr.msk.bf16.mxu1 %vm825_vm8, %v10268_v34  ;;  %v2826_v34 = vpack.c.bf16 %v2798_v20, %v2797_v29  ;;  %v2807_v20 = vld [vmem:[#allocation2 + $0x98] sm:$0xff] }
 0x21b   : > { %5994 = vmatmul.mubr.msk.bf16.gmra.mxu1 %vm825_vm8, %v10269_v28  ;;  %v8657_v19 = vpop.f32.mrf.mxu1  ;;  %v2799_v28 = vld [vmem:[#allocation2 + $0x58] sm:$0xff] }
 0x21c   : > { %5997 = vmatprep.mubr.msk.bf16.mxu1 %vm825_vm8, %v10270_v1  ;;  %v2827_v1 = vpack.c.bf16 %v2800_v17, %v2799_v28  ;;  %v2831_v17 = vpack.c.bf16 %v2808_v15, %v2807_v20  ;;  %v2810_v28 = vld [vmem:[#allocation2 + $0xb0] sm:$0xff]  ;;  %v2813_v20 = vld [vmem:[#allocation2 + $0xc8] sm:$0xff] }
 0x21d   : > { %v8662_v37 = vpop.f32.mrf.mxu1  ;;  %v2832_v44 = vpack.c.bf16 %v2810_v28, %v2809_v63  ;;  %v2814_v15 = vld [vmem:[#allocation2 + $0xd0] sm:$0xff] }
 0x21e   : > { %10271 = vst [vmem:[#allocation17_spill] sm:$0xff] %v8662_v37  ;;  %v2834_v48 = vpack.c.bf16 %v2814_v15, %v2813_v20 }
 0x21f   : > { %v8666_v8 = vpop.f32.mrf.mxu1 }
 0x220   : > { %10272 = vst [vmem:[#allocation18_spill] sm:$0xff] %v8666_v8  ;;  %v10295_v8 = vld [vmem:[#allocation52_spill] sm:$0xff] }
 0x221   : > { %v8673_v11 = vpop.f32.mrf.mxu1 }
 0x222   : > { %10274 = vst [vmem:[#allocation24_spill] sm:$0xff] %v8673_v11 }
 0x223   : > { %5998 = vmatmul.mubr.msk.bf16.gmra.mxu1 %vm825_vm8, %v2516_v43  ;;  %v2804_v43 = vld [vmem:[#allocation2 + $0x80] sm:$0xff] }
 0x224   : > { %6009 = vmatprep.mubr.msk.bf16.mxu1 %vm825_vm8, %v2823_v45  ;;  %v2829_v46 = vpack.c.bf16 %v2804_v43, %v2803_v50 }
 0x22b   : > { %6010 = vmatmul.mubr.msk.bf16.vlgmr.msra.gmra.mxu1 %vm825_vm8, %v2824_v13 }
 0x22c   : > { %6082 = vmatpush3.bf16.msra.mxu1 %v6330_v56  ;;  %6013 = vmatprep.mubr.msk.bf16.mxu1 %vm825_vm8, %v2825_v58  ;;  %v6333_v56 = vld [vmem:[%s9873_s4 + $0xc0] sm:$0xff]  }
 0x22d   : > { %v8677_v25 = vpop.f32.mrf.mxu1  ;;  %6083 = vmatprep.subr.bf16.mxu1 %v6331_v40 }
 0x22e   : > { %10275 = vst [vmem:[#allocation20_spill] sm:$0xff] %v8677_v25  ;;  %v6336_v25 = vld [vmem:[%s9873_s4 + $0x108] sm:$0xff]  }
 0x22f   : > { %v8682_v3 = vpop.f32.mrf.mxu1 }
 0x230   : > { %6084 = vmatpush3.bf16.msra.mxu1 %v6331_v40  ;;  %10276 = vst [vmem:[#allocation23_spill] sm:$0xff] %v8682_v3  ;;  %v2805_v40 = vld [vmem:[#allocation2 + $0x88] sm:$0xff] }
 0x231   : > { %6085 = vmatprep.subr.bf16.mxu1 %v6332_v51  ;;  %v8689_v47 = vpop.f32.mrf.mxu1 }
 0x232   : > { %10277 = vst [vmem:[#allocation30_spill] sm:$0xff] %v8689_v47 }
 0x233   : > { %6014 = vmatmul.mubr.msk.bf16.gmra.mxu1 %vm825_vm8, %v2826_v34  ;;  %v8696_v45 = vpop.f32.mrf.mxu1 }
 0x234   : > { %6017 = vmatprep.mubr.msk.bf16.mxu1 %vm825_vm8, %v2827_v1  ;;  %6086 = vmatpush3.bf16.msra.mxu1 %v6332_v51  ;;  %v2830_v51 = vpack.c.bf16 %v2806_v0, %v2805_v40  ;;  %v2812_v1 = vld [vmem:[#allocation2 + $0xc0] sm:$0xff] }
 0x235   : > { %6087 = vmatprep.subr.bf16.mxu1 %v6333_v56 }
 0x238   : > { %6088 = vmatpush3.bf16.msra.mxu1 %v6333_v56 }
 0x239   : > { %6161 = vmatprep.subr.bf16.mxu1 %v8694_v52 }
 0x23b   : > { %v8699_v53 = vpop.f32.mrf.mxu1  ;;  %6018 = vmatmul.mubr.msk.bf16.gmra.mxu1 %vm825_vm8, %v2828_v27  ;;  %v2811_v27 = vld [vmem:[#allocation2 + $0xb8] sm:$0xff] }
 0x23c   : > { %6021 = vmatprep.mubr.msk.bf16.mxu1 %vm825_vm8, %v2829_v46  ;;  %v2833_v50 = vpack.c.bf16 %v2812_v1, %v2811_v27 }
 0x23d   : > { %v8703_v41 = vpop.f32.mrf.mxu1 }
 0x23f   : > { %v8705_v13 = vpop.f32.mrf.mxu1 }
 0x241   : > { %v8707_v58 = vpop.f32.mrf.mxu1 }
 0x243   : > { %v8709_v29 = vpop.f32.mrf.mxu1  ;;  %6022 = vmatmul.mubr.msk.bf16.gmra.mxu1 %vm825_vm8, %v2830_v51  ;;  %v2816_v51 = vld [vmem:[#allocation2 + $0xe0] sm:$0xff] }
 0x244   : > { %6025 = vmatprep.mubr.msk.bf16.mxu1 %vm825_vm8, %v2831_v17  ;;  %v2835_v28 = vpack.c.bf16 %v2816_v51, %v2815_v26  ;;  %v3468_v26 = vld [vmem:[#allocation2 + $0x2f] sm:$0xff] }
 0x245   : > { %v8713_v34 = vpop.f32.mrf.mxu1  ;;  %v3500_v20 = vsel %vm10278_vm11, %v3468_v26, 0.0  ;;  %v10282_v26 = vld [vmem:[#allocation34_spill] sm:$0xff] }
 0x247   : > { %v8715_v56 = vpop.f32.mrf.mxu1 }
 0x249   : > { %v8717_v43 = vpop.f32.mrf.mxu1 }
 0x24b   : > { %v8719_v46 = vpop.f32.mrf.mxu1  ;;  %6026 = vmatmul.mubr.msk.bf16.gmra.mxu1 %vm825_vm8, %v2832_v44 }
 0x24c   : > { %6029 = vmatprep.mubr.msk.bf16.mxu1 %vm825_vm8, %v2833_v50 }
 0x24d   : > { %v8723_v0 = vpop.f32.mrf.mxu1 }
 0x24f   : > { %v8725_v40 = vpop.f32.mrf.mxu1 }
 0x251   : > { %v8727_v17 = vpop.f32.mrf.mxu1 }
 0x253   : > { %v8729_v63 = vpop.f32.mrf.mxu1  ;;  %6030 = vmatmul.mubr.msk.bf16.gmra.mxu1 %vm825_vm8, %v2834_v48  ;;  %v3467_v48 = vld [vmem:[#allocation2 + $0x27] sm:$0xff] }
 0x254   : > { %6033 = vmatprep.mubr.msk.bf16.mxu1 %vm825_vm8, %v2835_v28  ;;  %v3499_v54 = vsel %vm10280_vm13, %v3467_v48, 0.0 }
 0x255   : > { %v8733_v1 = vpop.f32.mrf.mxu1  ;;  %v3531_v60 = vpack.c.bf16 %v3500_v20, %v3499_v54  ;;  %v10281_v54 = vld [vmem:[#allocation31_spill] sm:$0xff] }
 0x256   : > { %v10283_v48 = vpack.c.bf16 %v10281_v54, %v10282_v26 }
 0x257   : > { %v8735_v44 = vpop.f32.mrf.mxu1 }
 0x259   : > { %v8737_v27 = vpop.f32.mrf.mxu1 }
 0x25b   : > { %v8739_v50 = vpop.f32.mrf.mxu1  ;;  %6034 = vmatmul.mubr.msk.bf16.gmra.mxu1 %vm825_vm8, %v8229_v7 }
 0x25c   : > { %6037 = vmatprep.mubr.msk.bf16.mxu1 %vm825_vm8, %v8301_v30 }
 0x25d   : > { %v8745_v15 = vpop.f32.mrf.mxu1 }
 0x25f   : > { %v8747_v51 = vpop.f32.mrf.mxu1 }
 0x261   : > { %v8751_v28 = vpop.f32.mrf.mxu1 }
 0x263   : > { %v8755_v23 = vpop.f32.mrf.mxu1  ;;  %6038 = vmatmul.mubr.msk.bf16.gmra.mxu1 %vm825_vm8, %v8483_v59  ;;  %v10285_v59 = vld [vmem:[#allocation41_spill] sm:$0xff] }
 0x264   : > { %6089 = vmatprep.mubr.msk.bf16.mxu1 %vm825_vm8, %v3531_v60  ;;  %v10284_v60 = vld [vmem:[#allocation38_spill] sm:$0xff] }
 0x265   : > { %v8760_v7 = vpop.f32.mrf.mxu1  ;;  %v10286_v20 = vpack.c.bf16 %v10284_v60, %v10285_v59  ;;  %v10292_v60 = vld [vmem:[#allocation43_spill] sm:$0xff] }
 0x266   : > { %v1733_v10 = vadd.f32 %v8760_v7, %v8640_v31 }
 0x267   : > { %v8762_v30 = vpop.f32.mrf.mxu1 }
 0x269   : > { %v8764_v47 = vpop.f32.mrf.mxu1 }
 0x26b   : > { %v8769_v14 = vpop.f32.mrf.mxu1  ;;  %6090 = vmatmul.mubr.msk.bf16.vlgmr.msra.gmra.mxu1 %vm825_vm8, %v10283_v48  ;;  %v10291_v48 = vld [vmem:[#allocation47_spill] sm:$0xff] }
 0x26c   : > { %6162 = vmatpush3.bf16.msra.mxu1 %v8694_v52  ;;  %6093 = vmatprep.mubr.msk.bf16.mxu1 %vm825_vm8, %v10286_v20  ;;  %v6337_v52 = vld [vmem:[%s9873_s4 + $0x100] sm:$0xff]   ;;  %v10293_v59 = vpack.c.bf16 %v10291_v48, %v10292_v60  ;;  %v10294_v20 = vld [vmem:[#allocation53_spill] sm:$0xff]  ;;  %v10300_v60 = vld [vmem:[#allocation55_spill] sm:$0xff] }
 0x26d   : > { %v8780_v3 = vpop.f32.mrf.mxu1  ;;  %6163 = vmatprep.subr.bf16.mxu1 %v6335_v2  ;;  %v10299_v48 = vld [vmem:[#allocation60_spill] sm:$0xff] }
 0x26e   : > { %10287 = vst [vmem:[#allocation26_spill] sm:$0xff] %v8780_v3  ;;  %v10296_v3 = vpack.c.bf16 %v10294_v20, %v10295_v8 }
 0x26f   : > { %v8785_v11 = vpop.f32.mrf.mxu1 }
 0x270   : > { %10288 = vst [vmem:[#allocation37_spill] sm:$0xff] %v8785_v11  ;;  %6164 = vmatpush3.bf16.msra.mxu1 %v6335_v2 }
 0x271   : > { %v8787_v54 = vpop.f32.mrf.mxu1  ;;  %6165 = vmatprep.subr.bf16.mxu1 %v6336_v25 }
 0x272   : > { %10289 = vst [vmem:[#allocation33_spill] sm:$0xff] %v8787_v54 }
 0x273   : > { %v8792_v26 = vpop.f32.mrf.mxu1  ;;  %6094 = vmatmul.mubr.msk.bf16.gmra.mxu1 %vm825_vm8, %v10293_v59  ;;  %v10301_v59 = vpack.c.bf16 %v10299_v48, %v10300_v60  ;;  %v1677_v48 = vadd.f32 %v8709_v29, %v8530_v42  ;;  %v10305_v60 = vld [vmem:[#allocation75_spill] sm:$0xff]  ;;  %v8843_v42 = vpop.f32.mrf.mxu0  ;;  %v1680_v29 = vadd.f32 %v8715_v56, %v8542_v9  ;;  %v1685_v56 = vadd.f32 %v8723_v0, %v8556_v18 }
 0x274   : > { %10290 = vst [vmem:[#allocation28_spill] sm:$0xff] %v8792_v26  ;;  %6097 = vmatprep.mubr.msk.bf16.mxu1 %vm825_vm8, %v10296_v3  ;;  %6166 = vmatpush3.bf16.msra.mxu1 %v6336_v25  ;;  %v10302_v25 = vld [vmem:[#allocation67_spill] sm:$0xff]  ;;  %v10303_v3 = vld [vmem:[#allocation62_spill] sm:$0xff] }
 0x275   : > { %v8802_v2 = vpop.f32.mrf.mxu1  ;;  %6167 = vmatprep.subr.bf16.mxu1 %v6337_v52  ;;  %v10304_v20 = vpack.c.bf16 %v10302_v25, %v10303_v3  ;;  %v10309_v3 = vld [vmem:[#allocation78_spill] sm:$0xff] }
 0x277   : > { %v8804_v54 = vpop.f32.mrf.mxu1 }
 0x278   : > { %10297 = vst [vmem:[#allocation36_spill] sm:$0xff] %v8804_v54  ;;  %6168 = vmatpush3.bf16.msra.mxu1 %v6337_v52 }
 0x279   : > { %v1767_v11 = vpop.f32.mrf.mxu1 }
 0x27a   : > { %v8807_v26 = vadd.f32 %v1767_v11, %v8696_v45 }
 0x27b   : > { %v5919_v37 = vpop.f32.mrf.mxu1  ;;  %6098 = vmatmul.mubr.msk.bf16.gmra.mxu1 %vm825_vm8, %v10301_v59  ;;  %v10306_v59 = vld [vmem:[#allocation70_spill] sm:$0xff] }
 0x27c   : > { %10298 = vst [vmem:[#allocation45_spill] sm:$0xff] %v8807_v26  ;;  %v8814_v8 = vadd.f32 %v5919_v37, %v8699_v53  ;;  %6101 = vmatprep.mubr.msk.bf16.mxu1 %vm825_vm8, %v10304_v20  ;;  %v10307_v25 = vpack.c.bf16 %v10305_v60, %v10306_v59  ;;  %v1672_v60 = vadd.f32 %v8717_v43, %v8552_v57  ;;  %v10314_v43 = vld [vmem:[#allocation99_spill] sm:$0xff] }
 0x27d   : > { %v1780_v54 = vpop.f32.mrf.mxu1 }
 0x27e   : > { %v8821_v52 = vadd.f32 %v1780_v54, %v8703_v41  ;;  %v1669_v41 = vadd.f32 %v8713_v34, %v8540_v4  ;;  %v8853_v34 = vpop.f32.mrf.mxu0 }
 0x27f   : > { %v5920_v11 = vpop.f32.mrf.mxu1 }
 0x280   : > { %v8824_v45 = vadd.f32 %v5920_v11, %v8705_v13  ;;  %v10308_v13 = vld [vmem:[#allocation83_spill] sm:$0xff] }
 0x281   : > { %v1783_v26 = vpop.f32.mrf.mxu1  ;;  %v10310_v20 = vpack.c.bf16 %v10308_v13, %v10309_v3  ;;  %v10311_v13 = vld [vmem:[#allocation91_spill] sm:$0xff]  ;;  %v10312_v3 = vld [vmem:[#allocation86_spill] sm:$0xff] }
 0x282   : > { %v8829_v37 = vadd.f32 %v1783_v26, %v8707_v58  ;;  %v10313_v9 = vpack.c.bf16 %v10311_v13, %v10312_v3 }
 0x283   : > { %v5931_v53 = vpop.f32.mrf.mxu1  ;;  %6102 = vmatmul.mubr.msk.bf16.gmra.mxu1 %vm825_vm8, %v10307_v25 }
 0x284   : > { %v8837_v54 = vadd.f32 %v5931_v53, %v1677_v48  ;;  %6105 = vmatprep.mubr.msk.bf16.mxu1 %vm825_vm8, %v10310_v20  ;;  %v1693_v53 = vadd.f32 %v8719_v46, %v8554_v61  ;;  %v1696_v46 = vadd.f32 %v8725_v40, %v8566_v32  ;;  %v10317_v32 = vld [vmem:[#allocation105_spill] sm:$0xff]  ;;  %v10318_v40 = vld [vmem:[#allocation100_spill] sm:$0xff] }
 0x285   : > { %v2278_v58 = vpop.f32.mrf.mxu1 }
 0x286   : > { %v8847_v26 = vadd.f32 %v2278_v58, %v1669_v41  ;;  %v10315_v41 = vld [vmem:[#allocation94_spill] sm:$0xff]  ;;  %v8871_v58 = vpop.f32.mrf.mxu0 }
 0x287   : > { %v5932_v11 = vpop.f32.mrf.mxu1  ;;  %v10316_v20 = vpack.c.bf16 %v10314_v43, %v10315_v41  ;;  %v10321_v43 = vld [vmem:[#allocation10_spill] sm:$0xff] }
 0x288   : > { %v8851_v4 = vadd.f32 %v5932_v11, %v1680_v29  ;;  %v8881_v0 = vpop.f32.mrf.mxu0 }
 0x289   : > { %v2281_v48 = vpop.f32.mrf.mxu1 }
 0x28a   : > { %v8857_v59 = vadd.f32 %v2281_v48, %v1672_v60  ;;  %v1688_v60 = vadd.f32 %v8727_v17, %v8568_v21  ;;  %v8887_v13 = vpop.f32.mrf.mxu0  ;;  %v1701_v21 = vadd.f32 %v8733_v1, %v8580_v12 }
 0x28b   : > { %v5935_v25 = vpop.f32.mrf.mxu1  ;;  %6106 = vmatmul.mubr.msk.bf16.gmra.mxu1 %vm825_vm8, %v10313_v9  ;;  %v10319_v9 = vpack.c.bf16 %v10317_v32, %v10318_v40  ;;  %v3497_v40 = vld [vmem:[#allocation2 + $0x117] sm:$0xff] }
 0x28c   : > { %v8865_v57 = vadd.f32 %v5935_v25, %v1693_v53  ;;  %6109 = vmatprep.mubr.msk.bf16.mxu1 %vm825_vm8, %v10316_v20  ;;  %v1709_v53 = vadd.f32 %v8729_v63, %v8578_v24  ;;  %v1712_v63 = vadd.f32 %v8735_v44, %v8590_v62  ;;  %v10323_v62 = vld [vmem:[#allocation113_spill] sm:$0xff]  ;;  %v10324_v44 = vld [vmem:[#allocation7_spill] sm:$0xff] }
 0x28d   : > { %v2294_v61 = vpop.f32.mrf.mxu1  ;;  %v10325_v32 = vpack.c.bf16 %v10323_v62, %v10324_v44  ;;  %v1736_v44 = vadd.f32 %v8764_v47, %v8652_v55  ;;  %v10335_v47 = vld [vmem:[#allocation46_spill] sm:$0xff] }
 0x28e   : > { %v8875_v29 = vadd.f32 %v2294_v61, %v1685_v56  ;;  %v10320_v56 = vld [vmem:[#allocation108_spill] sm:$0xff]  ;;  %v8905_v61 = vpop.f32.mrf.mxu0 }
 0x28f   : > { %v5936_v11 = vpop.f32.mrf.mxu1  ;;  %v10322_v41 = vpack.c.bf16 %v10320_v56, %v10321_v43  ;;  %v3529_v43 = vsel %vm1214_vm5, %v3497_v40, 0.0  ;;  %v1757_v40 = vadd.f32 %v8769_v14, %v8657_v19  ;;  %v10338_v14 = vld [vmem:[#allocation18_spill] sm:$0xff] }
 0x290   : > { %v8879_v18 = vadd.f32 %v5936_v11, %v1696_v46  ;;  %v1704_v11 = vadd.f32 %v8737_v27, %v8592_v38  ;;  %v1717_v38 = vadd.f32 %v8745_v15, %v8610_v16 }
 0x291   : > { %v2297_v48 = vpop.f32.mrf.mxu1 }
 0x292   : > { %v8885_v25 = vadd.f32 %v2297_v48, %v1688_v60  ;;  %v1725_v60 = vadd.f32 %v8739_v50, %v8597_v6  ;;  %v3498_v6 = vld [vmem:[#allocation2 + $0x11f] sm:$0xff] }
 0x293   : > { %v5939_v3 = vpop.f32.mrf.mxu1  ;;  %6110 = vmatmul.mubr.msk.bf16.gmra.mxu1 %vm825_vm8, %v10319_v9  ;;  %v10326_v9 = vpack.c.bf16 %v8380_v35, %v8339_v33  ;;  %v3530_v15 = vsel %vm1215_vm12, %v3498_v6, 0.0  ;;  %v1720_v33 = vadd.f32 %v8751_v28, %v8628_v49  ;;  %v10327_v49 = vld [vmem:[#allocation29_spill] sm:$0xff]  ;;  %v10330_v6 = vld [vmem:[#allocation40_spill] sm:$0xff] }
 0x294   : > { %v8895_v17 = vadd.f32 %v5939_v3, %v1709_v53  ;;  %6113 = vmatprep.mubr.msk.bf16.mxu1 %vm825_vm8, %v10322_v41  ;;  %v8915_v53 = vpop.f32.mrf.mxu0  ;;  %v10328_v28 = vld [vmem:[#allocation21_spill] sm:$0xff] }
 0x295   : > { %v2310_v24 = vpop.f32.mrf.mxu1 }
 0x296   : > { %v8903_v20 = vadd.f32 %v2310_v24, %v1701_v21  ;;  %v1728_v21 = vadd.f32 %v8747_v51, %v8615_v36  ;;  %v8935_v41 = vpop.f32.mrf.mxu0  ;;  %v3546_v36 = vpack.c.bf16 %v3530_v15, %v3529_v43  ;;  %v1741_v51 = vadd.f32 %v8755_v23, %v8630_v22 }
 0x297   : > { %v5940_v46 = vpop.f32.mrf.mxu1  ;;  %v1744_v23 = vadd.f32 %v8762_v30, %v8642_v39  ;;  %v10333_v30 = vld [vmem:[#allocation17_spill] sm:$0xff] }
 0x298   : > { %v8909_v12 = vadd.f32 %v5940_v46, %v1712_v63  ;;  %v8943_v24 = vpop.f32.mrf.mxu0 }
 0x299   : > { %v2313_v1 = vpop.f32.mrf.mxu1 }
 0x29a   : > { %v8913_v48 = vadd.f32 %v2313_v1, %v1704_v11  ;;  %v10329_v1 = vpack.c.bf16 %v10327_v49, %v10328_v28  ;;  %v10341_v49 = vld [vmem:[#allocation33_spill] sm:$0xff] }
 0x29b   : > { %v5943_v3 = vpop.f32.mrf.mxu1  ;;  %6114 = vmatmul.mubr.msk.bf16.gmra.mxu1 %vm825_vm8, %v10325_v32 }
 0x29c   : > { %v8923_v27 = vadd.f32 %v5943_v3, %v1725_v60  ;;  %6117 = vmatprep.mubr.msk.bf16.mxu1 %vm825_vm8, %v10326_v9  ;;  %v8958_v60 = vpop.f32.mrf.mxu0 }
 0x29d   : > { %v2326_v50 = vpop.f32.mrf.mxu1 }
 0x29e   : > { %v8931_v56 = vadd.f32 %v2326_v50, %v1717_v38  ;;  %v8968_v7 = vpop.f32.mrf.mxu0  ;;  %v10331_v50 = vld [vmem:[#allocation42_spill] sm:$0xff] }
 0x29f   : > { %v5944_v16 = vpop.f32.mrf.mxu1  ;;  %v10332_v39 = vpack.c.bf16 %v10330_v6, %v10331_v50  ;;  %v10344_v6 = vld [vmem:[#allocation51_spill] sm:$0xff]  ;;  %v10345_v50 = vld [vmem:[#allocation50_spill] sm:$0xff] }
 0x2a0   : > { %v8941_v35 = vadd.f32 %v5944_v16, %v1728_v21  ;;  %v10334_v21 = vld [vmem:[#allocation26_spill] sm:$0xff]  ;;  %v10336_v16 = vld [vmem:[#allocation48_spill] sm:$0xff] }
 0x2a1   : > { %v2329_v63 = vpop.f32.mrf.mxu1  ;;  %v1749_v43 = vadd.f32 %v10334_v21, %v10333_v30  ;;  %v10337_v15 = vpack.c.bf16 %v10335_v47, %v10336_v16  ;;  %v10347_v30 = vld [vmem:[#allocation23_spill] sm:$0xff]  ;;  %v10348_v47 = vld [vmem:[#allocation57_spill] sm:$0xff]  ;;  %v10349_v16 = vld [vmem:[#allocation56_spill] sm:$0xff] }
 0x2a2   : > { %v8947_v5 = vadd.f32 %v2329_v63, %v1720_v33  ;;  %v8986_v33 = vpop.f32.mrf.mxu0  ;;  %v10339_v63 = vld [vmem:[#allocation37_spill] sm:$0xff]  ;;  %v1765_v21 = vadd.f32 %v8802_v2, %v10347_v30 }
 0x2a3   : > { %v5947_v46 = vpop.f32.mrf.mxu1  ;;  %6118 = vmatmul.mubr.msk.bf16.gmra.mxu1 %vm825_vm8, %v3546_v36  ;;  %v1760_v36 = vadd.f32 %v10339_v63, %v10338_v14  ;;  %v10351_v63 = vld [vmem:[#allocation30_spill] sm:$0xff] }
 0x2a4   : > { %v8952_v11 = vadd.f32 %v5947_v46, %v1741_v51  ;;  %6169 = vmatprep.mubr.msk.bf16.mxu1 %vm825_vm8, %v10329_v1 }
 0x2a5   : > { %v2342_v3 = vpop.f32.mrf.mxu1 }
 0x2a6   : > { %v8962_v22 = vadd.f32 %v2342_v3, %v1733_v10  ;;  %v10340_v10 = vld [vmem:[#allocation24_spill] sm:$0xff]  ;;  %v8996_v3 = vpop.f32.mrf.mxu0 }
 0x2a7   : > { %v5948_v62 = vpop.f32.mrf.mxu1  ;;  %v1752_v28 = vadd.f32 %v10341_v49, %v10340_v10 }
 0x2a8   : > { %v8966_v31 = vadd.f32 %v5948_v62, %v1744_v23  ;;  %v10342_v62 = vld [vmem:[#allocation20_spill] sm:$0xff] }
 0x2a9   : > { %v2345_v32 = vpop.f32.mrf.mxu1 }
 0x2aa   : > { %v8972_v38 = vadd.f32 %v2345_v32, %v1736_v44  ;;  %v10343_v44 = vld [vmem:[#allocation28_spill] sm:$0xff] }
 0x2ab   : > { %v5951_v9 = vpop.f32.mrf.mxu1  ;;  %6170 = vmatmul.mubr.msk.bf16.vlgmr.msra.gmra.mxu1 %vm825_vm8, %v10332_v39  ;;  %v1773_v32 = vadd.f32 %v10343_v44, %v10342_v62  ;;  %v10346_v39 = vpack.c.bf16 %v10344_v6, %v10345_v50  ;;  %v10353_v62 = vld [vmem:[#allocation45_spill] sm:$0xff]  ;;  %v10354_v50 = vld [vmem:[#allocation64_spill] sm:$0xff] }
 0x2ac   : > { %v8980_v55 = vadd.f32 %v5951_v9, %v1757_v40  ;;  %6173 = vmatprep.mubr.msk.bf16.mxu1 %vm825_vm8, %v10337_v15  ;;  %v10350_v15 = vpack.c.bf16 %v10348_v47, %v10349_v16  ;;  %v10357_v47 = vld [vmem:[#allocation72_spill] sm:$0xff]  ;;  %v10358_v16 = vld [vmem:[#allocation71_spill] sm:$0xff] }
 0x2ad   : > { %v2358_v19 = vpop.f32.mrf.mxu1 }
 0x2ae   : > { %v8990_v51 = vadd.f32 %v2358_v19, %v1749_v43  ;;  %v9014_v19 = vpop.f32.mrf.mxu0 }
 0x2af   : > { %v5952_v46 = vpop.f32.mrf.mxu1 }
 0x2b0   : > { %v8994_v1 = vadd.f32 %v5952_v46, %v1760_v36  ;;  %v10352_v36 = vld [vmem:[#allocation36_spill] sm:$0xff] }
 0x2b1   : > { %v2361_v23 = vpop.f32.mrf.mxu1  ;;  %v1776_v46 = vadd.f32 %v10352_v36, %v10351_v63 }
 0x2b2   : > { %v9000_v40 = vadd.f32 %v2361_v23, %v1752_v28  ;;  %v9022_v23 = vpop.f32.mrf.mxu0 }
 0x2b3   : > { %v5955_v9 = vpop.f32.mrf.mxu1  ;;  %6174 = vmatmul.mubr.msk.bf16.gmra.mxu1 %vm825_vm8, %v10346_v39  ;;  %v10355_v39 = vld [vmem:[#allocation63_spill] sm:$0xff] }
 0x2b4   : > { %v9008_v43 = vadd.f32 %v5955_v9, %v1773_v32  ;;  %6177 = vmatprep.mubr.msk.bf16.mxu1 %vm825_vm8, %v10350_v15  ;;  %v6338_v32 = vld [vmem:[%s9875_s6 + $0x30] ss:$8 sps:$4 sm:$0xff]   ;;  %v6340_v9 = vld [vmem:[%s9875_s6 + $0x34] ss:$8 sps:$4 sm:$0xff]   ;;  %v10356_v30 = vpack.c.bf16 %v10354_v50, %v10355_v39  ;;  %v10359_v15 = vpack.c.bf16 %v10357_v47, %v10358_v16  ;;  %v10362_v50 = vld [vmem:[#allocation80_spill] sm:$0xff] }
 0x2b5   : > { %v2374_v14 = vpop.f32.mrf.mxu1  ;;  %4700 = vmatprep.subr.bf16.mxu0 %v6340_v9  ;;  %v10363_v9 = vld [vmem:[#allocation79_spill] sm:$0xff] }
 0x2b6   : > { %v9018_v10 = vadd.f32 %v2374_v14, %v1765_v21  ;;  %v9044_v14 = vpop.f32.mrf.mxu0  ;;  %4701 = vmatpush1.bf16.msra.mxu0 %v6338_v32  ;;  %v10364_v39 = vpack.c.bf16 %v10362_v50, %v10363_v9  ;;  %v6343_v50 = vld [vmem:[%s9875_s6 + $0x24] ss:$8 sps:$4 sm:$0xff]  }
 0x2b7   : > { %v5956_v49 = vpop.f32.mrf.mxu1  ;;  %10360 = vst [vmem:[#allocation13_spill] sm:$0xff] %v9044_v14  ;;  %v10370_v9 = vld [vmem:[#allocation96_spill] sm:$0xff]  ;;  %4702 = vmatprep.subr.bf16.mxu0 %v6343_v50  ;;  %v10379_v50 = vld [vmem:[#allocation106_spill] sm:$0xff] }
 0x2b8   : > { %v9020_v28 = vadd.f32 %v5956_v49, %v1776_v46 }
 0x2b9   : > { %v2377_v2 = vpop.f32.mrf.mxu1 }
 0x2ba   : > { %v9025_v44 = vadd.f32 %v2377_v2, %v10353_v62  ;;  %v9052_v2 = vpop.f32.mrf.mxu0 }
 0x2bb   : > { %v5959_v6 = vpop.f32.mrf.mxu1  ;;  %6178 = vmatmul.mubr.msk.bf16.gmra.mxu1 %vm825_vm8, %v10356_v30  ;;  %10361 = vst [vmem:[#allocation12_spill] sm:$0xff] %v9052_v2  ;;  %v10366_v30 = vld [vmem:[#allocation87_spill] sm:$0xff] }
 0x2bc   : > { %v9038_v21 = vadd.f32 %v5959_v6, %v8814_v8  ;;  %6181 = vmatprep.mubr.msk.bf16.mxu1 %vm825_vm8, %v10359_v15 }
 0x2bd   : > { %v2390_v63 = vpop.f32.mrf.mxu1 }
 0x2be   : > { %v9047_v36 = vadd.f32 %v2390_v63, %v8821_v52  ;;  %v10365_v52 = vld [vmem:[#allocation88_spill] sm:$0xff] }
 0x2bf   : > { %v5960_v46 = vpop.f32.mrf.mxu1  ;;  %v10367_v47 = vpack.c.bf16 %v10365_v52, %v10366_v30  ;;  %v10373_v30 = vld [vmem:[#allocation102_spill] sm:$0xff] }
 0x2c0   : > { %v9050_v49 = vadd.f32 %v5960_v46, %v8824_v45  ;;  %v9068_v45 = vpop.f32.mrf.mxu0 }
 0x2c1   : > { %v2393_v8 = vpop.f32.mrf.mxu1  ;;  %10368 = vst [vmem:[#allocation15_spill] sm:$0xff] %v9068_v45 }
 0x2c2   : > { %v9055_v62 = vadd.f32 %v2393_v8, %v8829_v37  ;;  %v9076_v46 = vpop.f32.mrf.mxu0 }
 0x2c3   : > { %v5983_v6 = vpop.f32.mrf.mxu1  ;;  %6182 = vmatmul.mubr.msk.bf16.gmra.mxu1 %vm825_vm8, %v10364_v39  ;;  %10369 = vst [vmem:[#allocation14_spill] sm:$0xff] %v9076_v46  ;;  %v10371_v39 = vld [vmem:[#allocation95_spill] sm:$0xff] }
 0x2c4   : > { %v9062_v32 = vadd.f32 %v5983_v6, %v8923_v27  ;;  %6185 = vmatprep.mubr.msk.bf16.mxu1 %vm825_vm8, %v10367_v47  ;;  %v6341_v6 = vld [vmem:[%s9875_s6 + $0x20] ss:$8 sps:$4 sm:$0xff]   ;;  %v10372_v52 = vpack.c.bf16 %v10370_v9, %v10371_v39 }
 0x2c5   : > { %v2680_v16 = vpop.f32.mrf.mxu1  ;;  %4703 = vmatpush1.bf16.msra.mxu0 %v6341_v6 }
 0x2c6   : > { %v9071_v37 = vadd.f32 %v2680_v16, %v8931_v56  ;;  %v9098_v16 = vpop.f32.mrf.mxu0 }
 0x2c7   : > { %v5984_v15 = vpop.f32.mrf.mxu1  ;;  %10376 = vst [vmem:[#allocation19_spill] sm:$0xff] %v9098_v16 }
 0x2c8   : > { %v9074_v63 = vadd.f32 %v5984_v15, %v8941_v35  ;;  %v9106_v39 = vpop.f32.mrf.mxu0 }
 0x2c9   : > { %v2683_v8 = vpop.f32.mrf.mxu1  ;;  %10377 = vst [vmem:[#allocation16_spill] sm:$0xff] %v9106_v39 }
 0x2ca   : > { %v9079_v27 = vadd.f32 %v2683_v8, %v8947_v5  ;;  %v10374_v5 = vld [vmem:[#allocation101_spill] sm:$0xff] }
 0x2cb   : > { %v5987_v56 = vpop.f32.mrf.mxu1  ;;  %6186 = vmatmul.mubr.msk.bf16.gmra.mxu1 %vm825_vm8, %v10372_v52  ;;  %v10375_v47 = vpack.c.bf16 %v10373_v30, %v10374_v5  ;;  %v10378_v30 = vld [vmem:[#allocation107_spill] sm:$0xff] }
 0x2cc   : > { %v9092_v35 = vadd.f32 %v5987_v56, %v8952_v11  ;;  %v10380_v5 = vpack.c.bf16 %v10378_v30, %v10379_v50 }
 0x2cd   : > { %6189 = vmatprep.mubr.msk.bf16.mxu1 %vm825_vm8, %v10375_v47  ;;  %v2696_v15 = vpop.f32.mrf.mxu1  ;;  %v10382_v47 = vld [vmem:[#allocation110_spill] sm:$0xff] }
 0x2ce   : > { %v9101_v8 = vadd.f32 %v2696_v15, %v8962_v22  ;;  %v10381_v22 = vld [vmem:[#allocation111_spill] sm:$0xff] }
 0x2cf   : > { %v5988_v14 = vpop.f32.mrf.mxu1  ;;  %v10383_v15 = vpack.c.bf16 %v10381_v22, %v10382_v47  ;;  %v4174_v22 = vld [vmem:[#allocation2 + $0x121] sm:$0xff] }
 0x2d0   : > { %v9104_v9 = vadd.f32 %v5988_v14, %v8966_v31  ;;  %v9122_v31 = vpop.f32.mrf.mxu0 }
 0x2d1   : > { %v2699_v11 = vpop.f32.mrf.mxu1  ;;  %10384 = vst [vmem:[#allocation25_spill] sm:$0xff] %v9122_v31 }
 0x2d2   : > { %v9109_v56 = vadd.f32 %v2699_v11, %v8972_v38  ;;  %v9130_v30 = vpop.f32.mrf.mxu0 }
 0x2d3   : > { %v5991_v52 = vpop.f32.mrf.mxu1  ;;  %6190 = vmatmul.mubr.msk.bf16.gmra.mxu1 %vm825_vm8, %v10380_v5  ;;  %10385 = vst [vmem:[#allocation22_spill] sm:$0xff] %v9130_v30  ;;  %v6346_v5 = vld [vmem:[%s9875_s6 + $0x14] ss:$8 sps:$4 sm:$0xff]  }
 0x2d4   : > { %v9116_v6 = vadd.f32 %v5991_v52, %v8980_v55  ;;  %6193 = vmatprep.mubr.msk.bf16.mxu1 %vm825_vm8, %v10383_v15  ;;  %v6344_v52 = vld [vmem:[%s9875_s6 + $0x10] ss:$8 sps:$4 sm:$0xff]   ;;  %4704 = vmatprep.subr.bf16.mxu0 %v6346_v5  ;;  %v9152_v31 = vpop.f32.mrf.mxu0 }
 0x2d5   : > { %v2712_v14 = vpop.f32.mrf.mxu1  ;;  %v10386_v15 = vld [vmem:[#allocation115_spill] sm:$0xff]  ;;  %4705 = vmatpush1.bf16.msra.mxu0 %v6344_v52 }
 0x2d6   : > { %v9125_v38 = vadd.f32 %v2712_v14, %v8990_v51  ;;  %v4173_v51 = vld [vmem:[#allocation2 + $0x119] sm:$0xff] }
 0x2d7   : > { %v5992_v11 = vpop.f32.mrf.mxu1  ;;  %v4205_v45 = vsel %vm2113_vm15, %v4173_v51, 0.0 }
 0x2d8   : > { %v9128_v39 = vadd.f32 %v5992_v11, %v8994_v1  ;;  %v10387_v1 = vld [vmem:[#allocation114_spill] sm:$0xff] }
 0x2d9   : > { %v2715_v50 = vpop.f32.mrf.mxu1  ;;  %v10388_v14 = vpack.c.bf16 %v10386_v15, %v10387_v1  ;;  %v4206_v15 = vsel %vm2114_vm10, %v4174_v22, 0.0 }
 0x2da   : > { %v9133_v55 = vadd.f32 %v2715_v50, %v9000_v40  ;;  %v10389_v40 = vld [vmem:[#allocation117_spill] sm:$0xff]  ;;  %v10390_v50 = vld [vmem:[#allocation116_spill] sm:$0xff] }
 0x2db   : > { %v5995_v47 = vpop.f32.mrf.mxu1  ;;  %6194 = vmatmul.mubr.msk.bf16.gmra.mxu1 %vm825_vm8, %v10388_v14  ;;  %v10391_v30 = vpack.c.bf16 %v10389_v40, %v10390_v50  ;;  %v4222_v14 = vpack.c.bf16 %v4206_v15, %v4205_v45  ;;  %v6347_v50 = vld [vmem:[%s9875_s6] ss:$8 sps:$4 sm:$0xff]  }
 0x2dc   : > { %v9146_v11 = vadd.f32 %v5995_v47, %v9008_v43 }
 0x2dd   : > { %6197 = vmatprep.mubr.msk.bf16.mxu1 %vm825_vm8, %v10391_v30  ;;  %v2728_v16 = vpop.f32.mrf.mxu1  ;;  %v9164_v30 = vpop.f32.mrf.mxu0 }
 0x2de   : > { %v9159_v1 = vadd.f32 %v2728_v16, %v9018_v10 }
 0x2df   : > { %v5996_v43 = vpop.f32.mrf.mxu1  ;;  %v9173_v46 = vpop.f32.mrf.mxu0 }
 0x2e0   : > { %v9162_v47 = vadd.f32 %v5996_v43, %v9020_v28  ;;  %v2759_v43 = vadd.f32 %v8853_v34, %v8847_v26 }
 0x2e1   : > { %v2731_v5 = vpop.f32.mrf.mxu1  ;;  %v9181_v51 = vpop.f32.mrf.mxu0 }
 0x2e2   : > { %v9167_v40 = vadd.f32 %v2731_v5, %v9025_v44 }
 0x2e3   : > { %v5999_v52 = vpop.f32.mrf.mxu1  ;;  %6198 = vmatmul.mubr.msk.bf16.gmra.mxu1 %vm825_vm8, %v4222_v14 }
 0x2e4   : > { %v9171_v2 = vadd.f32 %v5999_v52, %v9038_v21  ;;  %v2761_v21 = vadd.f32 %v8843_v42, %v8837_v54  ;;  %v2762_v42 = vadd.f32 %v8871_v58, %v8851_v4  ;;  %v2763_v4 = vadd.f32 %v8905_v61, %v8875_v29 }
 0x2e5   : > { %v2744_v10 = vpop.f32.mrf.mxu1  ;;  %v2769_v29 = vadd.f32 %v8943_v24, %v8895_v17  ;;  %v2768_v17 = vadd.f32 %v8986_v33, %v8913_v48 }
 0x2e6   : > { %v9176_v16 = vadd.f32 %v2744_v10, %v9047_v36  ;;  %v6349_v36 = vld [vmem:[%s9875_s6 + $0x4] ss:$8 sps:$4 sm:$0xff]   ;;  %v2760_v10 = vadd.f32 %v8881_v0, %v8857_v59 }
 0x2e7   : > { %v6000_v28 = vpop.f32.mrf.mxu1  ;;  %4706 = vmatprep.subr.bf16.mxu0 %v6349_v36 }
 0x2e8   : > { %v9179_v45 = vadd.f32 %v6000_v28, %v9050_v49  ;;  %4707 = vmatpush1.bf16.msra.mxu0 %v6347_v50 }
 0x2e9   : > { %v2747_v44 = vpop.f32.mrf.mxu1 }
 0x2ea   : > { %v9184_v22 = vadd.f32 %v2747_v44, %v9055_v62  ;;  %v9198_v62 = vpop.f32.mrf.mxu0 }
 0x2eb   : > { %v6011_v15 = vpop.f32.mrf.mxu1 }
 0x2ec   : > { %v9194_v49 = vadd.f32 %v6011_v15, %v2761_v21  ;;  %v9209_v44 = vpop.f32.mrf.mxu0  ;;  %v2765_v21 = vadd.f32 %v8887_v13, %v8865_v57  ;;  %v2764_v57 = vadd.f32 %v8935_v41, %v8885_v25  ;;  %v2770_v25 = vadd.f32 %v8968_v7, %v8909_v12 }
 0x2ed   : > { %v2954_v14 = vpop.f32.mrf.mxu1 }
 0x2ee   : > { %v3081_v54 = vadd.f32 %v2954_v14, %v2759_v43  ;;  %v9219_v58 = vpop.f32.mrf.mxu0 }
 0x2ef   : > { %v6012_v5 = vpop.f32.mrf.mxu1 }
 0x2f0   : > { %v9202_v52 = vadd.f32 %v6012_v5, %v2762_v42  ;;  %v9207_v28 = vadd.f32 %v9014_v19, %v3081_v54  ;;  %v2766_v19 = vadd.f32 %v8915_v53, %v8879_v18  ;;  %v9229_v13 = vpop.f32.mrf.mxu0  ;;  %v2767_v18 = vadd.f32 %v8958_v60, %v8903_v20 }
 0x2f1   : > { %v2957_v26 = vpop.f32.mrf.mxu1 }
 0x2f2   : > { %v9211_v34 = vadd.f32 %v2957_v26, %v2760_v10  ;;  %v9239_v53 = vpop.f32.mrf.mxu0 }
 0x2f3   : > { %v6015_v50 = vpop.f32.mrf.mxu1 }
 0x2f4   : > { %10394 = vst [vmem:[#allocation32_spill] sm:$0xff] %v9211_v34  ;;  %v9215_v36 = vadd.f32 %v6015_v50, %v2765_v21  ;;  %v9245_v41 = vpop.f32.mrf.mxu0 }
 0x2f5   : > { %v2970_v59 = vpop.f32.mrf.mxu1 }
 0x2f6   : > { %v9221_v0 = vadd.f32 %v2970_v59, %v2763_v4  ;;  %v9253_v20 = vpop.f32.mrf.mxu0 }
 0x2f7   : > { %v6016_v15 = vpop.f32.mrf.mxu1 }
 0x2f8   : > { %v9225_v43 = vadd.f32 %v6016_v15, %v2766_v19  ;;  %v9261_v7 = vpop.f32.mrf.mxu0 }
 0x2f9   : > { %v2973_v14 = vpop.f32.mrf.mxu1 }
 0x2fa   : > { %v9231_v54 = vadd.f32 %v2973_v14, %v2764_v57  ;;  %v9269_v57 = vpop.f32.mrf.mxu0 }
 0x2fb   : > { %v6019_v61 = vpop.f32.mrf.mxu1 }
 0x2fc   : > { %v9235_v42 = vadd.f32 %v6019_v61, %v2769_v29  ;;  %v9274_v29 = vpop.f32.mrf.mxu0 }
 0x2fd   : > { %v2986_v5 = vpop.f32.mrf.mxu1 }
 0x2fe   : > { %v9241_v10 = vadd.f32 %v2986_v5, %v2767_v18  ;;  %v9282_v5 = vpop.f32.mrf.mxu0 }
 0x2ff   : > { %v6020_v26 = vpop.f32.mrf.mxu1 }
 0x300   : > { %v9247_v21 = vadd.f32 %v6020_v26, %v2770_v25 }
 0x301   : > { %v2989_v24 = vpop.f32.mrf.mxu1 }
 0x302   : > { %v9251_v50 = vadd.f32 %v2989_v24, %v2768_v17  ;;  %v9290_v17 = vpop.f32.mrf.mxu0 }
 0x303   : > { %v6023_v60 = vpop.f32.mrf.mxu1 }
 0x304   : > { %v9256_v4 = vadd.f32 %v6023_v60, %v9062_v32 }
 0x305   : > { %v3002_v59 = vpop.f32.mrf.mxu1 }
 0x306   : > { %v9259_v12 = vadd.f32 %v3002_v59, %v9071_v37  ;;  %v9298_v59 = vpop.f32.mrf.mxu0 }
 0x307   : > { %v6024_v19 = vpop.f32.mrf.mxu1 }
 0x308   : > { %v9264_v15 = vadd.f32 %v6024_v19, %v9074_v63 }
 0x309   : > { %v3005_v48 = vpop.f32.mrf.mxu1 }
 0x30a   : > { %v9267_v33 = vadd.f32 %v3005_v48, %v9079_v27  ;;  %v9303_v48 = vpop.f32.mrf.mxu0 }
 0x30b   : > { %v6027_v14 = vpop.f32.mrf.mxu1 }
 0x30c   : > { %v9272_v32 = vadd.f32 %v6027_v14, %v9092_v35 }
 0x30d   : > { %v3018_v37 = vpop.f32.mrf.mxu1 }
 0x30e   : > { %v9277_v61 = vadd.f32 %v3018_v37, %v9101_v8 }
 0x30f   : > { %v6028_v18 = vpop.f32.mrf.mxu1 }
 0x310   : > { %v9280_v63 = vadd.f32 %v6028_v18, %v9104_v9  ;;  %v9311_v18 = vpop.f32.mrf.mxu0 }
 0x311   : > { %v3021_v27 = vpop.f32.mrf.mxu1 }
 0x312   : > { %v9285_v25 = vadd.f32 %v3021_v27, %v9109_v56 }
 0x313   : > { %v6031_v26 = vpop.f32.mrf.mxu1 }
 0x314   : > { %v9288_v35 = vadd.f32 %v6031_v26, %v9116_v6 }
 0x315   : > { %v3034_v24 = vpop.f32.mrf.mxu1 }
 0x316   : > { %v9293_v8 = vadd.f32 %v3034_v24, %v9125_v38  ;;  %v9319_v24 = vpop.f32.mrf.mxu0 }
 0x317   : > { %v6032_v60 = vpop.f32.mrf.mxu1 }
 0x318   : > { %v9296_v9 = vadd.f32 %v6032_v60, %v9128_v39 }
 0x319   : > { %v3037_v19 = vpop.f32.mrf.mxu1 }
 0x31a   : > { %v9301_v56 = vadd.f32 %v3037_v19, %v9133_v55 }
 0x31b   : > { %v6035_v6 = vpop.f32.mrf.mxu1 }
 0x31c   : > { %v9306_v14 = vadd.f32 %v6035_v6, %v9146_v11  ;;  %v9327_v6 = vpop.f32.mrf.mxu0 }
 0x31d   : > { %v3050_v37 = vpop.f32.mrf.mxu1  ;;  %10395 = vst [vmem:[#allocation27_spill] sm:$0xff] %v9327_v6 }
 0x31e   : > { %v9309_v38 = vadd.f32 %v3050_v37, %v9159_v1  ;;  %v9337_v34 = vpop.f32.mrf.mxu0 }
 0x31f   : > { %v6036_v39 = vpop.f32.mrf.mxu1  ;;  %10396 = vst [vmem:[#allocation39_spill] sm:$0xff] %v9337_v34 }
 0x320   : > { %v9314_v27 = vadd.f32 %v6036_v39, %v9162_v47 }
 0x321   : > { %v3053_v26 = vpop.f32.mrf.mxu1 }
 0x322   : > { %v9317_v55 = vadd.f32 %v3053_v26, %v9167_v40  ;;  %v3437_v26 = vadd.f32 %v8996_v3, %v9194_v49  ;;  %v10400_v3 = vld [vmem:[#allocation12_spill] sm:$0xff] }
 0x323   : > { %v6039_v60 = vpop.f32.mrf.mxu1  ;;  %v3441_v49 = vadd.f32 %v10400_v3, %v9215_v36  ;;  %v10405_v36 = vld [vmem:[#allocation19_spill] sm:$0xff] }
 0x324   : > { %v9322_v11 = vadd.f32 %v6039_v60, %v9171_v2  ;;  %v3440_v3 = vadd.f32 %v10405_v36, %v9231_v54 }
 0x325   : > { %v3066_v19 = vpop.f32.mrf.mxu1 }
 0x326   : > { %v9325_v1 = vadd.f32 %v3066_v19, %v9176_v16 }
 0x327   : > { %v6040_v37 = vpop.f32.mrf.mxu1 }
 0x328   : > { %v9330_v47 = vadd.f32 %v6040_v37, %v9179_v45  ;;  %v3438_v45 = vadd.f32 %v9022_v23, %v9202_v52  ;;  %v9346_v37 = vpop.f32.mrf.mxu0  ;;  %v10404_v52 = vld [vmem:[#allocation14_spill] sm:$0xff] }
 0x329   : > { %v3069_v39 = vpop.f32.mrf.mxu1  ;;  %10398 = vst [vmem:[#allocation49_spill] sm:$0xff] %v9346_v37 }
 0x32a   : > { %v9333_v40 = vadd.f32 %v3069_v39, %v9184_v22  ;;  %v9354_v34 = vpop.f32.mrf.mxu0 }
 0x32b   : > { %v6091_v2 = vpop.f32.mrf.mxu1  ;;  %10401 = vst [vmem:[#allocation58_spill] sm:$0xff] %v9354_v34 }
 0x32c   : > { %v9339_v60 = vadd.f32 %v6091_v2, %v3437_v26 }
 0x32d   : > { %v3662_v16 = vpop.f32.mrf.mxu1 }
 0x32e   : > { %v9342_v19 = vadd.f32 %v3662_v16, %v9207_v28  ;;  %v10402_v28 = vld [vmem:[#allocation15_spill] sm:$0xff] }
 0x32f   : > { %v6092_v6 = vpop.f32.mrf.mxu1  ;;  %v3439_v16 = vadd.f32 %v10402_v28, %v9221_v0 }
 0x330   : > { %10397 = vst [vmem:[#allocation35_spill] sm:$0xff] %v9342_v19  ;;  %v9348_v22 = vadd.f32 %v6092_v6, %v3438_v45  ;;  %v3442_v6 = vadd.f32 %v10404_v52, %v9225_v43  ;;  %v9364_v45 = vpop.f32.mrf.mxu0  ;;  %v10407_v43 = vld [vmem:[#allocation25_spill] sm:$0xff] }
 0x331   : > { %v9350_v39 = vpop.f32.mrf.mxu1  ;;  %v3443_v52 = vadd.f32 %v10407_v43, %v9241_v10  ;;  %v3449_v10 = vadd.f32 %v9164_v30, %v9256_v4  ;;  %v3448_v30 = vadd.f32 %v9198_v62, %v9267_v33  ;;  %v3454_v62 = vadd.f32 %v9229_v13, %v9280_v63 }
 0x332   : > { %10399 = vst [vmem:[#allocation44_spill] sm:$0xff] %v9348_v22  ;;  %v9374_v28 = vpop.f32.mrf.mxu0  ;;  %v3455_v13 = vadd.f32 %v9253_v20, %v9293_v8  ;;  %v3461_v20 = vadd.f32 %v9274_v29, %v9306_v14  ;;  %v3460_v29 = vadd.f32 %v9298_v59, %v9317_v55  ;;  %v3466_v59 = vadd.f32 %v9319_v24, %v9330_v47 }
 0x333   : > { %v6095_v26 = vpop.f32.mrf.mxu1 }
 0x334   : > { %v9356_v2 = vadd.f32 %v6095_v26, %v3441_v49  ;;  %v10406_v26 = vld [vmem:[#allocation16_spill] sm:$0xff]  ;;  %v9384_v36 = vpop.f32.mrf.mxu0 }
 0x335   : > { %v3678_v19 = vpop.f32.mrf.mxu1  ;;  %v3445_v0 = vadd.f32 %v10406_v26, %v9235_v42  ;;  %v3444_v42 = vadd.f32 %v9152_v31, %v9251_v50  ;;  %v3450_v31 = vadd.f32 %v9181_v51, %v9264_v15  ;;  %v3451_v51 = vadd.f32 %v9219_v58, %v9277_v61 }
 0x336   : > { %v9360_v23 = vadd.f32 %v3678_v19, %v3439_v16  ;;  %v3457_v58 = vadd.f32 %v9245_v41, %v9288_v35  ;;  %v3456_v41 = vadd.f32 %v9269_v57, %v9301_v56  ;;  %v3462_v57 = vadd.f32 %v9290_v17, %v9314_v27 }
 0x337   : > { %v6096_v22 = vpop.f32.mrf.mxu1  ;;  %v3463_v17 = vadd.f32 %v9311_v18, %v9325_v1  ;;  %v10412_v18 = vld [vmem:[#allocation39_spill] sm:$0xff] }
 0x338   : > { %10403 = vst [vmem:[#allocation68_spill] sm:$0xff] %v9360_v23  ;;  %v9366_v37 = vadd.f32 %v6096_v22, %v3442_v6  ;;  %v10408_v6 = vld [vmem:[#allocation22_spill] sm:$0xff]  ;;  %v4113_v1 = vadd.f32 %v10412_v18, %v9339_v60  ;;  %v4117_v18 = vadd.f32 %v9374_v28, %v9356_v2 }
 0x339   : > { %v3681_v34 = vpop.f32.mrf.mxu1  ;;  %v3446_v54 = vadd.f32 %v10408_v6, %v9247_v21  ;;  %v3447_v21 = vadd.f32 %v9173_v46, %v9259_v12  ;;  %v3453_v46 = vadd.f32 %v9209_v44, %v9272_v32  ;;  %v3452_v44 = vadd.f32 %v9239_v53, %v9285_v25 }
 0x33a   : > { %v9370_v49 = vadd.f32 %v3681_v34, %v3440_v3  ;;  %v3458_v53 = vadd.f32 %v9261_v7, %v9296_v9  ;;  %v3459_v7 = vadd.f32 %v9282_v5, %v9309_v38  ;;  %v3465_v5 = vadd.f32 %v9303_v48, %v9322_v11  ;;  %v10409_v48 = vld [vmem:[#allocation27_spill] sm:$0xff] }
 0x33b   : > { %v6099_v19 = vpop.f32.mrf.mxu1  ;;  %v3464_v11 = vadd.f32 %v10409_v48, %v9333_v40  ;;  %v9504_v40 = vld [vmem:[%s9874_s5] ss:$0 sm:$0xff] }
 0x33c   : > { %v9376_v16 = vadd.f32 %v6099_v19, %v3445_v0  ;;  %v9394_v19 = vpop.f32.mrf.mxu0 }
 0x33d   : > { %v3694_v23 = vpop.f32.mrf.mxu1 }
 0x33e   : > { %v9380_v22 = vadd.f32 %v3694_v23, %v3443_v52  ;;  %v9404_v50 = vpop.f32.mrf.mxu0 }
 0x33f   : > { %v6100_v34 = vpop.f32.mrf.mxu1 }
 0x340   : > { %v9386_v3 = vadd.f32 %v6100_v34, %v3446_v54  ;;  %v9414_v12 = vpop.f32.mrf.mxu0 }
 0x341   : > { %v3697_v26 = vpop.f32.mrf.mxu1 }
 0x342   : > { %v9390_v0 = vadd.f32 %v3697_v26, %v3444_v42  ;;  %v9424_v33 = vpop.f32.mrf.mxu0 }
 0x343   : > { %v6103_v23 = vpop.f32.mrf.mxu1 }
 0x344   : > { %v9396_v43 = vadd.f32 %v6103_v23, %v3449_v10  ;;  %v9434_v61 = vpop.f32.mrf.mxu0 }
 0x345   : > { %v3710_v52 = vpop.f32.mrf.mxu1 }
 0x346   : > { %v9400_v6 = vadd.f32 %v3710_v52, %v3447_v21  ;;  %v9444_v25 = vpop.f32.mrf.mxu0 }
 0x347   : > { %v6104_v54 = vpop.f32.mrf.mxu1 }
 0x348   : > { %v9406_v34 = vadd.f32 %v6104_v54, %v3450_v31  ;;  %v9454_v8 = vpop.f32.mrf.mxu0 }
 0x349   : > { %v3713_v4 = vpop.f32.mrf.mxu1 }
 0x34a   : > { %v9410_v42 = vadd.f32 %v3713_v4, %v3448_v30  ;;  %v9464_v56 = vpop.f32.mrf.mxu0 }
 0x34b   : > { %v6107_v26 = vpop.f32.mrf.mxu1 }
 0x34c   : > { %v9416_v10 = vadd.f32 %v6107_v26, %v3453_v46  ;;  %v9474_v38 = vpop.f32.mrf.mxu0 }
 0x34d   : > { %v3726_v15 = vpop.f32.mrf.mxu1 }
 0x34e   : > { %v9420_v23 = vadd.f32 %v3726_v15, %v3451_v51  ;;  %v9484_v55 = vpop.f32.mrf.mxu0 }
 0x34f   : > { %v6108_v21 = vpop.f32.mrf.mxu1 }
 0x350   : > { %v9426_v52 = vadd.f32 %v6108_v21, %v3454_v62 }
 0x351   : > { %v3729_v32 = vpop.f32.mrf.mxu1 }
 0x352   : > { %v9430_v31 = vadd.f32 %v3729_v32, %v3452_v44 }
 0x353   : > { %v6111_v54 = vpop.f32.mrf.mxu1 }
 0x354   : > { %v9436_v30 = vadd.f32 %v6111_v54, %v3457_v58 }
 0x355   : > { %v3742_v63 = vpop.f32.mrf.mxu1 }
 0x356   : > { %v9440_v4 = vadd.f32 %v3742_v63, %v3455_v13 }
 0x357   : > { %v6112_v46 = vpop.f32.mrf.mxu1 }
 0x358   : > { %v9446_v26 = vadd.f32 %v6112_v46, %v3458_v53 }
 0x359   : > { %v3745_v35 = vpop.f32.mrf.mxu1 }
 0x35a   : > { %v9450_v51 = vadd.f32 %v3745_v35, %v3456_v41  ;;  %v10410_v35 = vld [vmem:[#allocation32_spill] sm:$0xff] }
 0x35b   : > { %v6115_v15 = vpop.f32.mrf.mxu1 }
 0x35c   : > { %v9456_v62 = vadd.f32 %v6115_v15, %v3461_v20  ;;  %v10411_v20 = vld [vmem:[#allocation13_spill] sm:$0xff] }
 0x35d   : > { %v3758_v9 = vpop.f32.mrf.mxu1  ;;  %v3436_v15 = vadd.f32 %v10411_v20, %v10410_v35 }
 0x35e   : > { %v9460_v21 = vadd.f32 %v3758_v9, %v3459_v7  ;;  %v9496_v9 = vpop.f32.mrf.mxu0 }
 0x35f   : > { %v6116_v44 = vpop.f32.mrf.mxu1  ;;  %v3790_v47 = vadd.f32 %v9350_v39, %v3436_v15 }
 0x360   : > { %v9466_v32 = vadd.f32 %v6116_v44, %v3462_v57  ;;  %v10413_v44 = vld [vmem:[#allocation35_spill] sm:$0xff]  ;;  %v9508_v60 = vpop.f32.mrf.mxu0 }
 0x361   : > { %v3761_v14 = vpop.f32.mrf.mxu1 }
 0x362   : > { %v9470_v58 = vadd.f32 %v3761_v14, %v3460_v29  ;;  %v10414_v29 = vld [vmem:[#allocation49_spill] sm:$0xff] }
 0x363   : > { %v6119_v54 = vpop.f32.mrf.mxu1  ;;  %v4111_v14 = vadd.f32 %v10414_v29, %v10413_v44  ;;  %v10417_v44 = vld [vmem:[#allocation68_spill] sm:$0xff] }
 0x364   : > { %v9476_v13 = vadd.f32 %v6119_v54, %v3465_v5  ;;  %v4115_v29 = vadd.f32 %v9384_v36, %v10417_v44  ;;  %v10418_v44 = vmov 0  }
 0x365   : > { %v3774_v27 = vpop.f32.mrf.mxu1 }
 0x366   : > { %v9480_v63 = vadd.f32 %v3774_v27, %v3463_v17  ;;  %v10415_v17 = vld [vmem:[#allocation44_spill] sm:$0xff]  ;;  %v10416_v27 = vld [vmem:[#allocation58_spill] sm:$0xff] }
 0x367   : > { %v6120_v53 = vpop.f32.mrf.mxu1 }
 0x368   : > { %v9486_v46 = vadd.f32 %v6120_v53, %v3466_v59  ;;  %v4114_v59 = vadd.f32 %v10416_v27, %v10415_v17 }
 0x369   : > { %v3777_v41 = vpop.f32.mrf.mxu1 }
 0x36a   : > { %v9492_v7 = vadd.f32 %v3777_v41, %v3464_v11  ;;  %v4112_v11 = vadd.f32 %v9364_v45, %v3790_v47 }
 0x36b   : > { %v6171_v24 = vpop.f32.mrf.mxu1 }
 0x36c   : > { %v4467_v57 = vadd.f32 %v6171_v24, %v4113_v1  ;;  %v9516_v1 = vpop.f32.mrf.mxu0 }
 0x36d   : > { %v4338_v5 = vpop.f32.mrf.mxu1 }
 0x36e   : > { %v4465_v54 = vadd.f32 %v4338_v5, %v4111_v14  ;;  %v4506_v48 = vadd.f32 %v9504_v40, %v4467_v57  ;;  %v9523_v2 = vpop.f32.mrf.mxu0 }
 0x36f   : > { %v6172_v53 = vpop.f32.mrf.mxu1 }
 0x370   : > { %v4468_v39 = vadd.f32 %v6172_v53, %v4114_v59  ;;  %v4504_v35 = vadd.f32 %v9504_v40, %v4465_v54  ;;  %v4538_v14 = vmax.f32 %v4506_v48, 0.0  ;;  %v4118_v54 = vadd.f32 %v9394_v19, %v9366_v37 }
 0x371   : > { %v4341_v41 = vpop.f32.mrf.mxu1  ;;  %v4116_v48 = vadd.f32 %v9404_v50, %v9370_v49  ;;  %v4121_v19 = vadd.f32 %v9414_v12, %v9376_v16 }
 0x372   : > { %v4507_v20 = vadd.f32 %v9504_v40, %v4468_v39  ;;  %v4466_v15 = vadd.f32 %v4341_v41, %v4112_v11  ;;  %v4536_v17 = vmax.f32 %v4504_v35, 0.0  ;;  %v9533_v35 = vpop.f32.mrf.mxu0 }
 0x373   : > { %v6175_v24 = vpop.f32.mrf.mxu1 }
 0x374   : > { %v4539_v57 = vmax.f32 %v4507_v20, 0.0  ;;  %v4505_v5 = vadd.f32 %v9504_v40, %v4466_v15  ;;  %v4471_v45 = vadd.f32 %v6175_v24, %v4117_v18  ;;  %v4119_v24 = vadd.f32 %v9424_v33, %v9380_v22 }
 0x375   : > { %v4354_v47 = vpop.f32.mrf.mxu1 }
 0x376   : > { %v4569_v27 = vpack.c.bf16 %v4539_v57, %v4538_v14  ;;  %v4537_v59 = vmax.f32 %v4505_v5, 0.0  ;;  %v4469_v53 = vadd.f32 %v4354_v47, %v4115_v29  ;;  %v4510_v11 = vadd.f32 %v9504_v40, %v4471_v45 }
 0x377   : > { %v6176_v28 = vpop.f32.mrf.mxu1  ;;  %v4122_v5 = vadd.f32 %v9434_v61, %v9386_v3 }
 0x378   : > { %v4568_v39 = vpack.c.bf16 %v4537_v59, %v4536_v17  ;;  %v4472_v36 = vadd.f32 %v6176_v28, %v4118_v54  ;;  %v4508_v20 = vadd.f32 %v9504_v40, %v4469_v53  ;;  %v4542_v49 = vmax.f32 %v4510_v11, 0.0  ;;  %v9543_v54 = vpop.f32.mrf.mxu0 }
 0x379   : > { %v4357_v41 = vpop.f32.mrf.mxu1  ;;  %v4120_v53 = vadd.f32 %v9444_v25, %v9390_v0  ;;  %v4125_v11 = vadd.f32 %v9454_v8, %v9396_v43 }
 0x37a   : > { %v4511_v15 = vadd.f32 %v9504_v40, %v4472_v36  ;;  %v4470_v37 = vadd.f32 %v4357_v41, %v4116_v48  ;;  %5526 = vmatmul.mubr.msk.bf16.vlgmr.msra.gmra.mxu0 %vm825_vm8, %v4568_v39  ;;  %v4540_v45 = vmax.f32 %v4508_v20, 0.0  ;;  %v6152_v36 = vpop.f32.mrf.mxu0  ;;  %v4123_v41 = vadd.f32 %v9464_v56, %v9400_v6 }
 0x37b   : > { %v6179_v18 = vpop.f32.mrf.mxu1  ;;  %4734 = vmatprep.mubr.bf16.mxu0 %v10418_v44 }
 0x37c   : > { %v4543_v50 = vmax.f32 %v4511_v15, 0.0  ;;  %v4509_v29 = vadd.f32 %v9504_v40, %v4470_v37  ;;  %v4475_v14 = vadd.f32 %v6179_v18, %v4121_v19  ;;  %v4126_v19 = vadd.f32 %v9474_v38, %v9406_v34 }
 0x37d   : > { %v4370_v57 = vpop.f32.mrf.mxu1  ;;  %v4129_v38 = vadd.f32 %v9496_v9, %v9416_v10 }
 0x37e   : > { %v9541_v47 = vpack.c.bf16 %v4543_v50, %v4542_v49  ;;  %v4541_v16 = vmax.f32 %v4509_v29, 0.0  ;;  %v4473_v12 = vadd.f32 %v4370_v57, %v4119_v24  ;;  %v4514_v33 = vadd.f32 %v9504_v40, %v4475_v14  ;;  %v4067_v24 = vpop.f32.mrf.mxu0 }
 0x37f   : > { %v6180_v17 = vpop.f32.mrf.mxu1  ;;  %v4124_v29 = vadd.f32 %v9484_v55, %v9410_v42 }
 0x380   : > { %v4570_v22 = vpack.c.bf16 %v4541_v16, %v4540_v45  ;;  %v4476_v59 = vadd.f32 %v6180_v17, %v4122_v5  ;;  %v4512_v39 = vadd.f32 %v9504_v40, %v4473_v12  ;;  %v4546_v20 = vmax.f32 %v4514_v33, 0.0  ;;  %v6155_v45 = vpop.f32.mrf.mxu0 }
 0x381   : > { %v4373_v28 = vpop.f32.mrf.mxu1  ;;  %v4127_v12 = vadd.f32 %v9508_v60, %v9420_v23 }
 0x382   : > { %v4515_v3 = vadd.f32 %v9504_v40, %v4476_v59  ;;  %v4474_v61 = vadd.f32 %v4373_v28, %v4120_v53  ;;  %5527 = vmatmul.mubr.msk.bf16.gmra.mxu0 %vm825_vm8, %v4569_v27  ;;  %v4544_v27 = vmax.f32 %v4512_v39, 0.0 }
 0x383   : > { %v6183_v48 = vpop.f32.mrf.mxu1  ;;  %4744 = vmatprep.mubr.bf16.mxu0 %v10418_v44 }
 0x384   : > { %v4547_v0 = vmax.f32 %v4515_v3, 0.0  ;;  %v4513_v25 = vadd.f32 %v9504_v40, %v4474_v61  ;;  %v4479_v15 = vadd.f32 %v6183_v48, %v4125_v11  ;;  %v4080_v3 = vpop.f32.mrf.mxu0  ;;  %v4128_v48 = vadd.f32 %v9523_v2, %v9430_v31 }
 0x385   : > { %v4386_v37 = vpop.f32.mrf.mxu1 }
 0x386   : > { %v9559_v18 = vpack.c.bf16 %v4547_v0, %v4546_v20  ;;  %v4545_v43 = vmax.f32 %v4513_v25, 0.0  ;;  %v4477_v8 = vadd.f32 %v4386_v37, %v4123_v41  ;;  %v4518_v6 = vadd.f32 %v9504_v40, %v4479_v15  ;;  %v6156_v0 = vpop.f32.mrf.mxu0 }
 0x387   : > { %v6184_v49 = vpop.f32.mrf.mxu1  ;;  %v4131_v15 = vadd.f32 %v9543_v54, %v9440_v4 }
 0x388   : > { %v4572_v50 = vpack.c.bf16 %v4545_v43, %v4544_v27  ;;  %v4480_v56 = vadd.f32 %v6184_v49, %v4126_v19  ;;  %v4516_v14 = vadd.f32 %v9504_v40, %v4477_v8  ;;  %v4550_v17 = vmax.f32 %v4518_v6, 0.0  ;;  %v4083_v6 = vpop.f32.mrf.mxu0 }
 0x389   : > { %v4389_v57 = vpop.f32.mrf.mxu1  ;;  %v4134_v8 = vadd.f32 %v6152_v36, %v9446_v26  ;;  %v4137_v36 = vadd.f32 %v6155_v45, %v9456_v62 }
 0x38a   : > { %v4519_v5 = vadd.f32 %v9504_v40, %v4480_v56  ;;  %v4478_v34 = vadd.f32 %v4389_v57, %v4124_v29  ;;  %5528 = vmatmul.mubr.msk.bf16.gmra.mxu0 %vm825_vm8, %v4570_v22  ;;  %v4548_v59 = vmax.f32 %v4516_v14, 0.0  ;;  %v4130_v22 = vadd.f32 %v9516_v1, %v9426_v52  ;;  %v6159_v57 = vpop.f32.mrf.mxu0 }
 0x38b   : > { %v6187_v16 = vpop.f32.mrf.mxu1  ;;  %4754 = vmatprep.mubr.bf16.mxu0 %v10418_v44  ;;  %v4133_v1 = vadd.f32 %v9533_v35, %v9436_v30  ;;  %v4132_v14 = vadd.f32 %v4067_v24, %v9450_v51 }
 0x38c   : > { %v4551_v42 = vmax.f32 %v4519_v5, 0.0  ;;  %v4517_v55 = vadd.f32 %v9504_v40, %v4478_v34  ;;  %v4483_v33 = vadd.f32 %v6187_v16, %v4129_v38  ;;  %v4135_v16 = vadd.f32 %v4080_v3, %v9460_v21  ;;  %v4096_v51 = vpop.f32.mrf.mxu0 }
 0x38d   : > { %v4402_v53 = vpop.f32.mrf.mxu1 }
 0x38e   : > { %v9575_v28 = vpack.c.bf16 %v4551_v42, %v4550_v17  ;;  %v4549_v10 = vmax.f32 %v4517_v55, 0.0  ;;  %v4522_v9 = vadd.f32 %v9504_v40, %v4483_v33  ;;  %v4481_v39 = vadd.f32 %v4402_v53, %v4127_v12  ;;  %v6160_v3 = vpop.f32.mrf.mxu0 }
 0x38f   : > { %v6188_v23 = vpop.f32.mrf.mxu1 }
 0x390   : > { %v9578_v60 = vpack.c.bf16 %v4549_v10, %v4548_v59  ;;  %v4520_v61 = vadd.f32 %v9504_v40, %v4481_v39  ;;  %v4484_v11 = vadd.f32 %v6188_v23, %v4130_v22  ;;  %v4554_v37 = vmax.f32 %v4522_v9, 0.0 }
 0x391   : > { %v4405_v41 = vpop.f32.mrf.mxu1  ;;  %v4138_v59 = vadd.f32 %v6156_v0, %v9466_v32  ;;  %v4136_v39 = vadd.f32 %v4083_v6, %v9470_v58  ;;  %v4139_v32 = vadd.f32 %v4096_v51, %v9480_v63  ;;  %v4142_v0 = vadd.f32 %v6160_v3, %v9486_v46 }
 0x392   : > { %v4523_v20 = vadd.f32 %v9504_v40, %v4484_v11  ;;  %v4482_v52 = vadd.f32 %v4405_v41, %v4128_v48  ;;  %5529 = vmatmul.mubr.msk.bf16.gmra.mxu0 %vm825_vm8, %v9541_v47  ;;  %v4552_v27 = vmax.f32 %v4520_v61, 0.0  ;;  %v4141_v61 = vadd.f32 %v6159_v57, %v9476_v13 }
 0x393   : > { %v6191_v25 = vpop.f32.mrf.mxu1  ;;  %4764 = vmatprep.mubr.bf16.mxu0 %v10418_v44 }
 0x394   : > { %v4555_v19 = vmax.f32 %v4523_v20, 0.0  ;;  %v4521_v31 = vadd.f32 %v9504_v40, %v4482_v52  ;;  %v4487_v2 = vadd.f32 %v6191_v25, %v4133_v1  ;;  %v4099_v25 = vpop.f32.mrf.mxu0 }
 0x395   : > { %v4418_v43 = vpop.f32.mrf.mxu1  ;;  %v4140_v63 = vadd.f32 %v4099_v25, %v9492_v7 }
 0x396   : > { %v9593_v47 = vpack.c.bf16 %v4555_v19, %v4554_v37  ;;  %v4553_v49 = vmax.f32 %v4521_v31, 0.0  ;;  %v4526_v30 = vadd.f32 %v9504_v40, %v4487_v2  ;;  %v4485_v35 = vadd.f32 %v4418_v43, %v4131_v15 }
 0x397   : > { %v6192_v56 = vpop.f32.mrf.mxu1 }
 0x398   : > { %v9596_v4 = vpack.c.bf16 %v4553_v49, %v4552_v27  ;;  %v4524_v54 = vadd.f32 %v9504_v40, %v4485_v35  ;;  %v4488_v29 = vadd.f32 %v6192_v56, %v4134_v8  ;;  %v4558_v12 = vmax.f32 %v4526_v30, 0.0 }
 0x399   : > { %v4421_v5 = vpop.f32.mrf.mxu1 }
 0x39a   : > { %v4527_v34 = vadd.f32 %v9504_v40, %v4488_v29  ;;  %v4486_v26 = vadd.f32 %v4421_v5, %v4132_v14  ;;  %5530 = vmatmul.mubr.msk.bf16.gmra.mxu0 %vm825_vm8, %v4572_v50  ;;  %v4556_v24 = vmax.f32 %v4524_v54, 0.0  ;;  %v6356_v5 = vld [vmem:[%s6582_s26] sm:$0xff] }
 0x39b   : > { %v6195_v38 = vpop.f32.mrf.mxu1  ;;  %4774 = vmatprep.mubr.bf16.mxu0 %v10418_v44 }
 0x39c   : > { %v4559_v17 = vmax.f32 %v4527_v34, 0.0  ;;  %v4525_v42 = vadd.f32 %v9504_v40, %v4486_v26  ;;  %v4491_v55 = vadd.f32 %v6195_v38, %v4137_v36  ;;  %v4885_v34 = vunpack.c.l.bf16 %v6356_v5 }
 0x39d   : > { %v4434_v33 = vpop.f32.mrf.mxu1  ;;  %v4886_v38 = vunpack.c.h.bf16 %v6356_v5 }
 0x39e   : > { %v4579_v53 = vpack.c.bf16 %v4559_v17, %v4558_v12  ;;  %v4557_v22 = vmax.f32 %v4525_v42, 0.0  ;;  %v4530_v50 = vadd.f32 %v9504_v40, %v4491_v55  ;;  %v4489_v62 = vadd.f32 %v4434_v33, %v4135_v16  ;;  %v6357_v42 = vld [vmem:[%s6582_s26 + $0x8] sm:$0xff] }
 0x39f   : > { %v6196_v45 = vpop.f32.mrf.mxu1  ;;  %v4887_v55 = vunpack.c.l.bf16 %v6357_v42 }
 0x3a0   : > { %v4578_v10 = vpack.c.bf16 %v4557_v22, %v4556_v24  ;;  %v4528_v21 = vadd.f32 %v9504_v40, %v4489_v62  ;;  %v4492_v9 = vadd.f32 %v6196_v45, %v4138_v59  ;;  %v4562_v20 = vmax.f32 %v4530_v50, 0.0 }
 0x3a1   : > { %v4437_v23 = vpop.f32.mrf.mxu1 }
 0x3a2   : > { %v4531_v11 = vadd.f32 %v9504_v40, %v4492_v9  ;;  %v4490_v48 = vadd.f32 %v4437_v23, %v4136_v39  ;;  %5531 = vmatmul.mubr.msk.bf16.gmra.mxu0 %vm825_vm8, %v9559_v18  ;;  %v4560_v13 = vmax.f32 %v4528_v21, 0.0 }
 0x3a3   : > { %v6199_v41 = vpop.f32.mrf.mxu1  ;;  %4784 = vmatprep.mubr.bf16.mxu0 %v10418_v44 }
 0x3a4   : > { %v4563_v52 = vmax.f32 %v4531_v11, 0.0  ;;  %v4529_v1 = vadd.f32 %v9504_v40, %v4490_v48  ;;  %v4495_v58 = vadd.f32 %v6199_v41, %v4141_v61 }
 0x3a5   : > { %v4450_v15 = vpop.f32.mrf.mxu1 }
 0x3a6   : > { %v4581_v37 = vpack.c.bf16 %v4563_v52, %v4562_v20  ;;  %v4561_v19 = vmax.f32 %v4529_v1, 0.0  ;;  %v4534_v31 = vadd.f32 %v9504_v40, %v4495_v58  ;;  %v4493_v18 = vadd.f32 %v4450_v15, %v4139_v32  ;;  %v6359_v20 = vld [vmem:[%s6582_s26 + $0x18] sm:$0xff] }
 0x3a7   : > { %v6200_v2 = vpop.f32.mrf.mxu1  ;;  %v4891_v52 = vunpack.c.l.bf16 %v6359_v20 }
 0x3a8   : > { %v4580_v27 = vpack.c.bf16 %v4561_v19, %v4560_v13  ;;  %v4532_v43 = vadd.f32 %v9504_v40, %v4493_v18  ;;  %v4496_v8 = vadd.f32 %v6200_v2, %v4142_v0  ;;  %v4566_v46 = vmax.f32 %v4534_v31, 0.0  ;;  %v6360_v18 = vld [vmem:[%s6582_s26 + $0x20] sm:$0xff] }
 0x3a9   : > { %v4453_v49 = vpop.f32.mrf.mxu1  ;;  %v4892_v13 = vunpack.c.h.bf16 %v6359_v20  ;;  %v4893_v2 = vunpack.c.l.bf16 %v6360_v18 }
 0x3aa   : > { %v4535_v30 = vadd.f32 %v9504_v40, %v4496_v8  ;;  %v4494_v35 = vadd.f32 %v4453_v49, %v4140_v63  ;;  %5532 = vmatmul.mubr.msk.bf16.gmra.mxu0 %vm825_vm8, %v9578_v60  ;;  %v4564_v54 = vmax.f32 %v4532_v43, 0.0  ;;  %v4894_v49 = vunpack.c.h.bf16 %v6360_v18 }
 0x3ab   : > { %4794 = vmatprep.mubr.bf16.mxu0 %v10418_v44 }
 0x3ac   : > { %v4567_v6 = vmax.f32 %v4535_v30, 0.0  ;;  %v4533_v56 = vadd.f32 %v9504_v40, %v4494_v35  ;;  %v4594_v40 = vlaneseq }
 0x3ae   : > { %v4583_v29 = vpack.c.bf16 %v4567_v6, %v4566_v46  ;;  %v4565_v7 = vmax.f32 %v4533_v56, 0.0  ;;  %v6361_v56 = vld [vmem:[%s6582_s26 + $0x28] sm:$0xff] }
 0x3b0   : > { %v4582_v14 = vpack.c.bf16 %v4565_v7, %v4564_v54  ;;  %v4895_v54 = vunpack.c.l.bf16 %v6361_v56 }
 0x3b2   : > { %5533 = vmatmul.mubr.msk.bf16.gmra.mxu0 %vm825_vm8, %v9575_v28  ;;  %v4595_v28 = vshrl.u32 %v4594_v40, 7 }
 0x3b3   : > { %4804 = vmatprep.mubr.bf16.mxu0 %v10418_v44 }
 0x3b4   : > { %v4596_v60 = vsub.s32 0, %v4595_v28 }
 0x3ba   : > { %5534 = vmatmul.mubr.msk.bf16.gmra.mxu0 %vm825_vm8, %v9596_v4  ;;  %v4600_v4 = vsub.s32 1, %v4595_v28  ;;  %v4896_v28 = vunpack.c.h.bf16 %v6361_v56 }
 0x3bb   : > { %4814 = vmatprep.mubr.bf16.mxu0 %v10418_v44 }
 0x3c2   : > { %5535 = vmatmul.mubr.msk.bf16.gmra.mxu0 %vm825_vm8, %v9593_v47  ;;  %v4592_v47 = vld [vmem:[%s9876_s7] sm:$0x3] }
 0x3c3   : > { %4824 = vmatprep.mubr.bf16.mxu0 %v10418_v44  ;;  %v9649_v57 = vrot.slane %v4592_v47, %v4596_v60  ;;  %v9653_v26 = vrot.slane %v4592_v47, %v4600_v4 }
 0x3ca   : > { %5536 = vmatmul.mubr.msk.bf16.gmra.mxu0 %vm825_vm8, %v4578_v10  ;;  %v6358_v10 = vld [vmem:[%s6582_s26 + $0x10] sm:$0xff] }
 0x3cb   : > { %4834 = vmatprep.mubr.bf16.mxu0 %v10418_v44  ;;  %v4889_v21 = vunpack.c.l.bf16 %v6358_v10  ;;  %v4890_v61 = vunpack.c.h.bf16 %v6358_v10 }
 0x3d2   : > { %5537 = vmatmul.mubr.msk.bf16.gmra.mxu0 %vm825_vm8, %v4579_v53  ;;  %v4888_v53 = vunpack.c.h.bf16 %v6357_v42 }
 0x3d3   : > { %4844 = vmatprep.mubr.bf16.mxu0 %v10418_v44 }
 0x3da   : > { %5538 = vmatmul.mubr.msk.bf16.gmra.mxu0 %vm825_vm8, %v4580_v27 }
 0x3db   : > { %4854 = vmatprep.mubr.bf16.mxu0 %v10418_v44 }
 0x3e2   : > { %5539 = vmatmul.mubr.msk.bf16.gmra.mxu0 %vm825_vm8, %v4581_v37 }
 0x3e3   : > { %4864 = vmatprep.mubr.bf16.mxu0 %v10418_v44 }
 0x3ea   : > { %5540 = vmatmul.mubr.msk.bf16.gmra.mxu0 %vm825_vm8, %v4582_v14 }
 0x3eb   : > { %4874 = vmatprep.mubr.bf16.mxu0 %v10418_v44 }
 0x3f2   : > { %5541 = vmatmul.mubr.msk.bf16.gmra.mxu0 %vm825_vm8, %v4583_v29 }
 0x43a   : > { %v4726_v36 = vpop.f32.mrf.mxu0 }
 0x43b   : > { %v4727_v44 = vadd.f32 %v4726_v36, %v9649_v57 }
 0x43c   : > { %v4728_v16 = vpop.f32.mrf.mxu0 }
 0x43d   : > { %v4949_v12 = vadd.f32 %v4885_v34, %v4727_v44  ;;  %v4729_v17 = vadd.f32 %v4728_v16, %v9653_v26  ;;  %v6362_v34 = vld [vmem:[%s6582_s26 + $0x30] sm:$0xff] }
 0x43e   : > { %v4730_v51 = vpop.f32.mrf.mxu0  ;;  %v4897_v36 = vunpack.c.l.bf16 %v6362_v34 }
 0x43f   : > { %v5013_v24 = vmax.f32 %v4949_v12, 0.0  ;;  %v4950_v33 = vadd.f32 %v4886_v38, %v4729_v17  ;;  %v4731_v59 = vadd.f32 %v4730_v51, %v9649_v57  ;;  %v4898_v17 = vunpack.c.h.bf16 %v6362_v34 }
 0x440   : > { %v4732_v22 = vpop.f32.mrf.mxu0 }
 0x441   : > { %5077 = vst [vmem:[%s9661_s20] sm:$0xff] %v5013_v24  ;;  %v5014_v50 = vmax.f32 %v4950_v33, 0.0  ;;  %v4951_v62 = vadd.f32 %v4887_v55, %v4731_v59  ;;  %v4733_v45 = vadd.f32 %v4732_v22, %v9653_v26  ;;  %v6363_v33 = vld [vmem:[%s6582_s26 + $0x38] sm:$0xff] }
 0x442   : > { %v4736_v9 = vpop.f32.mrf.mxu0  ;;  %v4899_v59 = vunpack.c.l.bf16 %v6363_v33 }
 0x443   : > { %5078 = vst [vmem:[%s9661_s20 + $0x8] sm:$0xff] %v5014_v50  ;;  %v5015_v39 = vmax.f32 %v4951_v62, 0.0  ;;  %v4952_v3 = vadd.f32 %v4888_v53, %v4733_v45  ;;  %v4737_v23 = vadd.f32 %v4736_v9, %v9649_v57  ;;  %v4900_v45 = vunpack.c.h.bf16 %v6363_v33 }
 0x444   : > { %v4738_v11 = vpop.f32.mrf.mxu0 }
 0x445   : > { %5079 = vst [vmem:[%s9661_s20 + $0x10] sm:$0xff] %v5015_v39  ;;  %v5016_v48 = vmax.f32 %v4952_v3, 0.0  ;;  %v4953_v32 = vadd.f32 %v4889_v21, %v4737_v23  ;;  %v4739_v41 = vadd.f32 %v4738_v11, %v9653_v26  ;;  %v6364_v3 = vld [vmem:[%s6582_s26 + $0x40] sm:$0xff] }
 0x446   : > { %v4740_v1 = vpop.f32.mrf.mxu0  ;;  %v4901_v23 = vunpack.c.l.bf16 %v6364_v3 }
 0x447   : > { %5080 = vst [vmem:[%s9661_s20 + $0x18] sm:$0xff] %v5016_v48  ;;  %v5017_v58 = vmax.f32 %v4953_v32, 0.0  ;;  %v4954_v0 = vadd.f32 %v4890_v61, %v4739_v41  ;;  %v4741_v25 = vadd.f32 %v4740_v1, %v9649_v57  ;;  %v4902_v41 = vunpack.c.h.bf16 %v6364_v3 }
 0x448   : > { %v4742_v15 = vpop.f32.mrf.mxu0 }
 0x449   : > { %5081 = vst [vmem:[%s9661_s20 + $0x20] sm:$0xff] %v5017_v58  ;;  %v5018_v37 = vmax.f32 %v4954_v0, 0.0  ;;  %v4955_v19 = vadd.f32 %v4891_v52, %v4741_v25  ;;  %v4743_v31 = vadd.f32 %v4742_v15, %v9653_v26  ;;  %v6365_v0 = vld [vmem:[%s6582_s26 + $0x48] sm:$0xff] }
 0x44a   : > { %v4746_v63 = vpop.f32.mrf.mxu0  ;;  %v4903_v25 = vunpack.c.l.bf16 %v6365_v0 }
 0x44b   : > { %5082 = vst [vmem:[%s9661_s20 + $0x28] sm:$0xff] %v5018_v37  ;;  %v5019_v27 = vmax.f32 %v4955_v19, 0.0  ;;  %v4956_v43 = vadd.f32 %v4892_v13, %v4743_v31  ;;  %v4747_v8 = vadd.f32 %v4746_v63, %v9649_v57  ;;  %v4904_v31 = vunpack.c.h.bf16 %v6365_v0 }
 0x44c   : > { %v4748_v30 = vpop.f32.mrf.mxu0 }
 0x44d   : > { %5083 = vst [vmem:[%s9661_s20 + $0x30] sm:$0xff] %v5019_v27  ;;  %v5020_v35 = vmax.f32 %v4956_v43, 0.0  ;;  %v4957_v46 = vadd.f32 %v4893_v2, %v4747_v8  ;;  %v4749_v6 = vadd.f32 %v4748_v30, %v9653_v26  ;;  %v6366_v43 = vld [vmem:[%s6582_s26 + $0x50] sm:$0xff] }
 0x44e   : > { %v4750_v29 = vpop.f32.mrf.mxu0  ;;  %v4905_v8 = vunpack.c.l.bf16 %v6366_v43 }
 0x44f   : > { %5084 = vst [vmem:[%s9661_s20 + $0x38] sm:$0xff] %v5020_v35  ;;  %v5021_v7 = vmax.f32 %v4957_v46, 0.0  ;;  %v4958_v14 = vadd.f32 %v4894_v49, %v4749_v6  ;;  %v4751_v40 = vadd.f32 %v4750_v29, %v9649_v57  ;;  %v4906_v6 = vunpack.c.h.bf16 %v6366_v43 }
 0x450   : > { %v4752_v60 = vpop.f32.mrf.mxu0 }
 0x451   : > { %5085 = vst [vmem:[%s9661_s20 + $0x40] sm:$0xff] %v5021_v7  ;;  %v5022_v47 = vmax.f32 %v4958_v14, 0.0  ;;  %v4959_v4 = vadd.f32 %v4895_v54, %v4751_v40  ;;  %v4753_v5 = vadd.f32 %v4752_v60, %v9653_v26  ;;  %v6367_v14 = vld [vmem:[%s6582_s26 + $0x58] sm:$0xff] }
 0x452   : > { %v4756_v44 = vpop.f32.mrf.mxu0  ;;  %v4907_v40 = vunpack.c.l.bf16 %v6367_v14 }
 0x453   : > { %5086 = vst [vmem:[%s9661_s20 + $0x48] sm:$0xff] %v5022_v47  ;;  %v5023_v38 = vmax.f32 %v4959_v4, 0.0  ;;  %v4960_v16 = vadd.f32 %v4896_v28, %v4753_v5  ;;  %v4757_v12 = vadd.f32 %v4756_v44, %v9649_v57  ;;  %v4908_v5 = vunpack.c.h.bf16 %v6367_v14 }
 0x454   : > { %v4758_v42 = vpop.f32.mrf.mxu0 }
 0x455   : > { %5087 = vst [vmem:[%s9661_s20 + $0x50] sm:$0xff] %v5023_v38  ;;  %v5024_v55 = vmax.f32 %v4960_v16, 0.0  ;;  %v4961_v51 = vadd.f32 %v4897_v36, %v4757_v12  ;;  %v4759_v24 = vadd.f32 %v4758_v42, %v9653_v26  ;;  %v6368_v16 = vld [vmem:[%s6582_s26 + $0x60] sm:$0xff] }
 0x456   : > { %v4760_v53 = vpop.f32.mrf.mxu0  ;;  %v4909_v12 = vunpack.c.l.bf16 %v6368_v16 }
 0x457   : > { %5088 = vst [vmem:[%s9661_s20 + $0x58] sm:$0xff] %v5024_v55  ;;  %v5025_v22 = vmax.f32 %v4961_v51, 0.0  ;;  %v4962_v50 = vadd.f32 %v4898_v17, %v4759_v24  ;;  %v4761_v62 = vadd.f32 %v4760_v53, %v9649_v57  ;;  %v4910_v24 = vunpack.c.h.bf16 %v6368_v16 }
 0x458   : > { %v4762_v10 = vpop.f32.mrf.mxu0 }
 0x459   : > { %5089 = vst [vmem:[%s9661_s20 + $0x60] sm:$0xff] %v5025_v22  ;;  %v5026_v21 = vmax.f32 %v4962_v50, 0.0  ;;  %v4963_v9 = vadd.f32 %v4899_v59, %v4761_v62  ;;  %v4763_v39 = vadd.f32 %v4762_v10, %v9653_v26  ;;  %v6369_v50 = vld [vmem:[%s6582_s26 + $0x68] sm:$0xff] }
 0x45a   : > { %v4766_v61 = vpop.f32.mrf.mxu0  ;;  %v4911_v62 = vunpack.c.l.bf16 %v6369_v50 }
 0x45b   : > { %5090 = vst [vmem:[%s9661_s20 + $0x68] sm:$0xff] %v5026_v21  ;;  %v5027_v11 = vmax.f32 %v4963_v9, 0.0  ;;  %v4964_v48 = vadd.f32 %v4900_v45, %v4763_v39  ;;  %v4767_v32 = vadd.f32 %v4766_v61, %v9649_v57  ;;  %v4912_v39 = vunpack.c.h.bf16 %v6369_v50 }
 0x45c   : > { %v4768_v20 = vpop.f32.mrf.mxu0 }
 0x45d   : > { %5091 = vst [vmem:[%s9661_s20 + $0x70] sm:$0xff] %v5027_v11  ;;  %v5028_v52 = vmax.f32 %v4964_v48, 0.0  ;;  %v4965_v1 = vadd.f32 %v4901_v23, %v4767_v32  ;;  %v4769_v58 = vadd.f32 %v4768_v20, %v9653_v26  ;;  %v6370_v48 = vld [vmem:[%s6582_s26 + $0x70] sm:$0xff] }
 0x45e   : > { %v4770_v13 = vpop.f32.mrf.mxu0  ;;  %v4913_v32 = vunpack.c.l.bf16 %v6370_v48 }
 0x45f   : > { %5092 = vst [vmem:[%s9661_s20 + $0x78] sm:$0xff] %v5028_v52  ;;  %v5029_v15 = vmax.f32 %v4965_v1, 0.0  ;;  %v4966_v37 = vadd.f32 %v4902_v41, %v4769_v58  ;;  %v4771_v19 = vadd.f32 %v4770_v13, %v9649_v57  ;;  %v4914_v58 = vunpack.c.h.bf16 %v6370_v48 }
 0x460   : > { %v4772_v18 = vpop.f32.mrf.mxu0 }
 0x461   : > { %5093 = vst [vmem:[%s9661_s20 + $0x80] sm:$0xff] %v5029_v15  ;;  %v5030_v2 = vmax.f32 %v4966_v37, 0.0  ;;  %v4967_v63 = vadd.f32 %v4903_v25, %v4771_v19  ;;  %v4773_v27 = vadd.f32 %v4772_v18, %v9653_v26  ;;  %v6371_v37 = vld [vmem:[%s6582_s26 + $0x78] sm:$0xff] }
 0x462   : > { %v4776_v49 = vpop.f32.mrf.mxu0  ;;  %v4915_v19 = vunpack.c.l.bf16 %v6371_v37 }
 0x463   : > { %5094 = vst [vmem:[%s9661_s20 + $0x88] sm:$0xff] %v5030_v2  ;;  %v5031_v30 = vmax.f32 %v4967_v63, 0.0  ;;  %v4968_v35 = vadd.f32 %v4904_v31, %v4773_v27  ;;  %v4777_v46 = vadd.f32 %v4776_v49, %v9649_v57  ;;  %v4916_v27 = vunpack.c.h.bf16 %v6371_v37 }
 0x464   : > { %v4778_v56 = vpop.f32.mrf.mxu0 }
 0x465   : > { %5095 = vst [vmem:[%s9661_s20 + $0x90] sm:$0xff] %v5031_v30  ;;  %v5032_v54 = vmax.f32 %v4968_v35, 0.0  ;;  %v4969_v29 = vadd.f32 %v4905_v8, %v4777_v46  ;;  %v4779_v7 = vadd.f32 %v4778_v56, %v9653_v26  ;;  %v6372_v35 = vld [vmem:[%s6582_s26 + $0x80] sm:$0xff] }
 0x466   : > { %v4780_v28 = vpop.f32.mrf.mxu0  ;;  %v4917_v46 = vunpack.c.l.bf16 %v6372_v35 }
 0x467   : > { %5096 = vst [vmem:[%s9661_s20 + $0x98] sm:$0xff] %v5032_v54  ;;  %v5033_v60 = vmax.f32 %v4969_v29, 0.0  ;;  %v4970_v47 = vadd.f32 %v4906_v6, %v4779_v7  ;;  %v4781_v4 = vadd.f32 %v4780_v28, %v9649_v57  ;;  %v4918_v7 = vunpack.c.h.bf16 %v6372_v35 }
 0x468   : > { %v4782_v34 = vpop.f32.mrf.mxu0 }
 0x469   : > { %5097 = vst [vmem:[%s9661_s20 + $0xa0] sm:$0xff] %v5033_v60  ;;  %v5034_v36 = vmax.f32 %v4970_v47, 0.0  ;;  %v4971_v44 = vadd.f32 %v4907_v40, %v4781_v4  ;;  %v4783_v38 = vadd.f32 %v4782_v34, %v9653_v26  ;;  %v6373_v47 = vld [vmem:[%s6582_s26 + $0x88] sm:$0xff] }
 0x46a   : > { %v4786_v17 = vpop.f32.mrf.mxu0  ;;  %v4919_v4 = vunpack.c.l.bf16 %v6373_v47 }
 0x46b   : > { %5098 = vst [vmem:[%s9661_s20 + $0xa8] sm:$0xff] %v5034_v36  ;;  %v5035_v42 = vmax.f32 %v4971_v44, 0.0  ;;  %v4972_v55 = vadd.f32 %v4908_v5, %v4783_v38  ;;  %v4787_v51 = vadd.f32 %v4786_v17, %v9649_v57  ;;  %v4920_v38 = vunpack.c.h.bf16 %v6373_v47 }
 0x46c   : > { %v4788_v33 = vpop.f32.mrf.mxu0 }
 0x46d   : > { %5099 = vst [vmem:[%s9661_s20 + $0xb0] sm:$0xff] %v5035_v42  ;;  %v5036_v59 = vmax.f32 %v4972_v55, 0.0  ;;  %v4973_v53 = vadd.f32 %v4909_v12, %v4787_v51  ;;  %v4789_v22 = vadd.f32 %v4788_v33, %v9653_v26  ;;  %v6374_v55 = vld [vmem:[%s6582_s26 + $0x90] sm:$0xff] }
 0x46e   : > { %v4790_v45 = vpop.f32.mrf.mxu0  ;;  %v4921_v51 = vunpack.c.l.bf16 %v6374_v55 }
 0x46f   : > { %5100 = vst [vmem:[%s9661_s20 + $0xb8] sm:$0xff] %v5036_v59  ;;  %v5037_v10 = vmax.f32 %v4973_v53, 0.0  ;;  %v4974_v21 = vadd.f32 %v4910_v24, %v4789_v22  ;;  %v4791_v9 = vadd.f32 %v4790_v45, %v9649_v57  ;;  %v4922_v22 = vunpack.c.h.bf16 %v6374_v55 }
 0x470   : > { %v4792_v3 = vpop.f32.mrf.mxu0 }
 0x471   : > { %5101 = vst [vmem:[%s9661_s20 + $0xc0] sm:$0xff] %v5037_v10  ;;  %v5038_v23 = vmax.f32 %v4974_v21, 0.0  ;;  %v4975_v61 = vadd.f32 %v4911_v62, %v4791_v9  ;;  %v4793_v11 = vadd.f32 %v4792_v3, %v9653_v26  ;;  %v6375_v21 = vld [vmem:[%s6582_s26 + $0x98] sm:$0xff] }
 0x472   : > { %v4796_v41 = vpop.f32.mrf.mxu0  ;;  %v4923_v9 = vunpack.c.l.bf16 %v6375_v21 }
 0x473   : > { %5102 = vst [vmem:[%s9661_s20 + $0xc8] sm:$0xff] %v5038_v23  ;;  %v5039_v20 = vmax.f32 %v4975_v61, 0.0  ;;  %v4976_v52 = vadd.f32 %v4912_v39, %v4793_v11  ;;  %v4797_v1 = vadd.f32 %v4796_v41, %v9649_v57  ;;  %v4924_v11 = vunpack.c.h.bf16 %v6375_v21 }
 0x474   : > { %v4798_v0 = vpop.f32.mrf.mxu0 }
 0x475   : > { %5103 = vst [vmem:[%s9661_s20 + $0xd0] sm:$0xff] %v5039_v20  ;;  %v5040_v25 = vmax.f32 %v4976_v52, 0.0  ;;  %v4977_v13 = vadd.f32 %v4913_v32, %v4797_v1  ;;  %v4799_v15 = vadd.f32 %v4798_v0, %v9653_v26  ;;  %v6376_v52 = vld [vmem:[%s6582_s26 + $0xa0] sm:$0xff] }
 0x476   : > { %v4800_v31 = vpop.f32.mrf.mxu0  ;;  %v4925_v1 = vunpack.c.l.bf16 %v6376_v52 }
 0x477   : > { %5104 = vst [vmem:[%s9661_s20 + $0xd8] sm:$0xff] %v5040_v25  ;;  %v5041_v18 = vmax.f32 %v4977_v13, 0.0  ;;  %v4978_v2 = vadd.f32 %v4914_v58, %v4799_v15  ;;  %v4801_v63 = vadd.f32 %v4800_v31, %v9649_v57  ;;  %v4926_v15 = vunpack.c.h.bf16 %v6376_v52 }
 0x478   : > { %v4802_v43 = vpop.f32.mrf.mxu0 }
 0x479   : > { %5105 = vst [vmem:[%s9661_s20 + $0xe0] sm:$0xff] %v5041_v18  ;;  %v5042_v8 = vmax.f32 %v4978_v2, 0.0  ;;  %v4979_v49 = vadd.f32 %v4915_v19, %v4801_v63  ;;  %v4803_v30 = vadd.f32 %v4802_v43, %v9653_v26  ;;  %v6377_v2 = vld [vmem:[%s6582_s26 + $0xa8] sm:$0xff] }
 0x47a   : > { %v4806_v6 = vpop.f32.mrf.mxu0  ;;  %v4927_v63 = vunpack.c.l.bf16 %v6377_v2 }
 0x47b   : > { %5106 = vst [vmem:[%s9661_s20 + $0xe8] sm:$0xff] %v5042_v8  ;;  %v5043_v56 = vmax.f32 %v4979_v49, 0.0  ;;  %v4980_v54 = vadd.f32 %v4916_v27, %v4803_v30  ;;  %v4807_v29 = vadd.f32 %v4806_v6, %v9649_v57  ;;  %v4928_v30 = vunpack.c.h.bf16 %v6377_v2 }
 0x47c   : > { %v4808_v14 = vpop.f32.mrf.mxu0 }
 0x47d   : > { %5107 = vst [vmem:[%s9661_s20 + $0xf0] sm:$0xff] %v5043_v56  ;;  %v5044_v40 = vmax.f32 %v4980_v54, 0.0  ;;  %v4981_v28 = vadd.f32 %v4917_v46, %v4807_v29  ;;  %v4809_v60 = vadd.f32 %v4808_v14, %v9653_v26  ;;  %v6378_v54 = vld [vmem:[%s6582_s26 + $0xb0] sm:$0xff] }
 0x47e   : > { %v4810_v5 = vpop.f32.mrf.mxu0  ;;  %v4929_v29 = vunpack.c.l.bf16 %v6378_v54 }
 0x47f   : > { %5108 = vst [vmem:[%s9661_s20 + $0xf8] sm:$0xff] %v5044_v40  ;;  %v5045_v34 = vmax.f32 %v4981_v28, 0.0  ;;  %v4982_v36 = vadd.f32 %v4918_v7, %v4809_v60  ;;  %v4811_v44 = vadd.f32 %v4810_v5, %v9649_v57  ;;  %v4930_v60 = vunpack.c.h.bf16 %v6378_v54 }
 0x480   : > { %v4812_v16 = vpop.f32.mrf.mxu0 }
 0x481   : > { %5109 = vst [vmem:[%s9661_s20 + $0x100] sm:$0xff] %v5045_v34  ;;  %v5046_v12 = vmax.f32 %v4982_v36, 0.0  ;;  %v4983_v17 = vadd.f32 %v4919_v4, %v4811_v44  ;;  %v4813_v42 = vadd.f32 %v4812_v16, %v9653_v26  ;;  %v6379_v36 = vld [vmem:[%s6582_s26 + $0xb8] sm:$0xff] }
 0x482   : > { %v4816_v24 = vpop.f32.mrf.mxu0  ;;  %v4931_v44 = vunpack.c.l.bf16 %v6379_v36 }
 0x483   : > { %5110 = vst [vmem:[%s9661_s20 + $0x108] sm:$0xff] %v5046_v12  ;;  %v5047_v33 = vmax.f32 %v4983_v17, 0.0  ;;  %v4984_v59 = vadd.f32 %v4920_v38, %v4813_v42  ;;  %v4817_v53 = vadd.f32 %v4816_v24, %v9649_v57  ;;  %v4932_v42 = vunpack.c.h.bf16 %v6379_v36 }
 0x484   : > { %v4818_v50 = vpop.f32.mrf.mxu0 }
 0x485   : > { %5111 = vst [vmem:[%s9661_s20 + $0x110] sm:$0xff] %v5047_v33  ;;  %v5048_v62 = vmax.f32 %v4984_v59, 0.0  ;;  %v4985_v45 = vadd.f32 %v4921_v51, %v4817_v53  ;;  %v4819_v10 = vadd.f32 %v4818_v50, %v9653_v26  ;;  %v6380_v59 = vld [vmem:[%s6582_s26 + $0xc0] sm:$0xff] }
 0x486   : > { %v4820_v39 = vpop.f32.mrf.mxu0  ;;  %v4933_v53 = vunpack.c.l.bf16 %v6380_v59 }
 0x487   : > { %5112 = vst [vmem:[%s9661_s20 + $0x118] sm:$0xff] %v5048_v62  ;;  %v5049_v3 = vmax.f32 %v4985_v45, 0.0  ;;  %v4986_v23 = vadd.f32 %v4922_v22, %v4819_v10  ;;  %v4821_v61 = vadd.f32 %v4820_v39, %v9649_v57  ;;  %v4934_v10 = vunpack.c.h.bf16 %v6380_v59 }
 0x488   : > { %v4822_v48 = vpop.f32.mrf.mxu0 }
 0x489   : > { %5113 = vst [vmem:[%s9661_s20 + $0x120] sm:$0xff] %v5049_v3  ;;  %v5050_v32 = vmax.f32 %v4986_v23, 0.0  ;;  %v4987_v41 = vadd.f32 %v4923_v9, %v4821_v61  ;;  %v4823_v20 = vadd.f32 %v4822_v48, %v9653_v26  ;;  %v6381_v23 = vld [vmem:[%s6582_s26 + $0xc8] sm:$0xff] }
 0x48a   : > { %v4826_v58 = vpop.f32.mrf.mxu0  ;;  %v4935_v61 = vunpack.c.l.bf16 %v6381_v23 }
 0x48b   : > { %5114 = vst [vmem:[%s9661_s20 + $0x128] sm:$0xff] %v5050_v32  ;;  %v5051_v0 = vmax.f32 %v4987_v41, 0.0  ;;  %v4988_v25 = vadd.f32 %v4924_v11, %v4823_v20  ;;  %v4827_v13 = vadd.f32 %v4826_v58, %v9649_v57  ;;  %v4936_v20 = vunpack.c.h.bf16 %v6381_v23 }
 0x48c   : > { %v4828_v37 = vpop.f32.mrf.mxu0 }
 0x48d   : > { %5115 = vst [vmem:[%s9661_s20 + $0x130] sm:$0xff] %v5051_v0  ;;  %v5052_v19 = vmax.f32 %v4988_v25, 0.0  ;;  %v4989_v31 = vadd.f32 %v4925_v1, %v4827_v13  ;;  %v4829_v18 = vadd.f32 %v4828_v37, %v9653_v26  ;;  %v6382_v25 = vld [vmem:[%s6582_s26 + $0xd0] sm:$0xff] }
 0x48e   : > { %v4830_v27 = vpop.f32.mrf.mxu0  ;;  %v4937_v13 = vunpack.c.l.bf16 %v6382_v25 }
 0x48f   : > { %5116 = vst [vmem:[%s9661_s20 + $0x138] sm:$0xff] %v5052_v19  ;;  %v5053_v43 = vmax.f32 %v4989_v31, 0.0  ;;  %v4990_v8 = vadd.f32 %v4926_v15, %v4829_v18  ;;  %v4831_v49 = vadd.f32 %v4830_v27, %v9649_v57  ;;  %v4938_v18 = vunpack.c.h.bf16 %v6382_v25 }
 0x490   : > { %v4832_v35 = vpop.f32.mrf.mxu0 }
 0x491   : > { %5117 = vst [vmem:[%s9661_s20 + $0x140] sm:$0xff] %v5053_v43  ;;  %v5054_v46 = vmax.f32 %v4990_v8, 0.0  ;;  %v4991_v6 = vadd.f32 %v4927_v63, %v4831_v49  ;;  %v4833_v56 = vadd.f32 %v4832_v35, %v9653_v26  ;;  %v6383_v8 = vld [vmem:[%s6582_s26 + $0xd8] sm:$0xff] }
 0x492   : > { %v4836_v7 = vpop.f32.mrf.mxu0  ;;  %v4939_v49 = vunpack.c.l.bf16 %v6383_v8 }
 0x493   : > { %5118 = vst [vmem:[%s9661_s20 + $0x148] sm:$0xff] %v5054_v46  ;;  %v5055_v14 = vmax.f32 %v4991_v6, 0.0  ;;  %v4992_v40 = vadd.f32 %v4928_v30, %v4833_v56  ;;  %v4837_v28 = vadd.f32 %v4836_v7, %v9649_v57  ;;  %v4940_v56 = vunpack.c.h.bf16 %v6383_v8 }
 0x494   : > { %v4838_v47 = vpop.f32.mrf.mxu0 }
 0x495   : > { %5119 = vst [vmem:[%s9661_s20 + $0x150] sm:$0xff] %v5055_v14  ;;  %v5056_v4 = vmax.f32 %v4992_v40, 0.0  ;;  %v4993_v5 = vadd.f32 %v4929_v29, %v4837_v28  ;;  %v4839_v34 = vadd.f32 %v4838_v47, %v9653_v26  ;;  %v6384_v40 = vld [vmem:[%s6582_s26 + $0xe0] sm:$0xff] }
 0x496   : > { %v4840_v38 = vpop.f32.mrf.mxu0  ;;  %v4941_v28 = vunpack.c.l.bf16 %v6384_v40 }
 0x497   : > { %5120 = vst [vmem:[%s9661_s20 + $0x158] sm:$0xff] %v5056_v4  ;;  %v5057_v16 = vmax.f32 %v4993_v5, 0.0  ;;  %v4994_v12 = vadd.f32 %v4930_v60, %v4839_v34  ;;  %v4841_v17 = vadd.f32 %v4840_v38, %v9649_v57  ;;  %v4942_v34 = vunpack.c.h.bf16 %v6384_v40 }
 0x498   : > { %v4842_v55 = vpop.f32.mrf.mxu0 }
 0x499   : > { %5121 = vst [vmem:[%s9661_s20 + $0x160] sm:$0xff] %v5057_v16  ;;  %v5058_v51 = vmax.f32 %v4994_v12, 0.0  ;;  %v4995_v24 = vadd.f32 %v4931_v44, %v4841_v17  ;;  %v4843_v33 = vadd.f32 %v4842_v55, %v9653_v26  ;;  %v6385_v12 = vld [vmem:[%s6582_s26 + $0xe8] sm:$0xff] }
 0x49a   : > { %v4846_v22 = vpop.f32.mrf.mxu0  ;;  %v4943_v17 = vunpack.c.l.bf16 %v6385_v12 }
 0x49b   : > { %5122 = vst [vmem:[%s9661_s20 + $0x168] sm:$0xff] %v5058_v51  ;;  %v5059_v50 = vmax.f32 %v4995_v24, 0.0  ;;  %v4996_v62 = vadd.f32 %v4932_v42, %v4843_v33  ;;  %v4847_v45 = vadd.f32 %v4846_v22, %v9649_v57  ;;  %v4944_v33 = vunpack.c.h.bf16 %v6385_v12 }
 0x49c   : > { %v4848_v21 = vpop.f32.mrf.mxu0 }
 0x49d   : > { %5123 = vst [vmem:[%s9661_s20 + $0x170] sm:$0xff] %v5059_v50  ;;  %v5060_v9 = vmax.f32 %v4996_v62, 0.0  ;;  %v4997_v39 = vadd.f32 %v4933_v53, %v4847_v45  ;;  %v4849_v3 = vadd.f32 %v4848_v21, %v9653_v26  ;;  %v6386_v62 = vld [vmem:[%s6582_s26 + $0xf0] sm:$0xff] }
 0x49e   : > { %v4850_v11 = vpop.f32.mrf.mxu0  ;;  %v4945_v45 = vunpack.c.l.bf16 %v6386_v62 }
 0x49f   : > { %5124 = vst [vmem:[%s9661_s20 + $0x178] sm:$0xff] %v5060_v9  ;;  %v5061_v48 = vmax.f32 %v4997_v39, 0.0  ;;  %v4998_v32 = vadd.f32 %v4934_v10, %v4849_v3  ;;  %v4851_v41 = vadd.f32 %v4850_v11, %v9649_v57  ;;  %v4946_v3 = vunpack.c.h.bf16 %v6386_v62 }
 0x4a0   : > { %v4852_v52 = vpop.f32.mrf.mxu0 }
 0x4a1   : > { %5125 = vst [vmem:[%s9661_s20 + $0x180] sm:$0xff] %v5061_v48  ;;  %v5062_v1 = vmax.f32 %v4998_v32, 0.0  ;;  %v4999_v58 = vadd.f32 %v4935_v61, %v4851_v41  ;;  %v4853_v0 = vadd.f32 %v4852_v52, %v9653_v26  ;;  %v6387_v32 = vld [vmem:[%s6582_s26 + $0xf8] sm:$0xff]  ;;  %s5155_s26 = sshll.u32 %s9661_s20, 4  ;;  %s9823_s26 = int_to_ptr.vmem [resolvable:$true] %s5155_s26 }
 0x4a2   : > { %v4856_v15 = vpop.f32.mrf.mxu0  ;;  %v4947_v41 = vunpack.c.l.bf16 %v6387_v32  ;;  %s6388_s9 = scalar_lea.vmem %s9823_s26, 8192  ;;  %p6395_p0 = scmp.lt.s32.totalorder %s9823_s26, %s6393_s10 }
 0x4a3   : > { %5126 = vst [vmem:[%s9661_s20 + $0x188] sm:$0xff] %v5062_v1  ;;  %v5063_v37 = vmax.f32 %v4999_v58, 0.0  ;;  %v5000_v19 = vadd.f32 %v4936_v20, %v4853_v0  ;;  %v4857_v31 = vadd.f32 %v4856_v15, %v9649_v57  ;;  %v4948_v0 = vunpack.c.h.bf16 %v6387_v32  ;;  %p6389_p11 = scmp.ne.s32.totalorder %s9823_s26, %s6388_s9  ;;  %p6396_p1 = scmp.lt.s32.totalorder %s6394_s13, %s6388_s9 }
 0x4a4   : > { %v4858_v2 = vpop.f32.mrf.mxu0 }
 0x4a5   : > { %5127 = vst [vmem:[%s9661_s20 + $0x190] sm:$0xff] %v5063_v37  ;;  %v5064_v63 = vmax.f32 %v5000_v19, 0.0  ;;  %v5001_v27 = vadd.f32 %v4937_v13, %v4857_v31  ;;  %v4859_v43 = vadd.f32 %v4858_v2, %v9653_v26  ;;  %p6390_p12 = pnand %p6389_p11, %p6538_p5  ;;  %p6397_p2 = por %p6396_p1, %p6395_p0 }
 0x4a6   : > { %v4860_v30 = vpop.f32.mrf.mxu0 }
 0x4a7   : > { %5128 = vst [vmem:[%s9661_s20 + $0x198] sm:$0xff] %v5064_v63  ;;  %v5065_v35 = vmax.f32 %v5001_v27, 0.0  ;;  %v5002_v46 = vadd.f32 %v4938_v18, %v4859_v43  ;;  %v4861_v6 = vadd.f32 %v4860_v30, %v9649_v57  ;;  %p6391_p13 = pneg %p6390_p12 }
 0x4a8   : > { %v4862_v54 = vpop.f32.mrf.mxu0 }
 0x4a9   : > { %5129 = vst [vmem:[%s9661_s20 + $0x1a0] sm:$0xff] %v5065_v35  ;;  %v5066_v29 = vmax.f32 %v5002_v46, 0.0  ;;  %v5003_v7 = vadd.f32 %v4939_v49, %v4861_v6  ;;  %v4863_v14 = vadd.f32 %v4862_v54, %v9653_v26  ;;  %p6398_p3 = pnand %p6397_p2, %p6391_p13 }
 0x4aa   : > { %v4866_v60 = vpop.f32.mrf.mxu0 }
 0x4ab   : > { %5130 = vst [vmem:[%s9661_s20 + $0x1a8] sm:$0xff] %v5066_v29  ;;  %v5067_v47 = vmax.f32 %v5003_v7, 0.0  ;;  %v5004_v4 = vadd.f32 %v4940_v56, %v4863_v14  ;;  %v4867_v5 = vadd.f32 %v4866_v60, %v9649_v57 }
 0x4ac   : > { %v4868_v36 = vpop.f32.mrf.mxu0 }
 0x4ad   : > { %5131 = vst [vmem:[%s9661_s20 + $0x1b0] sm:$0xff] %v5067_v47  ;;  %v5068_v44 = vmax.f32 %v5004_v4, 0.0  ;;  %v5005_v38 = vadd.f32 %v4941_v28, %v4867_v5  ;;  %v4869_v16 = vadd.f32 %v4868_v36, %v9653_v26 }
 0x4ae   : > { %v4870_v42 = vpop.f32.mrf.mxu0 }
 0x4af   : > { %5132 = vst [vmem:[%s9661_s20 + $0x1b8] sm:$0xff] %v5068_v44  ;;  %v5069_v55 = vmax.f32 %v5005_v38, 0.0  ;;  %v5006_v51 = vadd.f32 %v4942_v34, %v4869_v16  ;;  %v4871_v24 = vadd.f32 %v4870_v42, %v9649_v57 }
 0x4b0   : > { %v4872_v59 = vpop.f32.mrf.mxu0 }
 0x4b1   : > { %5133 = vst [vmem:[%s9661_s20 + $0x1c0] sm:$0xff] %v5069_v55  ;;  %v5070_v53 = vmax.f32 %v5006_v51, 0.0  ;;  %v5007_v22 = vadd.f32 %v4943_v17, %v4871_v24  ;;  %v4873_v50 = vadd.f32 %v4872_v59, %v9653_v26 }
 0x4b2   : > { %v4876_v10 = vpop.f32.mrf.mxu0 }
 0x4b3   : > { %5134 = vst [vmem:[%s9661_s20 + $0x1c8] sm:$0xff] %v5070_v53  ;;  %v5071_v21 = vmax.f32 %v5007_v22, 0.0  ;;  %v5008_v9 = vadd.f32 %v4944_v33, %v4873_v50  ;;  %v4877_v39 = vadd.f32 %v4876_v10, %v9649_v57 }
 0x4b4   : > { %v4878_v23 = vpop.f32.mrf.mxu0 }
 0x4b5   : > { %5135 = vst [vmem:[%s9661_s20 + $0x1d0] sm:$0xff] %v5071_v21  ;;  %v5072_v61 = vmax.f32 %v5008_v9, 0.0  ;;  %v5009_v11 = vadd.f32 %v4945_v45, %v4877_v39  ;;  %v4879_v48 = vadd.f32 %v4878_v23, %v9653_v26 }
 0x4b6   : > { %v4880_v20 = vpop.f32.mrf.mxu0 }
 0x4b7   : > { %5136 = vst [vmem:[%s9661_s20 + $0x1d8] sm:$0xff] %v5072_v61  ;;  %v5073_v52 = vmax.f32 %v5009_v11, 0.0  ;;  %v5010_v1 = vadd.f32 %v4946_v3, %v4879_v48  ;;  %v4881_v58 = vadd.f32 %v4880_v20, %v9649_v57 }
 0x4b8   : > { %v4882_v25 = vpop.f32.mrf.mxu0 }
 0x4b9   : > { %5137 = vst [vmem:[%s9661_s20 + $0x1e0] sm:$0xff] %v5073_v52  ;;  %v5074_v13 = vmax.f32 %v5010_v1, 0.0  ;;  %v5011_v15 = vadd.f32 %v4947_v41, %v4881_v58  ;;  %v4883_v37 = vadd.f32 %v4882_v25, %v9653_v26 }
 0x4bb   : > { %5138 = vst [vmem:[%s9661_s20 + $0x1e8] sm:$0xff] %v5074_v13  ;;  %v5075_v19 = vmax.f32 %v5011_v15, 0.0  ;;  %v5012_v31 = vadd.f32 %v4948_v0, %v4883_v37 }
 0x4bd   : > { %5139 = vst [vmem:[%s9661_s20 + $0x1f0] sm:$0xff] %v5075_v19  ;;  %v5076_v57 = vmax.f32 %v5012_v31, 0.0 }
 0x4bf   : > { %5140 = vst [vmem:[%s9661_s20 + $0x1f8] sm:$0xff] %v5076_v57 }
 0x4c0   : > { %6401 = shalt.err (!%p6398_p3)
}
 0x4c1   : > { %s6402_s17 = scalar_lea.hbm %s9821_s24, 8192  ;;  %s6406_s20 = scalar_lea.hbm %s9877_s8, 16384 }
 0x4c2   : > { %p6403_p4 = scmp.ne.s32.totalorder %s9821_s24, %s6402_s17  ;;  %p6407_p9 = scmp.lt.s32.totalorder %s9821_s24, %s9877_s8 }
 0x4c3   : > { %p6408_p10 = scmp.lt.s32.totalorder %s6406_s20, %s6402_s17 }
 0x4c4   : > { %p6404_p7 = pnand %p6403_p4, %p6538_p5 }
 0x4c5   : > { %p6409_p11 = por %p6408_p10, %p6407_p9 }
 0x4c6   : > { %p6405_p8 = pneg %p6404_p7 }
 0x4c8   : > { %p6410_p12 = pnand %p6409_p11, %p6405_p8 }
 0x4ca   : > { %6413 = shalt.err (!%p6410_p12)
}
 0x4cb   : > { %s6453_s23 = smov 256   ;;  %s6454_s9 = smov 16  }
 0x4cc   : > { %6209 = dma.vmem_to_hbm [thread:$0]  (%p6538_p5), %s9823_s26, 8192, %s9821_s24, %s9829_s25, %s6453_s23, %s6453_s23, %s6454_s9  }
 0x4cd PF: > { %p6215_p13 = scmp.ge.s32.totalorder %s6448_s30, 2  ;;  %s5170_s12 = sand.u32 1, %s6436_s27  }
 0x4ce   : > { %s5171_s10 = scalar_lea.sflag [#allocation4], %s5170_s12 }
 0x4cf   : > { %p6212_p0 = pnand %p6215_p13, %p6542_p6 }
 0x4d1   : > { %p6213_p1 = pneg %p6212_p0 }
 0x4d3   : > { %6431 = dma.done.wait (%p6213_p1), %s5171_s10, 8192  }
 0x4d4   : > { %6433 = vsyncadd (%p6213_p1), %s5171_s10, 4294959104  ;;  %p18_p2 = scmp.ge.s32.totalorder %s6525_s11, 4   ;;  %s10419_s27 = smov %s6440_s28 }
 0x4d5   : > { %s10420_s28 = smov %s6444_s29  ;;  %s10421_s29 = smov %s6536_s14 }
 0x4d6   : > { %s10422_s30 = smov %s6525_s11  ;;  %20 = sbr.rel (!%p18_p2) target bundleno = 3 (0x3), region = 95 }
 0x4db   :  { %5176 = vsyncpa [#allocation4], 1 }
 0x4dc   :  { %5178 = vsyncpa [#allocation4 + $0x1], 1 }

</bundles_post_ra>
